<compile_context>
chip_gen: v5e
topology: v5e:2x2
jax: 0.10.0
libtpu: 0.0.40
codegen_flags: <defaults>
</compile_context>

<pallas_src>
import functools

import jax
import jax.numpy as jnp
from jax.experimental import pallas as pl
from jax.experimental.pallas import tpu as pltpu

BN_EPS = 0.2       # matches nn.BatchNorm1d(256, eps=0.2)
HEAD_PAD = 128     # lane-dense packed head output: [z_head1, z_head2, 0, ...]


def multi_modal_kernel(x_ref,                        # (B, C, TILE_HW)  native dtype
                       wproxy_ref, bproxy_ref,       # (C, 2048) f32, (1, 2048) f32
                       wfc_hbm, bfc_ref,             # (2048, 512) bf16 [HBM], (1, 512) f32
                       w1_hbm, b1_ref,               # (512, 256) bf16 [HBM], (1, 256) f32
                       gamma_ref, beta_ref,          # (1, 256) f32
                       whead_ref, bhead_ref,         # (256, 128) f32, (1, 128) f32
                       out_ref,                      # (B, 128) f32
                       acc_ref,                      # VMEM scratch (B, C) f32
                       wfc_vmem, w1_vmem,            # VMEM bf16 staging for tail weights
                       dma_sem,                      # DMA semaphores (2,)
                       *, inv_hw, hw, tile_hw, mask_tail):
    k = pl.program_id(0)
    last = pl.num_programs(0) - 1

    # ---- step 0: zero the GAP accumulator and kick off the tail-weight DMAs
    #      so their load is hidden behind the image streaming loop.
    @pl.when(k == 0)
    def _():
        acc_ref[...] = jnp.zeros_like(acc_ref)
        pltpu.make_async_copy(wfc_hbm, wfc_vmem, dma_sem.at[0]).start()
        pltpu.make_async_copy(w1_hbm, w1_vmem, dma_sem.at[1]).start()

    # ---- global-average-pool: accumulate partial sums over the H*W tiles ----
    x = x_ref[...]
    if mask_tail:
        lane = jax.lax.broadcasted_iota(jnp.int32, x.shape, dimension=2)
        x = jnp.where(lane < (hw - k * tile_hw), x, jnp.zeros_like(x))
    acc_ref[...] += jnp.sum(x.astype(jnp.float32), axis=-1)            # (B, C)

    # ---- on the last tile: run the (tiny) MLP tail once ----
    @pl.when(k == last)
    def _():
        pltpu.make_async_copy(wfc_hbm, wfc_vmem, dma_sem.at[0]).wait()
        pltpu.make_async_copy(w1_hbm, w1_vmem, dma_sem.at[1]).wait()

        pooled = acc_ref[...] * inv_hw                                  # true-H*W mean

        # backbone proxy: Linear(C -> 2048) + ReLU (K=C tiny; cheap in absolute terms)
        feat = jnp.maximum(
            jnp.dot(pooled, wproxy_ref[...],
                    preferred_element_type=jnp.float32) + bproxy_ref[...],
            0.0)                                                        # (B, 2048)

        # resnet_model.fc : Linear(2048 -> 512)  (bf16 weights, f32 accumulation)
        f512 = (jnp.dot(feat.astype(jnp.bfloat16), wfc_vmem[...],
                        preferred_element_type=jnp.float32) + bfc_ref[...])

        # x1 : Linear(512 -> 256) + ReLU  (bf16 weights, f32 accumulation)
        h = jnp.maximum(
            jnp.dot(f512.astype(jnp.bfloat16), w1_vmem[...],
                    preferred_element_type=jnp.float32) + b1_ref[...],
            0.0)                                                        # (B, 256)

        # bn1 : BatchNorm1d(256, eps=0.2), training mode (biased batch stats)
        mean = jnp.mean(h, axis=0, keepdims=True)
        var = jnp.mean((h - mean) ** 2, axis=0, keepdims=True)
        hn = (h - mean) * jax.lax.rsqrt(var + BN_EPS) * gamma_ref[...] + beta_ref[...]

        # fused heads: column 0 / 1 of whead are the per-head logit
        # differences, so softmax over 2 classes is exactly sigmoid(z).
        # Exact reciprocal (off the critical path, B*128 elements only).
        z = (jnp.dot(hn, whead_ref[...], preferred_element_type=jnp.float32)
             + bhead_ref[...])                                          # (B, 128)
        out_ref[...] = pl.reciprocal(1.0 + jnp.exp(-z), approx=False)


def prepare_params(params):
    """One-time weight preprocessing, OUTSIDE the jitted per-call path."""
    # big weights stored in bf16 once (f32 accumulation on the MXU in-kernel)
    wfc = params["wfc"].astype(jnp.bfloat16)
    w1 = params["w1"].astype(jnp.bfloat16)

    # fuse the two 256->2 heads into one lane-dense "logit difference" matmul
    dw1 = params["wy1"][:, 0:1] - params["wy1"][:, 1:2]                 # (256, 1)
    dw2 = params["wy2"][:, 0:1] - params["wy2"][:, 1:2]
    db1 = params["by1"][:, 0:1] - params["by1"][:, 1:2]                 # (1, 1)
    db2 = params["by2"][:, 0:1] - params["by2"][:, 1:2]
    whead = jnp.pad(jnp.concatenate([dw1, dw2], axis=1),
                    ((0, 0), (0, HEAD_PAD - 2)))                        # (256, 128)
    bhead = jnp.pad(jnp.concatenate([db1, db2], axis=1),
                    ((0, 0), (0, HEAD_PAD - 2)))                        # (1, 128)

    return {
        "wproxy": params["wproxy"], "bproxy": params["bproxy"],
        "wfc": wfc, "bfc": params["bfc"],
        "w1": w1, "b1": params["b1"],
        "gamma": params["gamma"], "beta": params["beta"],
        "whead": whead, "bhead": bhead,
    }


@jax.jit
def multi_modal_forward(x_nchw, prepared):
    B, C, H, W = x_nchw.shape
    HW = H * W
    itemsize = x_nchw.dtype.itemsize

    # --- tile H*W from a VMEM budget (~8 MiB per pipeline buffer).  No HBM
    #     padding: a ragged last tile is masked in-kernel.
    tile_budget = 8 * 1024 * 1024
    max_tile = max(128, ((tile_budget // (B * C * itemsize)) // 128) * 128)
    tile_hw = HW if HW <= max_tile else max_tile
    num_k = -(-HW // tile_hw)
    mask_tail = (HW % tile_hw) != 0

    x_flat = x_nchw.reshape(B, C, HW)     # free row-major reshape, native dtype

    args = (x_flat,
            prepared["wproxy"], prepared["bproxy"],
            prepared["wfc"], prepared["bfc"],
            prepared["w1"], prepared["b1"],
            prepared["gamma"], prepared["beta"],
            prepared["whead"], prepared["bhead"])

    def resident(a):
        # full-array block, constant block index -> fetched once, stays in VMEM;
        # Buffered(1) avoids double-buffering constant blocks.
        return pl.BlockSpec(a.shape, lambda k: (0,) * a.ndim,
                            pipeline_mode=pl.Buffered(1))

    any_spec = pl.BlockSpec(memory_space=pl.ANY)   # tail weights: manual DMA
    in_specs = [
        pl.BlockSpec((B, C, tile_hw), lambda k: (0, 0, k)),
        resident(prepared["wproxy"]), resident(prepared["bproxy"]),
        any_spec, resident(prepared["bfc"]),
        any_spec, resident(prepared["b1"]),
        resident(prepared["gamma"]), resident(prepared["beta"]),
        resident(prepared["whead"]), resident(prepared["bhead"]),
    ]

    # --- VMEM budget: double-buffered image slab + small residents + staged
    #     tail weights + slack; raised explicitly (v5e scoped default is 16 MiB)
    #     and capped at 32 MiB (safe on v7x's 64 MiB physical).
    small_resident = sum(int(a.size) * a.dtype.itemsize
                         for a in (prepared["wproxy"], prepared["bproxy"],
                                   prepared["bfc"], prepared["b1"],
                                   prepared["gamma"], prepared["beta"],
                                   prepared["whead"], prepared["bhead"]))
    staged = 2 * (int(prepared["wfc"].size) + int(prepared["w1"].size))  # bf16
    x_slab = 2 * B * C * tile_hw * itemsize
    vmem_limit = int(min(32 * 2**20,
                         x_slab + small_resident + staged
                         + B * C * 4 + B * HEAD_PAD * 4 + 4 * 2**20))

    flops = int(2 * B * (C * HW + C * 2048 + 2048 * 512 + 512 * 256
                         + 256 * HEAD_PAD))
    bytes_accessed = int(B * C * HW * itemsize
                         + sum(int(a.size) * a.dtype.itemsize for a in args[1:])
                         + B * HEAD_PAD * 4)

    out = pl.pallas_call(
        functools.partial(multi_modal_kernel, inv_hw=1.0 / HW, hw=HW,
                          tile_hw=tile_hw, mask_tail=mask_tail),
        out_shape=jax.ShapeDtypeStruct((B, HEAD_PAD), jnp.float32),
        grid_spec=pltpu.PrefetchScalarGridSpec(
            num_scalar_prefetch=0,
            grid=(num_k,),
            in_specs=in_specs,
            out_specs=pl.BlockSpec((B, HEAD_PAD), lambda k: (0, 0)),
            scratch_shapes=[
                pltpu.VMEM((B, C), jnp.float32),
                pltpu.VMEM(prepared["wfc"].shape, jnp.bfloat16),
                pltpu.VMEM(prepared["w1"].shape, jnp.bfloat16),
                pltpu.SemaphoreType.DMA((2,)),
            ]),
        compiler_params=pltpu.CompilerParams(
            dimension_semantics=("arbitrary",),
            vmem_limit_bytes=vmem_limit),
        cost_estimate=pl.CostEstimate(
            flops=flops,
            transcendentals=int(B * HEAD_PAD + 256),
            bytes_accessed=bytes_accessed),
    )(*args)

    # softmax over 2 classes == [sigmoid(z), 1 - sigmoid(z)] -> exact row sums
    p1 = out[:, 0:1]
    p2 = out[:, 1:2]
    y1 = jnp.concatenate([p1, 1.0 - p1], axis=1)
    y2 = jnp.concatenate([p2, 1.0 - p2], axis=1)
    return y1, y2


def multi_modal_ref(x_nchw, params):
    """Pure-JAX f32 reference of the same forward (for tolerance testing)."""
    B, C, H, W = x_nchw.shape
    pooled = jnp.mean(x_nchw.astype(jnp.float32).reshape(B, C, H * W), axis=-1)
    feat = jnp.maximum(pooled @ params["wproxy"] + params["bproxy"], 0.0)
    f512 = feat @ params["wfc"] + params["bfc"]
    h = jnp.maximum(f512 @ params["w1"] + params["b1"], 0.0)
    mean = jnp.mean(h, axis=0, keepdims=True)
    var = jnp.mean((h - mean) ** 2, axis=0, keepdims=True)
    hn = (h - mean) * jax.lax.rsqrt(var + BN_EPS) * params["gamma"] + params["beta"]
    l1 = hn @ params["wy1"] + params["by1"]
    l2 = hn @ params["wy2"] + params["by2"]
    return jax.nn.softmax(l1, axis=1), jax.nn.softmax(l2, axis=1)


def init_params(key, in_channels=3):
    """Deterministic synthetic parameters (shapes match the PyTorch module)."""
    ks = jax.random.split(key, 16)

    def xavier_normal(k, fan_in, fan_out):
        std = (2.0 / (fan_in + fan_out)) ** 0.5
        return std * jax.random.normal(k, (fan_in, fan_out), jnp.float32)

    def uniform_bias(k, fan_in, fan_out):
        bound = 1.0 / (fan_in ** 0.5)
        return jax.random.uniform(k, (1, fan_out), jnp.float32, -bound, bound)

    return {
        # backbone proxy: C -> 2048 features
        "wproxy": xavier_normal(ks[0], in_channels, 2048),
        "bproxy": uniform_bias(ks[1], in_channels, 2048),
        # resnet_model.fc : 2048 -> 512
        "wfc": xavier_normal(ks[2], 2048, 512),
        "bfc": uniform_bias(ks[3], 2048, 512),
        # x1 : 512 -> 256
        "w1": xavier_normal(ks[4], 512, 256),
        "b1": uniform_bias(ks[5], 512, 256),
        # bn1 affine params (PyTorch default: gamma=1, beta=0)
        "gamma": jnp.ones((1, 256), jnp.float32),
        "beta": jnp.zeros((1, 256), jnp.float32),
        # y1o / y2o : 256 -> 2
        "wy1": xavier_normal(ks[6], 256, 2),
        "by1": uniform_bias(ks[7], 256, 2),
        "wy2": xavier_normal(ks[8], 256, 2),
        "by2": uniform_bias(ks[9], 256, 2),
    }


if __name__ == "__main__":
    key = jax.random.PRNGKey(0)
    k_x, k_p = jax.random.split(key)

    B, C, H, W = 2, 4, 16, 16   # small NCHW image batch
    x = jax.random.normal(k_x, (B, C, H, W), jnp.float32)
    params = init_params(k_p, in_channels=C)
    prepared = prepare_params(params)      # one-time bf16 cast + head packing

    y1, y2 = multi_modal_forward(x, prepared)
    jax.block_until_ready((y1, y2))

    assert y1.shape == (B, 2) and y2.shape == (B, 2)
    # each 2-class softmax row sums to 1 (exact by construction, within 1 ulp)
    assert jnp.allclose(jnp.sum(y1, axis=1), 1.0, atol=1e-5)
    assert jnp.allclose(jnp.sum(y2, axis=1), 1.0, atol=1e-5)
    # parity with the pure-JAX f32 reference (loose tol: bf16 fc/x1 weights)
    r1, r2 = multi_modal_ref(x, params)
    assert jnp.allclose(y1, r1, atol=5e-2)
    assert jnp.allclose(y2, r2, atol=5e-2)

    print("KERNEL_OK")
</pallas_src>

<mosaic_0001>
module attributes {stable_mosaic.version = 11 : i64} {
  func.func @multi_modal_kernel(%arg0: i32, %arg1: memref<2x4x256xf32, #tpu.memory_space<vmem>>, %arg2: memref<4x2048xf32, #tpu.memory_space<vmem>>, %arg3: memref<1x2048xf32, #tpu.memory_space<vmem>>, %arg4: memref<2048x512xbf16, #tpu.memory_space<any>>, %arg5: memref<1x512xf32, #tpu.memory_space<vmem>>, %arg6: memref<512x256xbf16, #tpu.memory_space<any>>, %arg7: memref<1x256xf32, #tpu.memory_space<vmem>>, %arg8: memref<1x256xf32, #tpu.memory_space<vmem>>, %arg9: memref<1x256xf32, #tpu.memory_space<vmem>>, %arg10: memref<256x128xf32, #tpu.memory_space<vmem>>, %arg11: memref<1x128xf32, #tpu.memory_space<vmem>>, %arg12: memref<2x128xf32, #tpu.memory_space<vmem>>, %arg13: memref<2x4xf32, #tpu.memory_space<vmem>>, %arg14: memref<2048x512xbf16, #tpu.memory_space<vmem>>, %arg15: memref<512x256xbf16, #tpu.memory_space<vmem>>, %arg16: memref<2x!tpu.dma_semaphore, #tpu.memory_space<semaphore_mem>>) attributes {dimension_semantics = [#tpu.dimension_semantics<arbitrary>], iteration_bounds = array<i64: 1>, scalar_prefetch = 0 : i64, scratch_operands = 4 : i64, tpu.core_type = #tpu.core_type<tc>, window_params = [{transform_indices = @transform_0, window_bounds = array<i64: 2, 4, 256>}, {pipeline_mode = #tpu.pipeline_mode<synchronous>, transform_indices = @transform_1, window_bounds = array<i64: 4, 2048>}, {pipeline_mode = #tpu.pipeline_mode<synchronous>, transform_indices = @transform_2, window_bounds = array<i64: 1, 2048>}, {}, {pipeline_mode = #tpu.pipeline_mode<synchronous>, transform_indices = @transform_4, window_bounds = array<i64: 1, 512>}, {}, {pipeline_mode = #tpu.pipeline_mode<synchronous>, transform_indices = @transform_6, window_bounds = array<i64: 1, 256>}, {pipeline_mode = #tpu.pipeline_mode<synchronous>, transform_indices = @transform_7, window_bounds = array<i64: 1, 256>}, {pipeline_mode = #tpu.pipeline_mode<synchronous>, transform_indices = @transform_8, window_bounds = array<i64: 1, 256>}, {pipeline_mode = #tpu.pipeline_mode<synchronous>, transform_indices = @transform_9, window_bounds = array<i64: 256, 128>}, {pipeline_mode = #tpu.pipeline_mode<synchronous>, transform_indices = @transform_10, window_bounds = array<i64: 1, 128>}, {pipeline_mode = #tpu.pipeline_mode<synchronous>, transform_indices = @transform_11, window_bounds = array<i64: 2, 128>}]} {
    %c0_i32 = arith.constant 0 : i32
    %0 = arith.cmpi eq, %arg0, %c0_i32 : i32
    %1 = arith.extui %0 : i1 to i32
    %c0_i32_0 = arith.constant 0 : i32
    %2 = arith.cmpi ne, %1, %c0_i32_0 : i32
    scf.if %2 {
      %cst_9 = arith.constant 0.000000e+00 : f32
      %11 = vector.broadcast %cst_9 : f32 to vector<2x4xf32>
      %c0_10 = arith.constant 0 : index
      %c0_11 = arith.constant 0 : index
      %12 = vector.load %arg13[%c0_10, %c0_11] : memref<2x4xf32, #tpu.memory_space<vmem>>, vector<2x4xf32>
      tpu.vector_store %arg13[%c0_10, %c0_11], %11 {strides = array<i32>} : memref<2x4xf32, #tpu.memory_space<vmem>>, vector<2x4xf32>,
      %c0_i32_12 = arith.constant 0 : i32
      %13 = tpu.memref_slice %arg16[%c0_i32_12] : memref<2x!tpu.dma_semaphore, #tpu.memory_space<semaphore_mem>> -> memref<1x!tpu.dma_semaphore, #tpu.memory_space<semaphore_mem>>
      %14 = tpu.memref_squeeze %13 : memref<1x!tpu.dma_semaphore, #tpu.memory_space<semaphore_mem>> -> memref<!tpu.dma_semaphore, #tpu.memory_space<semaphore_mem>>
      tpu.enqueue_dma source(%arg4 : memref<2048x512xbf16, #tpu.memory_space<any>>) target(%arg14 : memref<2048x512xbf16, #tpu.memory_space<vmem>>) target_semaphore(%14 : memref<!tpu.dma_semaphore, #tpu.memory_space<semaphore_mem>>)
      %c1_i32 = arith.constant 1 : i32
      %15 = tpu.memref_slice %arg16[%c1_i32] : memref<2x!tpu.dma_semaphore, #tpu.memory_space<semaphore_mem>> -> memref<1x!tpu.dma_semaphore, #tpu.memory_space<semaphore_mem>>
      %16 = tpu.memref_squeeze %15 : memref<1x!tpu.dma_semaphore, #tpu.memory_space<semaphore_mem>> -> memref<!tpu.dma_semaphore, #tpu.memory_space<semaphore_mem>>
      tpu.enqueue_dma source(%arg6 : memref<512x256xbf16, #tpu.memory_space<any>>) target(%arg15 : memref<512x256xbf16, #tpu.memory_space<vmem>>) target_semaphore(%16 : memref<!tpu.dma_semaphore, #tpu.memory_space<semaphore_mem>>)
    } else {
    }
    %c0 = arith.constant 0 : index
    %c0_1 = arith.constant 0 : index
    %c0_2 = arith.constant 0 : index
    %3 = vector.load %arg1[%c0, %c0_1, %c0_2] : memref<2x4x256xf32, #tpu.memory_space<vmem>>, vector<2x4x256xf32>
    %c0_3 = arith.constant 0 : index
    %c0_4 = arith.constant 0 : index
    %4 = vector.load %arg13[%c0_3, %c0_4] : memref<2x4xf32, #tpu.memory_space<vmem>>, vector<2x4xf32>
    %cst = arith.constant dense<0.000000e+00> : vector<2x4xf32>
    %5 = vector.multi_reduction <add>, %3, %cst [2] : vector<2x4x256xf32> to vector<2x4xf32>
    %6 = arith.addf %4, %5 : vector<2x4xf32>
    %c0_5 = arith.constant 0 : index
    %c0_6 = arith.constant 0 : index
    %7 = vector.load %arg13[%c0_5, %c0_6] : memref<2x4xf32, #tpu.memory_space<vmem>>, vector<2x4xf32>
    tpu.vector_store %arg13[%c0_5, %c0_6], %6 {strides = array<i32>} : memref<2x4xf32, #tpu.memory_space<vmem>>, vector<2x4xf32>,
    %c0_i32_7 = arith.constant 0 : i32
    %8 = arith.cmpi eq, %arg0, %c0_i32_7 : i32
    %9 = arith.extui %8 : i1 to i32
    %c0_i32_8 = arith.constant 0 : i32
    %10 = arith.cmpi ne, %9, %c0_i32_8 : i32
    scf.if %10 {
      %c0_i32_9 = arith.constant 0 : i32
      %11 = tpu.memref_slice %arg16[%c0_i32_9] : memref<2x!tpu.dma_semaphore, #tpu.memory_space<semaphore_mem>> -> memref<1x!tpu.dma_semaphore, #tpu.memory_space<semaphore_mem>>
      %12 = tpu.memref_squeeze %11 : memref<1x!tpu.dma_semaphore, #tpu.memory_space<semaphore_mem>> -> memref<!tpu.dma_semaphore, #tpu.memory_space<semaphore_mem>>
      tpu.wait_dma2 semaphore(%12 : memref<!tpu.dma_semaphore, #tpu.memory_space<semaphore_mem>>) src(%arg4 : memref<2048x512xbf16, #tpu.memory_space<any>>) dst(%arg14 : memref<2048x512xbf16, #tpu.memory_space<vmem>>)
      %c1_i32 = arith.constant 1 : i32
      %13 = tpu.memref_slice %arg16[%c1_i32] : memref<2x!tpu.dma_semaphore, #tpu.memory_space<semaphore_mem>> -> memref<1x!tpu.dma_semaphore, #tpu.memory_space<semaphore_mem>>
      %14 = tpu.memref_squeeze %13 : memref<1x!tpu.dma_semaphore, #tpu.memory_space<semaphore_mem>> -> memref<!tpu.dma_semaphore, #tpu.memory_space<semaphore_mem>>
      tpu.wait_dma2 semaphore(%14 : memref<!tpu.dma_semaphore, #tpu.memory_space<semaphore_mem>>) src(%arg6 : memref<512x256xbf16, #tpu.memory_space<any>>) dst(%arg15 : memref<512x256xbf16, #tpu.memory_space<vmem>>)
      %c0_10 = arith.constant 0 : index
      %c0_11 = arith.constant 0 : index
      %15 = vector.load %arg13[%c0_10, %c0_11] : memref<2x4xf32, #tpu.memory_space<vmem>>, vector<2x4xf32>
      %cst_12 = arith.constant 3.906250e-03 : f32
      %16 = vector.broadcast %cst_12 : f32 to vector<2x4xf32>
      %17 = arith.mulf %15, %16 : vector<2x4xf32>
      %c0_13 = arith.constant 0 : index
      %c0_14 = arith.constant 0 : index
      %18 = vector.load %arg2[%c0_13, %c0_14] : memref<4x2048xf32, #tpu.memory_space<vmem>>, vector<4x2048xf32>
      %cst_15 = arith.constant dense<0.000000e+00> : vector<2x2048xf32>
      %19 = tpu.matmul %17, %18, %cst_15 {dimension_numbers = #tpu.dot_dimension_numbers<[1], [0], [0], [1], [0, 0, 1, 1], [], []>} : vector<2x4xf32>, vector<4x2048xf32>, vector<2x2048xf32> -> vector<2x2048xf32>
      %c0_16 = arith.constant 0 : index
      %c0_17 = arith.constant 0 : index
      %20 = vector.load %arg3[%c0_16, %c0_17] : memref<1x2048xf32, #tpu.memory_space<vmem>>, vector<1x2048xf32>
      %21 = vector.broadcast %20 : vector<1x2048xf32> to vector<2x2048xf32>
      %22 = arith.addf %19, %21 : vector<2x2048xf32>
      %cst_18 = arith.constant 0.000000e+00 : f32
      %23 = vector.broadcast %cst_18 : f32 to vector<2x2048xf32>
      %24 = arith.maximumf %22, %23 : vector<2x2048xf32>
      %25 = arith.truncf %24 : vector<2x2048xf32> to vector<2x2048xbf16>
      %c0_19 = arith.constant 0 : index
      %c0_20 = arith.constant 0 : index
      %26 = vector.load %arg14[%c0_19, %c0_20] : memref<2048x512xbf16, #tpu.memory_space<vmem>>, vector<2048x512xbf16>
      %cst_21 = arith.constant dense<0.000000e+00> : vector<2x512xf32>
      %27 = tpu.matmul %25, %26, %cst_21 {dimension_numbers = #tpu.dot_dimension_numbers<[1], [0], [0], [1], [0, 0, 1, 1], [], []>} : vector<2x2048xbf16>, vector<2048x512xbf16>, vector<2x512xf32> -> vector<2x512xf32>
      %c0_22 = arith.constant 0 : index
      %c0_23 = arith.constant 0 : index
      %28 = vector.load %arg5[%c0_22, %c0_23] : memref<1x512xf32, #tpu.memory_space<vmem>>, vector<1x512xf32>
      %29 = vector.broadcast %28 : vector<1x512xf32> to vector<2x512xf32>
      %30 = arith.addf %27, %29 : vector<2x512xf32>
      %31 = arith.truncf %30 : vector<2x512xf32> to vector<2x512xbf16>
      %c0_24 = arith.constant 0 : index
      %c0_25 = arith.constant 0 : index
      %32 = vector.load %arg15[%c0_24, %c0_25] : memref<512x256xbf16, #tpu.memory_space<vmem>>, vector<512x256xbf16>
      %cst_26 = arith.constant dense<0.000000e+00> : vector<2x256xf32>
      %33 = tpu.matmul %31, %32, %cst_26 {dimension_numbers = #tpu.dot_dimension_numbers<[1], [0], [0], [1], [0, 0, 1, 1], [], []>} : vector<2x512xbf16>, vector<512x256xbf16>, vector<2x256xf32> -> vector<2x256xf32>
      %c0_27 = arith.constant 0 : index
      %c0_28 = arith.constant 0 : index
      %34 = vector.load %arg7[%c0_27, %c0_28] : memref<1x256xf32, #tpu.memory_space<vmem>>, vector<1x256xf32>
      %35 = vector.broadcast %34 : vector<1x256xf32> to vector<2x256xf32>
      %36 = arith.addf %33, %35 : vector<2x256xf32>
      %cst_29 = arith.constant 0.000000e+00 : f32
      %37 = vector.broadcast %cst_29 : f32 to vector<2x256xf32>
      %38 = arith.maximumf %36, %37 : vector<2x256xf32>
      %cst_30 = arith.constant dense<0.000000e+00> : vector<256xf32>
      %39 = vector.multi_reduction <add>, %38, %cst_30 [0] : vector<2x256xf32> to vector<256xf32>
      %40 = vector.shape_cast %39 : vector<256xf32> to vector<1x256xf32>
      %cst_31 = arith.constant 2.000000e+00 : f32
      %41 = vector.broadcast %cst_31 : f32 to vector<1x256xf32>
      %42 = arith.divf %40, %41 : vector<1x256xf32>
      %43 = vector.broadcast %42 : vector<1x256xf32> to vector<2x256xf32>
      %44 = arith.subf %38, %43 : vector<2x256xf32>
      %45 = arith.mulf %44, %44 : vector<2x256xf32>
      %cst_32 = arith.constant dense<0.000000e+00> : vector<256xf32>
      %46 = vector.multi_reduction <add>, %45, %cst_32 [0] : vector<2x256xf32> to vector<256xf32>
      %47 = vector.shape_cast %46 : vector<256xf32> to vector<1x256xf32>
      %cst_33 = arith.constant 2.000000e+00 : f32
      %48 = vector.broadcast %cst_33 : f32 to vector<1x256xf32>
      %49 = arith.divf %47, %48 : vector<1x256xf32>
      %50 = vector.broadcast %42 : vector<1x256xf32> to vector<2x256xf32>
      %51 = arith.subf %38, %50 : vector<2x256xf32>
      %cst_34 = arith.constant 2.000000e-01 : f32
      %52 = vector.broadcast %cst_34 : f32 to vector<1x256xf32>
      %53 = arith.addf %49, %52 : vector<1x256xf32>
      %54 = math.rsqrt %53 : vector<1x256xf32>
      %55 = vector.broadcast %54 : vector<1x256xf32> to vector<2x256xf32>
      %56 = arith.mulf %51, %55 : vector<2x256xf32>
      %c0_35 = arith.constant 0 : index
      %c0_36 = arith.constant 0 : index
      %57 = vector.load %arg8[%c0_35, %c0_36] : memref<1x256xf32, #tpu.memory_space<vmem>>, vector<1x256xf32>
      %58 = vector.broadcast %57 : vector<1x256xf32> to vector<2x256xf32>
      %59 = arith.mulf %56, %58 : vector<2x256xf32>
      %c0_37 = arith.constant 0 : index
      %c0_38 = arith.constant 0 : index
      %60 = vector.load %arg9[%c0_37, %c0_38] : memref<1x256xf32, #tpu.memory_space<vmem>>, vector<1x256xf32>
      %61 = vector.broadcast %60 : vector<1x256xf32> to vector<2x256xf32>
      %62 = arith.addf %59, %61 : vector<2x256xf32>
      %c0_39 = arith.constant 0 : index
      %c0_40 = arith.constant 0 : index
      %63 = vector.load %arg10[%c0_39, %c0_40] : memref<256x128xf32, #tpu.memory_space<vmem>>, vector<256x128xf32>
      %cst_41 = arith.constant dense<0.000000e+00> : vector<2x128xf32>
      %64 = tpu.matmul %62, %63, %cst_41 {dimension_numbers = #tpu.dot_dimension_numbers<[1], [0], [0], [1], [0, 0, 1, 1], [], []>} : vector<2x256xf32>, vector<256x128xf32>, vector<2x128xf32> -> vector<2x128xf32>
      %c0_42 = arith.constant 0 : index
      %c0_43 = arith.constant 0 : index
      %65 = vector.load %arg11[%c0_42, %c0_43] : memref<1x128xf32, #tpu.memory_space<vmem>>, vector<1x128xf32>
      %66 = vector.broadcast %65 : vector<1x128xf32> to vector<2x128xf32>
      %67 = arith.addf %64, %66 : vector<2x128xf32>
      %cst_44 = arith.constant 0.000000e+00 : f32
      %68 = vector.broadcast %cst_44 : f32 to vector<2x128xf32>
      %69 = arith.subf %68, %67 : vector<2x128xf32>
      %70 = math.exp %69 : vector<2x128xf32>
      %cst_45 = arith.constant 1.000000e+00 : f32
      %71 = vector.broadcast %cst_45 : f32 to vector<2x128xf32>
      %72 = arith.addf %71, %70 : vector<2x128xf32>
      %73 = tpu.reciprocal %72 : vector<2x128xf32> -> vector<2x128xf32>
      %c0_46 = arith.constant 0 : index
      %c0_47 = arith.constant 0 : index
      %74 = vector.load %arg12[%c0_46, %c0_47] : memref<2x128xf32, #tpu.memory_space<vmem>>, vector<2x128xf32>
      tpu.vector_store %arg12[%c0_46, %c0_47], %73 {strides = array<i32>} : memref<2x128xf32, #tpu.memory_space<vmem>>, vector<2x128xf32>,
    } else {
    }
    return
  }
  func.func @transform_0(%arg0: i32) -> (i32, i32, i32) {
    %c0_i32 = arith.constant 0 : i32
    %c0_i32_0 = arith.constant 0 : i32
    %c0_i32_1 = arith.constant 0 : i32
    return %c0_i32, %c0_i32_0, %arg0 : i32, i32, i32
  }
  func.func @transform_1(%arg0: i32) -> (i32, i32) {
    %c0_i32 = arith.constant 0 : i32
    %c0_i32_0 = arith.constant 0 : i32
    %c0_i32_1 = arith.constant 0 : i32
    return %c0_i32, %c0_i32_0 : i32, i32
  }
  func.func @transform_2(%arg0: i32) -> (i32, i32) {
    %c0_i32 = arith.constant 0 : i32
    %c0_i32_0 = arith.constant 0 : i32
    %c0_i32_1 = arith.constant 0 : i32
    return %c0_i32, %c0_i32_0 : i32, i32
  }
  func.func @transform_4(%arg0: i32) -> (i32, i32) {
    %c0_i32 = arith.constant 0 : i32
    %c0_i32_0 = arith.constant 0 : i32
    %c0_i32_1 = arith.constant 0 : i32
    return %c0_i32, %c0_i32_0 : i32, i32
  }
  func.func @transform_6(%arg0: i32) -> (i32, i32) {
    %c0_i32 = arith.constant 0 : i32
    %c0_i32_0 = arith.constant 0 : i32
    %c0_i32_1 = arith.constant 0 : i32
    return %c0_i32, %c0_i32_0 : i32, i32
  }
  func.func @transform_7(%arg0: i32) -> (i32, i32) {
    %c0_i32 = arith.constant 0 : i32
    %c0_i32_0 = arith.constant 0 : i32
    %c0_i32_1 = arith.constant 0 : i32
    return %c0_i32, %c0_i32_0 : i32, i32
  }
  func.func @transform_8(%arg0: i32) -> (i32, i32) {
    %c0_i32 = arith.constant 0 : i32
    %c0_i32_0 = arith.constant 0 : i32
    %c0_i32_1 = arith.constant 0 : i32
    return %c0_i32, %c0_i32_0 : i32, i32
  }
  func.func @transform_9(%arg0: i32) -> (i32, i32) {
    %c0_i32 = arith.constant 0 : i32
    %c0_i32_0 = arith.constant 0 : i32
    %c0_i32_1 = arith.constant 0 : i32
    return %c0_i32, %c0_i32_0 : i32, i32
  }
  func.func @transform_10(%arg0: i32) -> (i32, i32) {
    %c0_i32 = arith.constant 0 : i32
    %c0_i32_0 = arith.constant 0 : i32
    %c0_i32_1 = arith.constant 0 : i32
    return %c0_i32, %c0_i32_0 : i32, i32
  }
  func.func @transform_11(%arg0: i32) -> (i32, i32) {
    %c0_i32 = arith.constant 0 : i32
    %c0_i32_0 = arith.constant 0 : i32
    %c0_i32_1 = arith.constant 0 : i32
    return %c0_i32, %c0_i32_0 : i32, i32
  }
}

</mosaic_0001>

<bundles_post_ra>
// kernel: multi_modal_forward.1
= control target key start
LH: loop header
LB: loop body
LE: loop exit
PB: predicated region body
PF: predicated region fallthrough
CT: control target
= control target key end

     0   :  { %16 = vsyncpa [#allocation7], 0  ;;  %s8878_s0 = inlined_call_operand.vmem [shape: f32[2,4,256], index: 0, kind: input, shape index: {}]   ;;  %s8879_s1 = inlined_call_operand.hbm [shape: f32[4,2048], index: 1, kind: input, shape index: {}]   ;;  %s8880_s2 = inlined_call_operand.hbm [shape: f32[1,2048], index: 2, kind: input, shape index: {}]   ;;  %s8881_s3 = inlined_call_operand.hbm [shape: bf16[2048,512], index: 3, kind: input, shape index: {}]   ;;  %s8882_s4 = inlined_call_operand.hbm [shape: f32[1,512], index: 4, kind: input, shape index: {}]   ;;  %s8883_s5 = inlined_call_operand.hbm [shape: bf16[512,256], index: 5, kind: input, shape index: {}]   ;;  %s8884_s6 = inlined_call_operand.hbm [shape: f32[1,256], index: 6, kind: input, shape index: {}]   ;;  %s8885_s7 = inlined_call_operand.hbm [shape: f32[1,256], index: 7, kind: input, shape index: {}]   ;;  %s8886_s8 = inlined_call_operand.hbm [shape: f32[1,256], index: 8, kind: input, shape index: {}]   ;;  %s8887_s9 = inlined_call_operand.hbm [shape: f32[256,128], index: 9, kind: input, shape index: {}]   ;;  %s8888_s10 = inlined_call_operand.hbm [shape: f32[1,128], index: 10, kind: input, shape index: {}]   ;;  %s8889_s11 = inlined_call_operand.vmem [shape: f32[2,128], index: 11, kind: output, shape index: {}]  }
   0x1   :  { %17 = vsyncpa [#allocation9], 0 }
   0x2   :  { %18 = vsyncpa [#allocation12], 0 }
   0x3   :  { %19 = vsyncpa [#allocation15], 0  ;;  %s39_s19 = sshll.u32 %s8880_s2, 4  ;;  %s40_s19 = int_to_ptr.hbm [resolvable:$true] %s39_s19 }
   0x4   :  { %20 = vsyncpa [#allocation18], 0  ;;  %s8508_s20 = smov [#allocation8]   ;;  %s61_s24 = sshll.u32 %s8884_s6, 4  ;;  %s62_s24 = int_to_ptr.hbm [resolvable:$true] %s61_s24 }
   0x5   :  { %s41_s21 = sshll.u32 %s8508_s20, 4  ;;  %s8509_s25 = smov [#allocation11]   ;;  %s42_s21 = int_to_ptr.vmem [resolvable:$true] %s41_s21 }
   0x6   :  { %44 = dma.hbm_to_vmem [thread:$0]  %s40_s19, 256, %s42_s21, [#allocation9]  }
   0x7   :  { %s63_s26 = sshll.u32 %s8509_s25, 4  ;;  %s83_s29 = sshll.u32 %s8886_s8, 4  ;;  %s64_s26 = int_to_ptr.vmem [resolvable:$true] %s63_s26  ;;  %s84_s29 = int_to_ptr.hbm [resolvable:$true] %s83_s29 }
   0x8   :  { %66 = dma.hbm_to_vmem [thread:$0]  %s62_s24, 32, %s64_s26, [#allocation12]  }
   0x9   :  { %s28_s12 = sshll.u32 %s8879_s1, 4  ;;  %s8510_s13 = smov [#allocation14]   ;;  %s29_s12 = int_to_ptr.hbm [resolvable:$true] %s28_s12 }
   0xa   :  { %s85_s14 = sshll.u32 %s8510_s13, 4  ;;  %s8511_s6 = smov [#allocation6]   ;;  %s86_s14 = int_to_ptr.vmem [resolvable:$true] %s85_s14 }
   0xb   :  { %88 = dma.hbm_to_vmem [thread:$0]  %s84_s29, 32, %s86_s14, [#allocation15]  }
   0xc   :  { %s30_s15 = sshll.u32 %s8511_s6, 4  ;;  %s50_s18 = sshll.u32 %s8882_s4, 4  ;;  %s31_s15 = int_to_ptr.vmem [resolvable:$true] %s30_s15  ;;  %s51_s18 = int_to_ptr.hbm [resolvable:$true] %s50_s18 }
   0xd   :  { %33 = dma.hbm_to_vmem [thread:$0]  %s29_s12, 1024, %s31_s15, [#allocation7]  }
   0xe   :  { %s72_s20 = sshll.u32 %s8885_s7, 4  ;;  %s8512_s21 = smov [#allocation10]   ;;  %s73_s20 = int_to_ptr.hbm [resolvable:$true] %s72_s20 }
   0xf   :  { %s52_s1 = sshll.u32 %s8512_s21, 4  ;;  %s8513_s22 = smov [#allocation13]   ;;  %s53_s1 = int_to_ptr.vmem [resolvable:$true] %s52_s1 }
  0x10   :  { %55 = dma.hbm_to_vmem [thread:$0]  %s51_s18, 64, %s53_s1, [#allocation9]  }
  0x11   :  { %s74_s23 = sshll.u32 %s8513_s22, 4  ;;  %s93_s26 = sshll.u32 %s8887_s9, 4  ;;  %s75_s23 = int_to_ptr.vmem [resolvable:$true] %s74_s23  ;;  %s94_s26 = int_to_ptr.hbm [resolvable:$true] %s93_s26 }
  0x12   :  { %77 = dma.hbm_to_vmem [thread:$0]  %s73_s20, 32, %s75_s23, [#allocation12]  }
  0x13   :  { %s8514_s4 = smov [#allocation16]   ;;  %s107_s7 = sshll.u32 %s8888_s10, 4  ;;  %s108_s7 = int_to_ptr.hbm [resolvable:$true] %s107_s7 }
  0x14   :  { %s95_s27 = sshll.u32 %s8514_s4, 4  ;;  %s8515_s2 = smov 128   ;;  %s96_s27 = int_to_ptr.vmem [resolvable:$true] %s95_s27 }
  0x15   :  { %s8516_s30 = smov 8   ;;  %s8517_s12 = smov [#allocation17]  }
  0x16   :  { %101 = dma.hbm_to_vmem [thread:$0]  %s94_s26, 4096, %s96_s27, [#allocation15], %s8515_s2, %s8515_s2, %s8516_s30  }
  0x17   :  { %s109_s13 = sshll.u32 %s8517_s12, 4  ;;  %s110_s13 = int_to_ptr.vmem [resolvable:$true] %s109_s13 }
  0x18   :  { %112 = dma.hbm_to_vmem [thread:$0]  %s108_s7, 16, %s110_s13, [#allocation18]  }
  0x19   :  { %8494 = dma.done.wait [#allocation7], 1024  }
  0x1a   :  { %8495 = vsyncadd [#allocation7], 4294966272 }
  0x1b   :  { %8496 = dma.done.wait [#allocation9], 320  }
  0x1c   :  { %8497 = vsyncadd [#allocation9], 4294966976 }
  0x1d   :  { %8498 = dma.done.wait [#allocation12], 64  }
  0x1e   :  { %8499 = vsyncadd [#allocation12], 4294967232 }
  0x1f   :  { %8500 = dma.done.wait [#allocation15], 4128  }
  0x20   :  { %8501 = vsyncadd [#allocation15], 4294963168 }
  0x21   :  { %8502 = dma.done.wait [#allocation18], 16  }
  0x22   :  { %8503 = vsyncadd [#allocation18], 4294967280  ;;  %v178_v0 = vld [vmem:[%s8878_s0] sm:$0xff]  ;;  %v179_v1 = vld [vmem:[%s8878_s0 + $0x8] sm:$0xff]  ;;  %vm194_vm0 = vcmask 1043456   ;;  %s158_s17 = sshll.u32 %s8881_s3, 4  ;;  %v207_v14 = vlaneseq  ;;  %s159_s17 = int_to_ptr.hbm [resolvable:$true] %s158_s17 }
  0x23   :  { %183 = vst [vmem:[#allocation1] ss:$2 sm:$0xff] %v178_v0  ;;  %s8518_s18 = smov [#allocation3]   ;;  %s172_s20 = sshll.u32 %s8883_s5, 4  ;;  %vm149_vm1 = vcmask 25600   ;;  %v8520_v12 = vmov 0.0   ;;  %s173_s20 = int_to_ptr.hbm [resolvable:$true] %s172_s20 }
  0x24   :  { %187 = vst [vmem:[#allocation1 + $0x10] ss:$2 sm:$0xff] %v179_v1  ;;  %s160_s8 = sshll.u32 %s8518_s18, 4  ;;  %s8519_s21 = smov [#allocation4]   ;;  %v208_v15 = vand.u32 127, %v207_v14  ;;  %vm211_vm2 = vcmask 1041409   ;;  %s161_s8 = int_to_ptr.vmem [resolvable:$true] %s160_s8 }
  0x25   :  { %163 = dma.hbm_to_vmem [thread:$0]  %s159_s17, 65536, %s161_s8, [#allocation5]  ;;  %150 = vst.msk [vmem:[#allocation2] sm:$0x3] %vm149_vm1, %v8520_v12 }
  0x26   :  { %s174_s1 = sshll.u32 %s8519_s21, 4  ;;  %s175_s1 = int_to_ptr.vmem [resolvable:$true] %s174_s1 }
  0x27   :  { %177 = dma.hbm_to_vmem [thread:$0]  %s173_s20, 8192, %s175_s1, [#allocation5 + $0x1] }
  0x2a   :  { %v184_v2 = vld.sshfl [vmem:[#allocation1] sm:$0xff pattern:$0x75316420]  ;;  %v185_v3 = vld.sshfl [vmem:[#allocation1 + $0x8] sm:$0xff pattern:$0x75316420] }
  0x2b   :  { %v195_v4 = vsel %vm194_vm0, %v184_v2, 0.0  ;;  %v196_v5 = vsel %vm194_vm0, %v185_v3, 0.0  ;;  %v188_v6 = vld.sshfl [vmem:[#allocation1 + $0x10] sm:$0xff pattern:$0x75316420] }
  0x2c   :  { %v197_v7 = vadd.f32 %v196_v5, %v195_v4  ;;  %v189_v8 = vld.sshfl [vmem:[#allocation1 + $0x18] sm:$0xff pattern:$0x75316420]  ;;  %v200_v9 = vsel %vm194_vm0, %v188_v6, 0.0  ;;  %v180_v18 = vld [vmem:[#allocation2] sm:$0x3] }
  0x2d   :  { %v201_v10 = vsel %vm194_vm0, %v189_v8, 0.0 }
  0x2e   :  { %198 = vadd.xlane.f32.xlu0 %v197_v7  ;;  %v202_v11 = vadd.f32 %v201_v10, %v200_v9 }
  0x36   :  { %203 = vadd.xlane.f32.xlu0 %v202_v11 }
  0xa1   :  { %v199_v13 = vpop.xlane.xlu0 %198 }
  0xa2   :  { %v209_v17 = vperm.slane %v199_v13, %v208_v15 }
  0xa9   :  { %v204_v16 = vpop.xlane.xlu0 %203 }
  0xaa   :  { %v210_v19 = vperm.slane %v204_v16, %v208_v15 }
  0xac   :  { %v212_v20 = vsel %vm211_vm2, %v210_v19, %v209_v17 }
  0xad   :  { %v214_v21 = vadd.f32 %v212_v20, %v180_v18 }
  0xaf   :  { %216 = vst.msk [vmem:[#allocation2] sm:$0x3] %vm149_vm1, %v214_v21 }
  0xb0   :  { %8504 = dma.done.wait [#allocation5], 65536 }
  0xb1   :  { %8505 = vsyncadd [#allocation5], 4294901760 }
  0xb2   :  { %8506 = dma.done.wait [#allocation5 + $0x1], 8192 }
  0xb3   :  { %8507 = vsyncadd [#allocation5 + $0x1], 4294959104  ;;  %v231_v22 = vld [vmem:[#allocation6] sm:$0xff]  ;;  %v232_v23 = vld [vmem:[#allocation6 + $0x8] sm:$0xff]  ;;  %vm310_vm3 = vcmask 31744   ;;  %vm5112_vm4 = vcmask 1041408  }
  0xb4   :  { %283 = vst [vmem:[#allocation1] ss:$2 sm:$0xff] %v231_v22  ;;  %v233_v24 = vld [vmem:[#allocation6 + $0x10] sm:$0xff]  ;;  %v234_v25 = vld [vmem:[#allocation6 + $0x18] sm:$0xff]  ;;  %v235_v27 = vld [vmem:[#allocation6 + $0x20] sm:$0xff] }
  0xb5   :  { %285 = vst [vmem:[#allocation1 + $0x10] ss:$2 sm:$0xff] %v232_v23  ;;  %v236_v29 = vld [vmem:[#allocation6 + $0x28] sm:$0xff]  ;;  %v237_v33 = vld [vmem:[#allocation6 + $0x30] sm:$0xff]  ;;  %v238_v37 = vld [vmem:[#allocation6 + $0x38] sm:$0xff] }
  0xb6   :  { %v229_v26 = vld [vmem:[#allocation2] sm:$0x3]  ;;  %287 = vst [vmem:[#allocation1 + $0x20] ss:$2 sm:$0xff] %v233_v24  ;;  %v5459_v40 = vld [vmem:[#allocation3 + $0xe0] sm:$0xf] }
  0xb7   :  { %289 = vst [vmem:[#allocation1 + $0x30] ss:$2 sm:$0xff] %v234_v25  ;;  %v8622_v28 = vmul.f32 0.00390625, %v229_v26  ;;  %v7681_v41 = vld [vmem:[#allocation3 + $0xec] sm:$0xf0] }
  0xb8   :  { %v5587_v42 = vld [vmem:[#allocation3 + $0x1e0] sm:$0xf]  ;;  %v7713_v43 = vld [vmem:[#allocation3 + $0x1ec] sm:$0xf0]  ;;  %v5460_v48 = vor.u32 %v7681_v41, %v5459_v40 }
  0xb9   :  { %v5588_v49 = vor.u32 %v7713_v43, %v5587_v42  ;;  %v5443_v50 = vld [vmem:[#allocation3 + $0xc0] sm:$0xf]  ;;  %v7677_v53 = vld [vmem:[#allocation3 + $0xcc] sm:$0xf0] }
  0xba   :  { %v5571_v54 = vld [vmem:[#allocation3 + $0x1c0] sm:$0xf]  ;;  %v7709_v55 = vld [vmem:[#allocation3 + $0x1cc] sm:$0xf0]  ;;  %v5444_v59 = vor.u32 %v7677_v53, %v5443_v50 }
  0xbb   :  { %v290_v30 = vld.sshfl [vmem:[#allocation1] sm:$0xff pattern:$0x75316420]  ;;  %v291_v31 = vld.sshfl [vmem:[#allocation1 + $0x8] sm:$0xff pattern:$0x75316420]  ;;  %v5572_v60 = vor.u32 %v7709_v55, %v5571_v54 }
  0xbc   :  { %5313 = vmatpush.msk.msra.mxu2 %vm194_vm0, %v290_v30  ;;  %298 = vst [vmem:[#allocation1] ss:$2 sm:$0xff] %v235_v27  ;;  %5315 = vmatpush.msk.msra.mxu3 %vm194_vm0, %v291_v31  ;;  %v292_v32 = vld.sshfl [vmem:[#allocation1 + $0x10] sm:$0xff pattern:$0x75316420] }
  0xbd   :  { %5314 = vmatmul.msk.f32.vlgmr.msra.gmra.mxu2 %vm310_vm3, %v8622_v28  ;;  %5316 = vmatmul.msk.f32.vlgmr.msra.gmra.mxu3 %vm310_vm3, %v8622_v28  ;;  %v293_v34 = vld.sshfl [vmem:[#allocation1 + $0x18] sm:$0xff pattern:$0x75316420]  ;;  %v294_v35 = vld.sshfl [vmem:[#allocation1 + $0x20] sm:$0xff pattern:$0x75316420] }
  0xbe   :  { %5317 = vmatpush.msk.msrb.mxu2 %vm194_vm0, %v292_v32  ;;  %299 = vst [vmem:[#allocation1 + $0x10] ss:$2 sm:$0xff] %v236_v29  ;;  %5319 = vmatpush.msk.msrb.mxu3 %vm194_vm0, %v293_v34  ;;  %v296_v36 = vld.sshfl [vmem:[#allocation1 + $0x30] sm:$0xff pattern:$0x75316420] }
  0xbf   :  { %5321 = vmatpush.msk.msra.mxu0 %vm194_vm0, %v294_v35  ;;  %v295_v38 = vld.sshfl [vmem:[#allocation1 + $0x28] sm:$0xff pattern:$0x75316420]  ;;  %v297_v39 = vld.sshfl [vmem:[#allocation1 + $0x38] sm:$0xff pattern:$0x75316420] }
  0xc0   :  { %5325 = vmatpush.msk.msra.mxu2 %vm194_vm0, %v296_v36  ;;  %5322 = vmatmul.msk.f32.vlgmr.msra.gmra.mxu0 %vm310_vm3, %v8622_v28  ;;  %300 = vst [vmem:[#allocation1 + $0x20] ss:$2 sm:$0xff] %v237_v33  ;;  %v5427_v56 = vld [vmem:[#allocation3 + $0xa0] sm:$0xf]  ;;  %v7673_v61 = vld [vmem:[#allocation3 + $0xac] sm:$0xf0] }
  0xc1   :  { %5323 = vmatpush.msk.msra.mxu1 %vm194_vm0, %v295_v38  ;;  %301 = vst [vmem:[#allocation1 + $0x30] ss:$2 sm:$0xff] %v238_v37  ;;  %5327 = vmatpush.msk.msra.mxu3 %vm194_vm0, %v297_v39  ;;  %v5555_v62 = vld [vmem:[#allocation3 + $0x1a0] sm:$0xf]  ;;  %v7705_v63 = vld [vmem:[#allocation3 + $0x1ac] sm:$0xf0]  ;;  %v5428_v2 = vor.u32 %v7673_v61, %v5427_v56 }
  0xc2   :  { %5324 = vmatmul.msk.f32.vlgmr.msra.gmra.mxu1 %vm310_vm3, %v8622_v28  ;;  %v5715_v0 = vld [vmem:[#allocation3 + $0x2e0] sm:$0xf]  ;;  %v7745_v1 = vld [vmem:[#allocation3 + $0x2ec] sm:$0xf0]  ;;  %v5556_v3 = vor.u32 %v7705_v63, %v5555_v62 }
  0xc3   :  { %v302_v44 = vld.sshfl [vmem:[#allocation1] sm:$0xff pattern:$0x75316420]  ;;  %v303_v45 = vld.sshfl [vmem:[#allocation1 + $0x8] sm:$0xff pattern:$0x75316420]  ;;  %v5716_v10 = vor.u32 %v7745_v1, %v5715_v0 }
  0xc4   :  { %5329 = vmatpush.msk.msrb.mxu0 %vm194_vm0, %v302_v44  ;;  %5331 = vmatpush.msk.msrb.mxu1 %vm194_vm0, %v303_v45  ;;  %v5843_v4 = vld [vmem:[#allocation3 + $0x3e0] sm:$0xf]  ;;  %v7777_v5 = vld [vmem:[#allocation3 + $0x3ec] sm:$0xf0] }
  0xc5   :  { %5318 = vmatmul.msk.f32.vlgmr.msrb.gmra.mxu2 %vm310_vm3, %v8622_v28  ;;  %5320 = vmatmul.msk.f32.vlgmr.msrb.gmra.mxu3 %vm310_vm3, %v8622_v28  ;;  %v304_v46 = vld.sshfl [vmem:[#allocation1 + $0x10] sm:$0xff pattern:$0x75316420]  ;;  %v305_v47 = vld.sshfl [vmem:[#allocation1 + $0x18] sm:$0xff pattern:$0x75316420]  ;;  %v5844_v11 = vor.u32 %v7777_v5, %v5843_v4 }
  0xc6   :  { %5333 = vmatpush.msk.msrb.mxu2 %vm194_vm0, %v304_v46  ;;  %5335 = vmatpush.msk.msrb.mxu3 %vm194_vm0, %v305_v47  ;;  %v5411_v6 = vld [vmem:[#allocation3 + $0x80] sm:$0xf]  ;;  %v7669_v7 = vld [vmem:[#allocation3 + $0x8c] sm:$0xf0] }
  0xc7   :  { %v306_v51 = vld.sshfl [vmem:[#allocation1 + $0x20] sm:$0xff pattern:$0x75316420]  ;;  %v307_v52 = vld.sshfl [vmem:[#allocation1 + $0x28] sm:$0xff pattern:$0x75316420]  ;;  %v5412_v14 = vor.u32 %v7669_v7, %v5411_v6 }
  0xc8   :  { %5330 = vmatmul.msk.f32.vlgmr.msrb.gmra.mxu0 %vm310_vm3, %v8622_v28  ;;  %5339 = vmatpush.msk.msra.mxu1 %vm194_vm0, %v307_v52  ;;  %v308_v57 = vld.sshfl [vmem:[#allocation1 + $0x30] sm:$0xff pattern:$0x75316420]  ;;  %v309_v58 = vld.sshfl [vmem:[#allocation1 + $0x38] sm:$0xff pattern:$0x75316420] }
  0xc9   :  { %5337 = vmatpush.msk.msra.mxu0 %vm194_vm0, %v306_v51  ;;  %v5539_v8 = vld [vmem:[#allocation3 + $0x180] sm:$0xf]  ;;  %v7701_v9 = vld [vmem:[#allocation3 + $0x18c] sm:$0xf0] }
  0xca   :  { %5332 = vmatmul.msk.f32.vlgmr.msrb.gmra.mxu1 %vm310_vm3, %v8622_v28  ;;  %v5699_v12 = vld [vmem:[#allocation3 + $0x2c0] sm:$0xf]  ;;  %v7741_v13 = vld [vmem:[#allocation3 + $0x2cc] sm:$0xf0]  ;;  %v5540_v15 = vor.u32 %v7701_v9, %v5539_v8 }
  0xcb   :  { %3780 = vmatpush.bf16.msrb.mxu0 %v5460_v48  ;;  %3793 = vmatpush.bf16.msrb.mxu1 %v5588_v49  ;;  %v5827_v16 = vld [vmem:[#allocation3 + $0x3c0] sm:$0xf]  ;;  %v7773_v17 = vld [vmem:[#allocation3 + $0x3cc] sm:$0xf0]  ;;  %v5700_v22 = vor.u32 %v7741_v13, %v5699_v12 }
  0xcc   :  { %v5395_v18 = vld [vmem:[#allocation3 + $0x60] sm:$0xf]  ;;  %v7665_v19 = vld [vmem:[#allocation3 + $0x6c] sm:$0xf0]  ;;  %v5828_v23 = vor.u32 %v7773_v17, %v5827_v16 }
  0xcd   :  { %5326 = vmatmul.msk.f32.vlgmr.msra.gmra.mxu2 %vm310_vm3, %v8622_v28  ;;  %5328 = vmatmul.msk.f32.vlgmr.msra.gmra.mxu3 %vm310_vm3, %v8622_v28  ;;  %v5523_v20 = vld [vmem:[#allocation3 + $0x160] sm:$0xf]  ;;  %v7697_v21 = vld [vmem:[#allocation3 + $0x16c] sm:$0xf0]  ;;  %v5396_v26 = vor.u32 %v7665_v19, %v5395_v18 }
  0xce   :  { %5341 = vmatpush.msk.msra.mxu2 %vm194_vm0, %v308_v57  ;;  %5343 = vmatpush.msk.msra.mxu3 %vm194_vm0, %v309_v58  ;;  %v5683_v24 = vld [vmem:[#allocation3 + $0x2a0] sm:$0xf]  ;;  %v7737_v25 = vld [vmem:[#allocation3 + $0x2ac] sm:$0xf0]  ;;  %v5524_v27 = vor.u32 %v7697_v21, %v5523_v20 }
  0xcf   :  { %3781 = vmatpush.bf16.msrb.mxu0 %v5444_v59  ;;  %3794 = vmatpush.bf16.msrb.mxu1 %v5572_v60  ;;  %v5811_v29 = vld [vmem:[#allocation3 + $0x3a0] sm:$0xf]  ;;  %v7769_v30 = vld [vmem:[#allocation3 + $0x3ac] sm:$0xf0]  ;;  %v5684_v35 = vor.u32 %v7737_v25, %v5683_v24 }
  0xd0   :  { %5338 = vmatmul.msk.f32.vlgmr.msra.gmra.mxu0 %vm310_vm3, %v8622_v28  ;;  %v5379_v31 = vld [vmem:[#allocation3 + $0x40] sm:$0xf]  ;;  %v7661_v32 = vld [vmem:[#allocation3 + $0x4c] sm:$0xf0]  ;;  %v5812_v36 = vor.u32 %v7769_v30, %v5811_v29 }
  0xd1   :  { %v5507_v33 = vld [vmem:[#allocation3 + $0x140] sm:$0xf]  ;;  %v7693_v34 = vld [vmem:[#allocation3 + $0x14c] sm:$0xf0]  ;;  %v5380_v39 = vor.u32 %v7661_v32, %v5379_v31 }
  0xd2   :  { %5340 = vmatmul.msk.f32.vlgmr.msra.gmra.mxu1 %vm310_vm3, %v8622_v28  ;;  %v5667_v37 = vld [vmem:[#allocation3 + $0x280] sm:$0xf]  ;;  %v7733_v38 = vld [vmem:[#allocation3 + $0x28c] sm:$0xf0]  ;;  %v5508_v40 = vor.u32 %v7693_v34, %v5507_v33 }
  0xd3   :  { %3782 = vmatpush.bf16.msrb.mxu0 %v5428_v2  ;;  %3795 = vmatpush.bf16.msrb.mxu1 %v5556_v3  ;;  %v5795_v41 = vld [vmem:[#allocation3 + $0x380] sm:$0xf]  ;;  %v7765_v42 = vld [vmem:[#allocation3 + $0x38c] sm:$0xf0]  ;;  %v5668_v47 = vor.u32 %v7733_v38, %v5667_v37 }
  0xd4   :  { %v5363_v43 = vld [vmem:[#allocation3 + $0x20] sm:$0xf]  ;;  %v7657_v44 = vld [vmem:[#allocation3 + $0x2c] sm:$0xf0]  ;;  %v5796_v48 = vor.u32 %v7765_v42, %v5795_v41 }
  0xd5   :  { %5334 = vmatmul.msk.f32.vlgmr.msrb.gmra.mxu2 %vm310_vm3, %v8622_v28  ;;  %5336 = vmatmul.msk.f32.vlgmr.msrb.gmra.mxu3 %vm310_vm3, %v8622_v28  ;;  %v5491_v45 = vld [vmem:[#allocation3 + $0x120] sm:$0xf]  ;;  %v7689_v46 = vld [vmem:[#allocation3 + $0x12c] sm:$0xf0]  ;;  %v5364_v52 = vor.u32 %v7657_v44, %v5363_v43 }
  0xd6   :  { %3806 = vmatpush.bf16.msrb.mxu2 %v5716_v10  ;;  %3819 = vmatpush.bf16.msrb.mxu3 %v5844_v11  ;;  %v5651_v49 = vld [vmem:[#allocation3 + $0x260] sm:$0xf]  ;;  %v7729_v50 = vld [vmem:[#allocation3 + $0x26c] sm:$0xf0]  ;;  %v5492_v53 = vor.u32 %v7689_v46, %v5491_v45 }
  0xd7   :  { %3783 = vmatpush.bf16.msrb.mxu0 %v5412_v14  ;;  %3796 = vmatpush.bf16.msrb.mxu1 %v5540_v15  ;;  %v5779_v51 = vld [vmem:[#allocation3 + $0x360] sm:$0xf]  ;;  %v7761_v54 = vld [vmem:[#allocation3 + $0x36c] sm:$0xf0]  ;;  %v5652_v62 = vor.u32 %v7729_v50, %v5651_v49 }
  0xd8   :  { %v5347_v55 = vld [vmem:[#allocation3] sm:$0xf]  ;;  %v7653_v56 = vld [vmem:[#allocation3 + $0xc] sm:$0xf0]  ;;  %v5780_v63 = vor.u32 %v7761_v54, %v5779_v51 }
  0xd9   :  { %v5475_v57 = vld [vmem:[#allocation3 + $0x100] sm:$0xf]  ;;  %v7685_v58 = vld [vmem:[#allocation3 + $0x10c] sm:$0xf0]  ;;  %v5348_v1 = vor.u32 %v7653_v56, %v5347_v55 }
  0xda   :  { %3807 = vmatpush.bf16.msrb.mxu2 %v5700_v22  ;;  %3820 = vmatpush.bf16.msrb.mxu3 %v5828_v23  ;;  %v5971_v59 = vld [vmem:[#allocation3 + $0x4e0] sm:$0xf]  ;;  %v7809_v60 = vld [vmem:[#allocation3 + $0x4ec] sm:$0xf0]  ;;  %v5476_v2 = vor.u32 %v7685_v58, %v5475_v57 }
  0xdb   :  { %3784 = vmatpush.bf16.msrb.mxu0 %v5396_v26  ;;  %3797 = vmatpush.bf16.msrb.mxu1 %v5524_v27  ;;  %v6099_v61 = vld [vmem:[#allocation3 + $0x5e0] sm:$0xf]  ;;  %v7725_v3 = vld [vmem:[#allocation3 + $0x24c] sm:$0xf0]  ;;  %v5972_v6 = vor.u32 %v7809_v60, %v5971_v59 }
  0xdc   :  { %v5635_v0 = vld [vmem:[#allocation3 + $0x240] sm:$0xf]  ;;  %v7757_v5 = vld [vmem:[#allocation3 + $0x34c] sm:$0xf0] }
  0xdd   :  { %5342 = vmatmul.msk.f32.vlgmr.msra.gmra.mxu2 %vm310_vm3, %v8622_v28  ;;  %5344 = vmatmul.msk.f32.vlgmr.msra.gmra.mxu3 %vm310_vm3, %v8622_v28  ;;  %v7841_v28 = vld [vmem:[#allocation3 + $0x5ec] sm:$0xf0]  ;;  %v5763_v4 = vld [vmem:[#allocation3 + $0x340] sm:$0xf]  ;;  %v5636_v12 = vor.u32 %v7725_v3, %v5635_v0 }
  0xde   :  { %3808 = vmatpush.bf16.msrb.mxu2 %v5684_v35  ;;  %3821 = vmatpush.bf16.msrb.mxu3 %v5812_v36  ;;  %v6100_v7 = vor.u32 %v7841_v28, %v6099_v61  ;;  %v5955_v8 = vld [vmem:[#allocation3 + $0x4c0] sm:$0xf]  ;;  %v7805_v9 = vld [vmem:[#allocation3 + $0x4cc] sm:$0xf0]  ;;  %v5764_v13 = vor.u32 %v7757_v5, %v5763_v4 }
  0xdf   :  { %3785 = vmatpush.bf16.msrb.mxu0 %v5380_v39  ;;  %3798 = vmatpush.bf16.msrb.mxu1 %v5508_v40  ;;  %v6083_v10 = vld [vmem:[#allocation3 + $0x5c0] sm:$0xf]  ;;  %v7837_v11 = vld [vmem:[#allocation3 + $0x5cc] sm:$0xf0]  ;;  %v5956_v18 = vor.u32 %v7805_v9, %v5955_v8 }
  0xe0   :  { %v5619_v14 = vld [vmem:[#allocation3 + $0x220] sm:$0xf]  ;;  %v7721_v15 = vld [vmem:[#allocation3 + $0x22c] sm:$0xf0]  ;;  %v6084_v19 = vor.u32 %v7837_v11, %v6083_v10 }
  0xe1   :  { %v5747_v16 = vld [vmem:[#allocation3 + $0x320] sm:$0xf]  ;;  %v7753_v17 = vld [vmem:[#allocation3 + $0x32c] sm:$0xf0]  ;;  %v5620_v24 = vor.u32 %v7721_v15, %v5619_v14 }
  0xe2   :  { %3809 = vmatpush.bf16.msrb.mxu2 %v5668_v47  ;;  %3822 = vmatpush.bf16.msrb.mxu3 %v5796_v48  ;;  %v5939_v20 = vld [vmem:[#allocation3 + $0x4a0] sm:$0xf]  ;;  %v7801_v21 = vld [vmem:[#allocation3 + $0x4ac] sm:$0xf0]  ;;  %v5748_v25 = vor.u32 %v7753_v17, %v5747_v16 }
  0xe3   :  { %3786 = vmatpush.bf16.msrb.mxu0 %v5364_v52  ;;  %3799 = vmatpush.bf16.msrb.mxu1 %v5492_v53  ;;  %v6067_v22 = vld [vmem:[#allocation3 + $0x5a0] sm:$0xf]  ;;  %v7833_v23 = vld [vmem:[#allocation3 + $0x5ac] sm:$0xf0]  ;;  %v5940_v33 = vor.u32 %v7801_v21, %v5939_v20 }
  0xe4   :  { %v5603_v26 = vld [vmem:[#allocation3 + $0x200] sm:$0xf]  ;;  %v7717_v27 = vld [vmem:[#allocation3 + $0x20c] sm:$0xf0]  ;;  %v6068_v34 = vor.u32 %v7833_v23, %v6067_v22 }
  0xe5   :  { %v5731_v29 = vld [vmem:[#allocation3 + $0x300] sm:$0xf]  ;;  %v7749_v30 = vld [vmem:[#allocation3 + $0x30c] sm:$0xf0]  ;;  %v5604_v41 = vor.u32 %v7717_v27, %v5603_v26 }
  0xe6   :  { %3810 = vmatpush.bf16.msrb.mxu2 %v5652_v62  ;;  %3823 = vmatpush.bf16.msrb.mxu3 %v5780_v63  ;;  %v6227_v31 = vld [vmem:[#allocation3 + $0x6e0] sm:$0xf]  ;;  %v7873_v32 = vld [vmem:[#allocation3 + $0x6ec] sm:$0xf0]  ;;  %v5732_v42 = vor.u32 %v7749_v30, %v5731_v29 }
  0xe7   :  { %3787 = vmatpush.bf16.msrb.mxu0 %v5348_v1  ;;  %3800 = vmatpush.bf16.msrb.mxu1 %v5476_v2  ;;  %v6355_v35 = vld [vmem:[#allocation3 + $0x7e0] sm:$0xf]  ;;  %v7905_v36 = vld [vmem:[#allocation3 + $0x7ec] sm:$0xf0]  ;;  %v6228_v43 = vor.u32 %v7873_v32, %v6227_v31 }
  0xe8   :  { %v5923_v37 = vld [vmem:[#allocation3 + $0x480] sm:$0xf]  ;;  %v7797_v38 = vld [vmem:[#allocation3 + $0x48c] sm:$0xf0]  ;;  %v6356_v44 = vor.u32 %v7905_v36, %v6355_v35 }
  0xe9   :  { %v6051_v39 = vld [vmem:[#allocation3 + $0x580] sm:$0xf]  ;;  %v7829_v40 = vld [vmem:[#allocation3 + $0x58c] sm:$0xf0]  ;;  %v5924_v47 = vor.u32 %v7797_v38, %v5923_v37 }
  0xea   :  { %3811 = vmatpush.bf16.msrb.mxu2 %v5636_v12  ;;  %3824 = vmatpush.bf16.msrb.mxu3 %v5764_v13  ;;  %v6211_v45 = vld [vmem:[#allocation3 + $0x6c0] sm:$0xf]  ;;  %v7869_v46 = vld [vmem:[#allocation3 + $0x6cc] sm:$0xf0]  ;;  %v6052_v48 = vor.u32 %v7829_v40, %v6051_v39 }
  0xeb   :  { %3832 = vmatpush.bf16.msra.mxu0 %v5972_v6  ;;  %3845 = vmatpush.bf16.msra.mxu1 %v6100_v7  ;;  %v6339_v49 = vld [vmem:[#allocation3 + $0x7c0] sm:$0xf]  ;;  %v7901_v50 = vld [vmem:[#allocation3 + $0x7cc] sm:$0xf0]  ;;  %v6212_v55 = vor.u32 %v7869_v46, %v6211_v45 }
  0xec   :  { %v5907_v51 = vld [vmem:[#allocation3 + $0x460] sm:$0xf]  ;;  %v7793_v52 = vld [vmem:[#allocation3 + $0x46c] sm:$0xf0]  ;;  %v6340_v56 = vor.u32 %v7901_v50, %v6339_v49 }
  0xed   :  { %v6035_v53 = vld [vmem:[#allocation3 + $0x560] sm:$0xf]  ;;  %v7825_v54 = vld [vmem:[#allocation3 + $0x56c] sm:$0xf0]  ;;  %v5908_v59 = vor.u32 %v7793_v52, %v5907_v51 }
  0xee   :  { %3812 = vmatpush.bf16.msrb.mxu2 %v5620_v24  ;;  %3825 = vmatpush.bf16.msrb.mxu3 %v5748_v25  ;;  %v6195_v57 = vld [vmem:[#allocation3 + $0x6a0] sm:$0xf]  ;;  %v7865_v58 = vld [vmem:[#allocation3 + $0x6ac] sm:$0xf0]  ;;  %v6036_v60 = vor.u32 %v7825_v54, %v6035_v53 }
  0xef   :  { %3833 = vmatpush.bf16.msra.mxu0 %v5956_v18  ;;  %3846 = vmatpush.bf16.msra.mxu1 %v6084_v19  ;;  %v6323_v61 = vld [vmem:[#allocation3 + $0x7a0] sm:$0xf]  ;;  %v7897_v28 = vld [vmem:[#allocation3 + $0x7ac] sm:$0xf0]  ;;  %v6196_v2 = vor.u32 %v7865_v58, %v6195_v57 }
  0xf0   :  { %v5891_v62 = vld [vmem:[#allocation3 + $0x440] sm:$0xf]  ;;  %v7789_v63 = vld [vmem:[#allocation3 + $0x44c] sm:$0xf0]  ;;  %v6324_v3 = vor.u32 %v7897_v28, %v6323_v61 }
  0xf1   :  { %v6019_v0 = vld [vmem:[#allocation3 + $0x540] sm:$0xf]  ;;  %v7821_v1 = vld [vmem:[#allocation3 + $0x54c] sm:$0xf0]  ;;  %v5892_v5 = vor.u32 %v7789_v63, %v5891_v62 }
  0xf2   :  { %3813 = vmatpush.bf16.msrb.mxu2 %v5604_v41  ;;  %3826 = vmatpush.bf16.msrb.mxu3 %v5732_v42  ;;  %v6179_v4 = vld [vmem:[#allocation3 + $0x680] sm:$0xf]  ;;  %v6020_v6 = vor.u32 %v7821_v1, %v6019_v0  ;;  %v7861_v7 = vld [vmem:[#allocation3 + $0x68c] sm:$0xf0] }
  0xf3   :  { %3834 = vmatpush.bf16.msra.mxu0 %v5940_v33  ;;  %3847 = vmatpush.bf16.msra.mxu1 %v6068_v34  ;;  %v6307_v8 = vld [vmem:[#allocation3 + $0x780] sm:$0xf]  ;;  %v7893_v9 = vld [vmem:[#allocation3 + $0x78c] sm:$0xf0]  ;;  %v6180_v10 = vor.u32 %v7861_v7, %v6179_v4 }
  0xf4   :  { %v6308_v11 = vor.u32 %v7893_v9, %v6307_v8  ;;  %v5875_v12 = vld [vmem:[#allocation3 + $0x420] sm:$0xf]  ;;  %v7785_v13 = vld [vmem:[#allocation3 + $0x42c] sm:$0xf0] }
  0xf5   :  { %v5876_v14 = vor.u32 %v7785_v13, %v5875_v12  ;;  %v6003_v15 = vld [vmem:[#allocation3 + $0x520] sm:$0xf]  ;;  %v7817_v16 = vld [vmem:[#allocation3 + $0x52c] sm:$0xf0] }
  0xf6   :  { %3858 = vmatpush.bf16.msra.mxu2 %v6228_v43  ;;  %3871 = vmatpush.bf16.msra.mxu3 %v6356_v44  ;;  %v6163_v17 = vld [vmem:[#allocation3 + $0x660] sm:$0xf]  ;;  %v6004_v18 = vor.u32 %v7817_v16, %v6003_v15  ;;  %v7857_v19 = vld [vmem:[#allocation3 + $0x66c] sm:$0xf0] }
  0xf7   :  { %3835 = vmatpush.bf16.msra.mxu0 %v5924_v47  ;;  %3848 = vmatpush.bf16.msra.mxu1 %v6052_v48  ;;  %v6291_v20 = vld [vmem:[#allocation3 + $0x760] sm:$0xf]  ;;  %v7889_v21 = vld [vmem:[#allocation3 + $0x76c] sm:$0xf0]  ;;  %v6164_v22 = vor.u32 %v7857_v19, %v6163_v17 }
  0xf8   :  { %v6292_v23 = vor.u32 %v7889_v21, %v6291_v20  ;;  %v5859_v24 = vld [vmem:[#allocation3 + $0x400] sm:$0xf]  ;;  %v7781_v25 = vld [vmem:[#allocation3 + $0x40c] sm:$0xf0] }
  0xf9   :  { %v5987_v26 = vld [vmem:[#allocation3 + $0x500] sm:$0xf]  ;;  %v5860_v27 = vor.u32 %v7781_v25, %v5859_v24  ;;  %v7813_v29 = vld [vmem:[#allocation3 + $0x50c] sm:$0xf0] }
  0xfa   :  { %3859 = vmatpush.bf16.msra.mxu2 %v6212_v55  ;;  %3872 = vmatpush.bf16.msra.mxu3 %v6340_v56  ;;  %v6147_v30 = vld [vmem:[#allocation3 + $0x640] sm:$0xf]  ;;  %v7853_v31 = vld [vmem:[#allocation3 + $0x64c] sm:$0xf0]  ;;  %v5988_v32 = vor.u32 %v7813_v29, %v5987_v26 }
  0xfb   :  { %3836 = vmatpush.bf16.msra.mxu0 %v5908_v59  ;;  %3849 = vmatpush.bf16.msra.mxu1 %v6036_v60  ;;  %v6148_v33 = vor.u32 %v7853_v31, %v6147_v30  ;;  %v6275_v34 = vld [vmem:[#allocation3 + $0x740] sm:$0xf]  ;;  %v7885_v35 = vld [vmem:[#allocation3 + $0x74c] sm:$0xf0] }
  0xfc   :  { %v6276_v36 = vor.u32 %v7885_v35, %v6275_v34  ;;  %v6131_v37 = vld [vmem:[#allocation3 + $0x620] sm:$0xf]  ;;  %v7849_v38 = vld [vmem:[#allocation3 + $0x62c] sm:$0xf0] }
  0xfd   :  { %v6132_v39 = vor.u32 %v7849_v38, %v6131_v37  ;;  %v6259_v40 = vld [vmem:[#allocation3 + $0x720] sm:$0xf]  ;;  %v7881_v41 = vld [vmem:[#allocation3 + $0x72c] sm:$0xf0] }
  0xfe   :  { %3860 = vmatpush.bf16.msra.mxu2 %v6196_v2  ;;  %3873 = vmatpush.bf16.msra.mxu3 %v6324_v3  ;;  %v6260_v42 = vor.u32 %v7881_v41, %v6259_v40  ;;  %v6115_v43 = vld [vmem:[#allocation3 + $0x600] sm:$0xf]  ;;  %v7845_v44 = vld [vmem:[#allocation3 + $0x60c] sm:$0xf0] }
  0xff   :  { %3837 = vmatpush.bf16.msra.mxu0 %v5892_v5  ;;  %3850 = vmatpush.bf16.msra.mxu1 %v6020_v6  ;;  %v6243_v45 = vld [vmem:[#allocation3 + $0x700] sm:$0xf]  ;;  %v6116_v46 = vor.u32 %v7845_v44, %v6115_v43  ;;  %v7877_v47 = vld [vmem:[#allocation3 + $0x70c] sm:$0xf0] }
 0x100   :  { %v6244_v48 = vor.u32 %v7877_v47, %v6243_v45  ;;  %v8672_v49 = vld [vmem:[#allocation8] sm:$0xff]  ;;  %v7937_v57 = vld [vmem:[#allocation3 + $0x8ec] sm:$0xf0] }
 0x101   :  { %v243_v50 = vperm.slane %v8672_v49, 0  ;;  %v244_v51 = vperm.slane %v8672_v49, 1  ;;  %v6483_v54 = vld [vmem:[#allocation3 + $0x8e0] sm:$0xf]  ;;  %v7969_v59 = vld [vmem:[#allocation3 + $0x9ec] sm:$0xf0] }
 0x102   :  { %3861 = vmatpush.bf16.msra.mxu2 %v6180_v10  ;;  %3874 = vmatpush.bf16.msra.mxu3 %v6308_v11  ;;  %v6611_v58 = vld [vmem:[#allocation3 + $0x9e0] sm:$0xf]  ;;  %v6484_v28 = vor.u32 %v7937_v57, %v6483_v54  ;;  %v245_v63 = vperm.slane %v8672_v49, 2  ;;  %v246_v0 = vperm.slane %v8672_v49, 3  ;;  %v7933_v4 = vld [vmem:[#allocation3 + $0x8cc] sm:$0xf0] }
 0x103   :  { %3838 = vmatpush.bf16.msra.mxu0 %v5876_v14  ;;  %3851 = vmatpush.bf16.msra.mxu1 %v6004_v18  ;;  %v6612_v62 = vor.u32 %v7969_v59, %v6611_v58  ;;  %v6467_v1 = vld [vmem:[#allocation3 + $0x8c0] sm:$0xf]  ;;  %v7965_v6 = vld [vmem:[#allocation3 + $0x9cc] sm:$0xf0]  ;;  %v247_v7 = vperm.slane %v8672_v49, 4  ;;  %v248_v9 = vperm.slane %v8672_v49, 5 }
 0x104   :  { %v6595_v5 = vld [vmem:[#allocation3 + $0x9c0] sm:$0xf]  ;;  %v6468_v13 = vor.u32 %v7933_v4, %v6467_v1  ;;  %v7929_v16 = vld [vmem:[#allocation3 + $0x8ac] sm:$0xf0]  ;;  %v250_v47 = vperm.slane %v8672_v49, 7 }
 0x105   :  { %v6596_v14 = vor.u32 %v7965_v6, %v6595_v5  ;;  %v6451_v15 = vld [vmem:[#allocation3 + $0x8a0] sm:$0xf]  ;;  %v7961_v20 = vld [vmem:[#allocation3 + $0x9ac] sm:$0xf0] }
 0x106   :  { %3862 = vmatpush.bf16.msra.mxu2 %v6164_v22  ;;  %3875 = vmatpush.bf16.msra.mxu3 %v6292_v23  ;;  %v6579_v19 = vld [vmem:[#allocation3 + $0x9a0] sm:$0xf]  ;;  %v8001_v22 = vld [vmem:[#allocation3 + $0xaec] sm:$0xf0]  ;;  %v6452_v30 = vor.u32 %v7929_v16, %v6451_v15 }
 0x107   :  { %3839 = vmatpush.bf16.msra.mxu0 %v5860_v27  ;;  %3852 = vmatpush.bf16.msra.mxu1 %v5988_v32  ;;  %v6739_v21 = vld [vmem:[#allocation3 + $0xae0] sm:$0xf]  ;;  %v8033_v24 = vld [vmem:[#allocation3 + $0xbec] sm:$0xf0]  ;;  %v6580_v31 = vor.u32 %v7961_v20, %v6579_v19 }
 0x108   :  { %v6867_v23 = vld [vmem:[#allocation3 + $0xbe0] sm:$0xf]  ;;  %v7997_v41 = vld [vmem:[#allocation3 + $0xacc] sm:$0xf0] }
 0x109   :  { %v6435_v32 = vld [vmem:[#allocation3 + $0x880] sm:$0xf]  ;;  %v6868_v37 = vor.u32 %v8033_v24, %v6867_v23  ;;  %v8029_v43 = vld [vmem:[#allocation3 + $0xbcc] sm:$0xf0] }
 0x10a   :  { %3863 = vmatpush.bf16.msra.mxu2 %v6148_v33  ;;  %3876 = vmatpush.bf16.msra.mxu3 %v6276_v36  ;;  %v7925_v33 = vld [vmem:[#allocation3 + $0x88c] sm:$0xf0]  ;;  %v6740_v36 = vor.u32 %v8001_v22, %v6739_v21  ;;  %v6563_v38 = vld [vmem:[#allocation3 + $0x980] sm:$0xf] }
 0x10b   :  { %v6723_v40 = vld [vmem:[#allocation3 + $0xac0] sm:$0xf]  ;;  %v7953_v58 = vld [vmem:[#allocation3 + $0x96c] sm:$0xf0] }
 0x10c   :  { %v6547_v57 = vld [vmem:[#allocation3 + $0x960] sm:$0xf]  ;;  %v7917_v6 = vld [vmem:[#allocation3 + $0x84c] sm:$0xf0] }
 0x10d   :  { %v6707_v59 = vld [vmem:[#allocation3 + $0xaa0] sm:$0xf]  ;;  %v6548_v4 = vor.u32 %v7953_v58, %v6547_v57  ;;  %v8021_v15 = vld [vmem:[#allocation3 + $0xb8c] sm:$0xf0] }
 0x10e   :  { %3864 = vmatpush.bf16.msra.mxu2 %v6132_v39  ;;  %3877 = vmatpush.bf16.msra.mxu3 %v6260_v42  ;;  %v7957_v39 = vld [vmem:[#allocation3 + $0x98c] sm:$0xf0]  ;;  %v6851_v42 = vld [vmem:[#allocation3 + $0xbc0] sm:$0xf] }
 0x10f   :  { %v6403_v5 = vld [vmem:[#allocation3 + $0x840] sm:$0xf]  ;;  %v7913_v23 = vld [vmem:[#allocation3 + $0x82c] sm:$0xf0] }
 0x110   :  { %v6404_v20 = vor.u32 %v7917_v6, %v6403_v5  ;;  %v6387_v22 = vld [vmem:[#allocation3 + $0x820] sm:$0xf]  ;;  %v7977_v5 = vld [vmem:[#allocation3 + $0xa2c] sm:$0xf0] }
 0x111   :  { %v7123_v58 = vld [vmem:[#allocation3 + $0xde0] sm:$0xf] }
 0x112   :  { %3865 = vmatpush.bf16.msra.mxu2 %v6116_v46  ;;  %3878 = vmatpush.bf16.msra.mxu3 %v6244_v48  ;;  %v249_v46 = vperm.slane %v8672_v49, 6  ;;  %v6436_v48 = vor.u32 %v7925_v33, %v6435_v32  ;;  %v7985_v32 = vld [vmem:[#allocation3 + $0xa6c] sm:$0xf0]  ;;  %v6803_v33 = vld [vmem:[#allocation3 + $0xb60] sm:$0xf] }
 0x13d   :  { %v443_v8 = vpop.f32.mrf.mxu0 }
 0x13e   :  { %v444_v27 = vadd.f32 %v443_v8, %v247_v7  ;;  %v8698_v7 = vld [vmem:[#allocation8 + $0x8] sm:$0xff] }
 0x13f   :  { %v463_v10 = vpop.f32.mrf.mxu1  ;;  %v252_v19 = vperm.slane %v8698_v7, 1 }
 0x140   :  { %v363_v52 = vpop.f32.mrf.mxu2  ;;  %v383_v53 = vpop.f32.mrf.mxu3  ;;  %v464_v29 = vadd.f32 %v463_v10, %v248_v9  ;;  %v670_v44 = vmax.f32 %v444_v27, 0.0  ;;  %v6531_v10 = vld [vmem:[#allocation3 + $0x940] sm:$0xf] }
 0x141   :  { %v364_v55 = vadd.f32 %v363_v52, %v243_v50  ;;  %v384_v56 = vadd.f32 %v383_v53, %v244_v51  ;;  %v6564_v50 = vor.u32 %v7957_v39, %v6563_v38  ;;  %v6419_v51 = vld [vmem:[#allocation3 + $0x860] sm:$0xf]  ;;  %v7921_v52 = vld [vmem:[#allocation3 + $0x86c] sm:$0xf0] }
 0x142   :  { %v671_v45 = vmax.f32 %v464_v29, 0.0  ;;  %v6420_v1 = vor.u32 %v7921_v52, %v6419_v51  ;;  %v6515_v29 = vld [vmem:[#allocation3 + $0x920] sm:$0xf]  ;;  %v7981_v51 = vld [vmem:[#allocation3 + $0xa4c] sm:$0xf0] }
 0x143   :  { %v666_v60 = vmax.f32 %v364_v55, 0.0  ;;  %v667_v61 = vmax.f32 %v384_v56, 0.0  ;;  %v6724_v55 = vor.u32 %v7997_v41, %v6723_v40  ;;  %v6852_v56 = vor.u32 %v8029_v43, %v6851_v42  ;;  %v6371_v40 = vld [vmem:[#allocation3 + $0x800] sm:$0xf] }
 0x144   :  { %v8696_v49 = vpack.c.bf16 %v671_v45, %v671_v45  ;;  %v6388_v42 = vor.u32 %v7913_v23, %v6387_v22  ;;  %v6499_v45 = vld [vmem:[#allocation3 + $0x900] sm:$0xf] }
 0x145   :  { %v8678_v2 = vpack.c.bf16 %v666_v60, %v666_v60  ;;  %v8680_v3 = vpack.c.bf16 %v667_v61, %v667_v61  ;;  %v7993_v60 = vld [vmem:[#allocation3 + $0xaac] sm:$0xf0]  ;;  %v6835_v61 = vld [vmem:[#allocation3 + $0xba0] sm:$0xf]  ;;  %v523_v24 = vpop.f32.mrf.mxu0 }
 0x146   :  { %v6708_v8 = vor.u32 %v7993_v60, %v6707_v59  ;;  %v6787_v52 = vld [vmem:[#allocation3 + $0xb40] sm:$0xf]  ;;  %v8097_v59 = vld [vmem:[#allocation3 + $0xdec] sm:$0xf0] }
 0x147   :  { %3788 = vmatmul.bf16.vlgmr.msrb.gmra.mxu0 %v8678_v2  ;;  %3801 = vmatmul.bf16.vlgmr.msrb.gmra.mxu1 %v8680_v3 }
 0x148   :  { %3884 = vmatpush.bf16.msrb.mxu0 %v6484_v28  ;;  %3897 = vmatpush.bf16.msrb.mxu1 %v6612_v62  ;;  %v403_v11 = vpop.f32.mrf.mxu2  ;;  %v423_v12 = vpop.f32.mrf.mxu3  ;;  %v8025_v28 = vld [vmem:[#allocation3 + $0xbac] sm:$0xf0]  ;;  %v8694_v62 = vpack.c.bf16 %v670_v44, %v670_v44 }
 0x149   :  { %v404_v17 = vadd.f32 %v403_v11, %v245_v63  ;;  %v424_v18 = vadd.f32 %v423_v12, %v246_v0  ;;  %v6836_v9 = vor.u32 %v8025_v28, %v6835_v61  ;;  %v7949_v11 = vld [vmem:[#allocation3 + $0x94c] sm:$0xf0]  ;;  %v6691_v12 = vld [vmem:[#allocation3 + $0xa80] sm:$0xf]  ;;  %v253_v28 = vperm.slane %v8698_v7, 2 }
 0x14a   :  { %v6532_v21 = vor.u32 %v7949_v11, %v6531_v10  ;;  %v7909_v44 = vld [vmem:[#allocation3 + $0x80c] sm:$0xf0]  ;;  %v7124_v10 = vor.u32 %v8097_v59, %v7123_v58  ;;  %v6771_v11 = vld [vmem:[#allocation3 + $0xb20] sm:$0xf] }
 0x14b   :  { %v668_v25 = vmax.f32 %v404_v17, 0.0  ;;  %v669_v26 = vmax.f32 %v424_v18, 0.0  ;;  %v251_v18 = vperm.slane %v8698_v7, 0  ;;  %v6372_v60 = vor.u32 %v7909_v44, %v6371_v40  ;;  %v8125_v58 = vld [vmem:[#allocation3 + $0xecc] sm:$0xf0] }
 0x14c   :  { %3885 = vmatpush.bf16.msrb.mxu0 %v6468_v13  ;;  %3898 = vmatpush.bf16.msrb.mxu1 %v6596_v14  ;;  %v7989_v13 = vld [vmem:[#allocation3 + $0xa8c] sm:$0xf0]  ;;  %v6819_v14 = vld [vmem:[#allocation3 + $0xb80] sm:$0xf] }
 0x14d   :  { %v8686_v34 = vpack.c.bf16 %v668_v25, %v668_v25  ;;  %v8688_v35 = vpack.c.bf16 %v669_v26, %v669_v26  ;;  %v543_v25 = vpop.f32.mrf.mxu1  ;;  %v6692_v26 = vor.u32 %v7989_v13, %v6691_v12  ;;  %v6820_v27 = vor.u32 %v8021_v15, %v6819_v14  ;;  %v8009_v12 = vld [vmem:[#allocation3 + $0xb2c] sm:$0xf0]  ;;  %v6979_v13 = vld [vmem:[#allocation3 + $0xcc0] sm:$0xf] }
 0x14e   :  { %v524_v39 = vadd.f32 %v523_v24, %v251_v18  ;;  %v544_v41 = vadd.f32 %v543_v25, %v252_v19  ;;  %v8093_v18 = vld [vmem:[#allocation3 + $0xdcc] sm:$0xf0]  ;;  %v6772_v23 = vor.u32 %v8009_v12, %v6771_v11  ;;  %v6755_v25 = vld [vmem:[#allocation3 + $0xb00] sm:$0xf] }
 0x14f   :  { %3814 = vmatmul.bf16.vlgmr.msrb.gmra.mxu2 %v8686_v34  ;;  %3827 = vmatmul.bf16.vlgmr.msrb.gmra.mxu3 %v8688_v35  ;;  %v7973_v24 = vld [vmem:[#allocation3 + $0xa0c] sm:$0xf0]  ;;  %v7363_v59 = vld [vmem:[#allocation3 + $0xfc0] sm:$0xf] }
 0x150   :  { %3886 = vmatpush.bf16.msrb.mxu0 %v6452_v30  ;;  %3899 = vmatpush.bf16.msrb.mxu1 %v6580_v31  ;;  %v483_v53 = vpop.f32.mrf.mxu2  ;;  %v503_v54 = vpop.f32.mrf.mxu3  ;;  %v7945_v30 = vld [vmem:[#allocation3 + $0x92c] sm:$0xf0]  ;;  %v6675_v31 = vld [vmem:[#allocation3 + $0xa60] sm:$0xf]  ;;  %v675_v57 = vmax.f32 %v544_v41, 0.0 }
 0x151   :  { %3910 = vmatpush.bf16.msrb.mxu2 %v6740_v36  ;;  %3923 = vmatpush.bf16.msrb.mxu3 %v6868_v37  ;;  %v484_v63 = vadd.f32 %v483_v53, %v249_v46  ;;  %v504_v0 = vadd.f32 %v503_v54, %v250_v47  ;;  %v8017_v36 = vld [vmem:[#allocation3 + $0xb6c] sm:$0xf0]  ;;  %v6516_v43 = vor.u32 %v7945_v30, %v6515_v29  ;;  %v6995_v54 = vld [vmem:[#allocation3 + $0xce0] sm:$0xf] }
 0x152   :  { %v7941_v46 = vld [vmem:[#allocation3 + $0x90c] sm:$0xf0]  ;;  %v6676_v47 = vor.u32 %v7985_v32, %v6675_v31  ;;  %v8714_v15 = vpack.c.bf16 %v675_v57, %v675_v57  ;;  %v6963_v30 = vld [vmem:[#allocation3 + $0xca0] sm:$0xf] }
 0x153   :  { %v672_v16 = vmax.f32 %v484_v63, 0.0  ;;  %v673_v17 = vmax.f32 %v504_v0, 0.0  ;;  %v8013_v53 = vld [vmem:[#allocation3 + $0xb4c] sm:$0xf0]  ;;  %v6500_v61 = vor.u32 %v7941_v46, %v6499_v45  ;;  %v254_v63 = vperm.slane %v8698_v7, 3 }
 0x154   :  { %3887 = vmatpush.bf16.msrb.mxu0 %v6436_v48  ;;  %3900 = vmatpush.bf16.msrb.mxu1 %v6564_v50  ;;  %v6804_v48 = vor.u32 %v8017_v36, %v6803_v33  ;;  %v6659_v50 = vld [vmem:[#allocation3 + $0xa40] sm:$0xf]  ;;  %v8057_v31 = vld [vmem:[#allocation3 + $0xcac] sm:$0xf0] }
 0x155   :  { %3911 = vmatpush.bf16.msrb.mxu2 %v6724_v55  ;;  %3924 = vmatpush.bf16.msrb.mxu3 %v6852_v56  ;;  %v8704_v37 = vpack.c.bf16 %v672_v16, %v672_v16  ;;  %v8706_v38 = vpack.c.bf16 %v673_v17, %v673_v17  ;;  %v8065_v55 = vld [vmem:[#allocation3 + $0xcec] sm:$0xf0]  ;;  %v674_v56 = vmax.f32 %v524_v39, 0.0  ;;  %v6660_v0 = vor.u32 %v7981_v51, %v6659_v50  ;;  %v7107_v17 = vld [vmem:[#allocation3 + $0xdc0] sm:$0xf] }
 0x156   :  { %v8061_v16 = vld [vmem:[#allocation3 + $0xccc] sm:$0xf0]  ;;  %v7108_v29 = vor.u32 %v8093_v18, %v7107_v17  ;;  %v7091_v32 = vld [vmem:[#allocation3 + $0xda0] sm:$0xf]  ;;  %v6964_v46 = vor.u32 %v8057_v31, %v6963_v30  ;;  %v603_v31 = vpop.f32.mrf.mxu0 }
 0x157   :  { %3840 = vmatmul.bf16.vlgmr.msra.gmra.mxu0 %v8694_v62  ;;  %3853 = vmatmul.bf16.vlgmr.msra.gmra.mxu1 %v8696_v49  ;;  %v8712_v14 = vpack.c.bf16 %v674_v56, %v674_v56  ;;  %v8089_v33 = vld [vmem:[#allocation3 + $0xdac] sm:$0xf0]  ;;  %v7251_v36 = vld [vmem:[#allocation3 + $0xee0] sm:$0xf] }
 0x158   :  { %3888 = vmatpush.bf16.msrb.mxu0 %v6420_v1  ;;  %3901 = vmatpush.bf16.msrb.mxu1 %v6548_v4  ;;  %v6788_v1 = vor.u32 %v8013_v53, %v6787_v52  ;;  %v6643_v4 = vld [vmem:[#allocation3 + $0xa20] sm:$0xf]  ;;  %v563_v6 = vpop.f32.mrf.mxu2  ;;  %v8129_v39 = vld [vmem:[#allocation3 + $0xeec] sm:$0xf0] }
 0x159   :  { %3912 = vmatpush.bf16.msrb.mxu2 %v6708_v8  ;;  %3925 = vmatpush.bf16.msrb.mxu3 %v6836_v9  ;;  %v583_v8 = vpop.f32.mrf.mxu3  ;;  %v6996_v9 = vor.u32 %v8065_v55, %v6995_v54  ;;  %v564_v19 = vadd.f32 %v563_v6, %v253_v28  ;;  %v6644_v22 = vor.u32 %v7977_v5, %v6643_v4  ;;  %v8053_v50 = vld [vmem:[#allocation3 + $0xc8c] sm:$0xf0]  ;;  %v7075_v53 = vld [vmem:[#allocation3 + $0xd80] sm:$0xf] }
 0x15a   :  { %v7252_v51 = vor.u32 %v8129_v39, %v7251_v36  ;;  %v8085_v54 = vld [vmem:[#allocation3 + $0xd8c] sm:$0xf0]  ;;  %v7235_v55 = vld [vmem:[#allocation3 + $0xec0] sm:$0xf]  ;;  %v623_v36 = vpop.f32.mrf.mxu1 }
 0x15b   :  { %v676_v40 = vmax.f32 %v564_v19, 0.0  ;;  %v7076_v28 = vor.u32 %v8085_v54, %v7075_v53  ;;  %v7059_v5 = vld [vmem:[#allocation3 + $0xd60] sm:$0xf]  ;;  %v8081_v6 = vld [vmem:[#allocation3 + $0xd6c] sm:$0xf0] }
 0x15c   :  { %3889 = vmatpush.bf16.msrb.mxu0 %v6404_v20  ;;  %3902 = vmatpush.bf16.msrb.mxu1 %v6532_v21  ;;  %v584_v20 = vadd.f32 %v583_v8, %v254_v63  ;;  %v6627_v21 = vld [vmem:[#allocation3 + $0xa00] sm:$0xf]  ;;  %v8153_v11 = vld [vmem:[#allocation3 + $0xfac] sm:$0xf0] }
 0x15d   :  { %3913 = vmatpush.bf16.msrb.mxu2 %v6692_v26  ;;  %3926 = vmatpush.bf16.msrb.mxu3 %v6820_v27  ;;  %v8005_v26 = vld [vmem:[#allocation3 + $0xb0c] sm:$0xf0]  ;;  %v6980_v27 = vor.u32 %v8061_v16, %v6979_v13  ;;  %v6628_v44 = vor.u32 %v7973_v24, %v6627_v21  ;;  %v8718_v56 = vpack.c.bf16 %v676_v40, %v676_v40  ;;  %v6931_v63 = vld [vmem:[#allocation3 + $0xc60] sm:$0xf] }
 0x15e   :  { %v677_v41 = vmax.f32 %v584_v20, 0.0  ;;  %v6756_v45 = vor.u32 %v8005_v26, %v6755_v25  ;;  %v7219_v8 = vld [vmem:[#allocation3 + $0xea0] sm:$0xf]  ;;  %v7060_v13 = vor.u32 %v8081_v6, %v7059_v5  ;;  %v8045_v17 = vld [vmem:[#allocation3 + $0xc4c] sm:$0xf0]  ;;  %v255_v26 = vperm.slane %v8698_v7, 4 }
 0x15f   :  { %3866 = vmatmul.bf16.vlgmr.msra.gmra.mxu2 %v8704_v37  ;;  %3879 = vmatmul.bf16.vlgmr.msra.gmra.mxu3 %v8706_v38  ;;  %v6915_v16 = vld [vmem:[#allocation3 + $0xc40] sm:$0xf]  ;;  %v8077_v21 = vld [vmem:[#allocation3 + $0xd4c] sm:$0xf0]  ;;  %v7711_v6 = vld [vmem:[#allocation3 + $0x1e4] sm:$0xf] }
 0x160   :  { %3890 = vmatpush.bf16.msrb.mxu0 %v6388_v42  ;;  %3903 = vmatpush.bf16.msrb.mxu1 %v6516_v43  ;;  %v7379_v42 = vld [vmem:[#allocation3 + $0xfe0] sm:$0xf]  ;;  %v8161_v43 = vld [vmem:[#allocation3 + $0xfec] sm:$0xf0]  ;;  %v8720_v57 = vpack.c.bf16 %v677_v41, %v677_v41 }
 0x161   :  { %3914 = vmatpush.bf16.msrb.mxu2 %v6676_v47  ;;  %3927 = vmatpush.bf16.msrb.mxu3 %v6804_v48  ;;  %v7092_v47 = vor.u32 %v8089_v33, %v7091_v32  ;;  %v6947_v48 = vld [vmem:[#allocation3 + $0xc80] sm:$0xf]  ;;  %v7380_v52 = vor.u32 %v8161_v43, %v7379_v42  ;;  %v8149_v25 = vld [vmem:[#allocation3 + $0xf8c] sm:$0xf0] }
 0x162   :  { %v7043_v20 = vld [vmem:[#allocation3 + $0xd40] sm:$0xf]  ;;  %v8041_v33 = vld [vmem:[#allocation3 + $0xc2c] sm:$0xf0] }
 0x163   :  { %v7331_v24 = vld [vmem:[#allocation3 + $0xf80] sm:$0xf]  ;;  %v7044_v30 = vor.u32 %v8077_v21, %v7043_v20  ;;  %v8073_v42 = vld [vmem:[#allocation3 + $0xd2c] sm:$0xf0]  ;;  %v663_v20 = vpop.f32.mrf.mxu3 }
 0x164   :  { %3891 = vmatpush.bf16.msrb.mxu0 %v6372_v60  ;;  %3904 = vmatpush.bf16.msrb.mxu1 %v6500_v61  ;;  %v8157_v60 = vld [vmem:[#allocation3 + $0xfcc] sm:$0xf0]  ;;  %v6948_v61 = vor.u32 %v8053_v50, %v6947_v48  ;;  %v6899_v32 = vld [vmem:[#allocation3 + $0xc20] sm:$0xf]  ;;  %v7332_v40 = vor.u32 %v8149_v25, %v7331_v24  ;;  %v7675_v25 = vld [vmem:[#allocation3 + $0xc4] sm:$0xf] }
 0x165   :  { %3915 = vmatpush.bf16.msrb.mxu2 %v6660_v0  ;;  %3928 = vmatpush.bf16.msrb.mxu3 %v6788_v1  ;;  %v8049_v0 = vld [vmem:[#allocation3 + $0xc6c] sm:$0xf0]  ;;  %v7236_v1 = vor.u32 %v8125_v58, %v7235_v55  ;;  %v7364_v4 = vor.u32 %v8157_v60, %v7363_v59  ;;  %v7027_v41 = vld [vmem:[#allocation3 + $0xd20] sm:$0xf] }
 0x166   :  { %v6932_v12 = vor.u32 %v8049_v0, %v6931_v63  ;;  %v7187_v43 = vld [vmem:[#allocation3 + $0xe60] sm:$0xf]  ;;  %v8037_v53 = vld [vmem:[#allocation3 + $0xc0c] sm:$0xf0]  ;;  %v7679_v0 = vld [vmem:[#allocation3 + $0xe4] sm:$0xf] }
 0x167   :  { %3892 = vmatmul.bf16.vlgmr.msrb.gmra.mxu0 %v8712_v14  ;;  %3905 = vmatmul.bf16.vlgmr.msrb.gmra.mxu1 %v8714_v15  ;;  %v6883_v50 = vld [vmem:[#allocation3 + $0xc00] sm:$0xf]  ;;  %v8069_v55 = vld [vmem:[#allocation3 + $0xd0c] sm:$0xf0] }
 0x168   :  { %3936 = vmatpush.bf16.msra.mxu0 %v6996_v9  ;;  %3949 = vmatpush.bf16.msra.mxu1 %v7124_v10  ;;  %v8121_v9 = vld [vmem:[#allocation3 + $0xeac] sm:$0xf0]  ;;  %v7347_v10 = vld [vmem:[#allocation3 + $0xfa0] sm:$0xf] }
 0x169   :  { %3916 = vmatpush.bf16.msrb.mxu2 %v6644_v22  ;;  %3929 = vmatpush.bf16.msrb.mxu3 %v6772_v23  ;;  %v7220_v18 = vor.u32 %v8121_v9, %v7219_v8  ;;  %v7348_v19 = vor.u32 %v8153_v11, %v7347_v10  ;;  %v7203_v22 = vld [vmem:[#allocation3 + $0xe80] sm:$0xf]  ;;  %v8117_v23 = vld [vmem:[#allocation3 + $0xe8c] sm:$0xf0]  ;;  %v5589_v8 = vld [vmem:[#allocation3 + $0x1f0] sm:$0xf0]  ;;  %v6884_v9 = vor.u32 %v8037_v53, %v6883_v50 }
 0x16a   :  { %v7204_v39 = vor.u32 %v8117_v23, %v7203_v22  ;;  %v7011_v54 = vld [vmem:[#allocation3 + $0xd00] sm:$0xf]  ;;  %v8141_v63 = vld [vmem:[#allocation3 + $0xf4c] sm:$0xf0]  ;;  %v257_v11 = vperm.slane %v8698_v7, 6  ;;  %v5592_v22 = vor.u32 %v7711_v6, %v5589_v8 }
 0x16b   :  { %v7171_v60 = vld [vmem:[#allocation3 + $0xe40] sm:$0xf]  ;;  %v7012_v10 = vor.u32 %v8069_v55, %v7011_v54  ;;  %v8137_v24 = vld [vmem:[#allocation3 + $0xf2c] sm:$0xf0]  ;;  %v7743_v50 = vld [vmem:[#allocation3 + $0x2e4] sm:$0xf] }
 0x16c   :  { %3937 = vmatpush.bf16.msra.mxu0 %v6980_v27  ;;  %3950 = vmatpush.bf16.msra.mxu1 %v7108_v29  ;;  %v256_v27 = vperm.slane %v8698_v7, 5  ;;  %v6916_v29 = vor.u32 %v8045_v17, %v6915_v16  ;;  %v643_v17 = vpop.f32.mrf.mxu2  ;;  %v7283_v23 = vld [vmem:[#allocation3 + $0xf20] sm:$0xf]  ;;  %v7775_v54 = vld [vmem:[#allocation3 + $0x3e4] sm:$0xf] }
 0x16d   :  { %3917 = vmatpush.bf16.msrb.mxu2 %v6628_v44  ;;  %3930 = vmatpush.bf16.msrb.mxu3 %v6756_v45  ;;  %v8113_v44 = vld [vmem:[#allocation3 + $0xe6c] sm:$0xf0]  ;;  %v7315_v45 = vld [vmem:[#allocation3 + $0xf60] sm:$0xf]  ;;  %v5845_v55 = vld [vmem:[#allocation3 + $0x3f0] sm:$0xf0] }
 0x16e   :  { %v624_v48 = vadd.f32 %v623_v36, %v256_v27  ;;  %v7188_v58 = vor.u32 %v8113_v44, %v7187_v43  ;;  %v7739_v6 = vld [vmem:[#allocation3 + $0x2c4] sm:$0xf] }
 0x170   :  { %3938 = vmatpush.bf16.msra.mxu0 %v6964_v46  ;;  %3951 = vmatpush.bf16.msra.mxu1 %v7092_v47  ;;  %v8145_v46 = vld [vmem:[#allocation3 + $0xf6c] sm:$0xf0]  ;;  %v604_v47 = vadd.f32 %v603_v31, %v255_v26  ;;  %v679_v5 = vmax.f32 %v624_v48, 0.0  ;;  %v644_v31 = vadd.f32 %v643_v17, %v257_v11  ;;  %v5557_v48 = vld [vmem:[#allocation3 + $0x1b0] sm:$0xf0] }
 0x171   :  { %3962 = vmatpush.bf16.msra.mxu2 %v7252_v51  ;;  %3975 = vmatpush.bf16.msra.mxu3 %v7380_v52  ;;  %v6900_v51 = vor.u32 %v8041_v33, %v6899_v32  ;;  %v7028_v52 = vor.u32 %v8073_v42, %v7027_v41  ;;  %v7316_v59 = vor.u32 %v8145_v46, %v7315_v45  ;;  %v7139_v33 = vld [vmem:[#allocation3 + $0xe00] sm:$0xf]  ;;  %v8133_v42 = vld [vmem:[#allocation3 + $0xf0c] sm:$0xf0]  ;;  %v7671_v45 = vld [vmem:[#allocation3 + $0xa4] sm:$0xf] }
 0x172   :  { %3918 = vmatmul.bf16.vlgmr.msrb.gmra.mxu2 %v8718_v56  ;;  %3931 = vmatmul.bf16.vlgmr.msrb.gmra.mxu3 %v8720_v57  ;;  %v8730_v27 = vpack.c.bf16 %v679_v5, %v679_v5  ;;  %v7267_v41 = vld [vmem:[#allocation3 + $0xf00] sm:$0xf]  ;;  %v5429_v46 = vld [vmem:[#allocation3 + $0xb0] sm:$0xf0]  ;;  %v7771_v11 = vld [vmem:[#allocation3 + $0x3c4] sm:$0xf] }
 0x173   :  { %v5541_v5 = vld [vmem:[#allocation3 + $0x190] sm:$0xf0]  ;;  %v7663_v17 = vld [vmem:[#allocation3 + $0x64] sm:$0xf] }
 0x174   :  { %3939 = vmatpush.bf16.msra.mxu0 %v6948_v61  ;;  %3952 = vmatpush.bf16.msra.mxu1 %v7076_v28  ;;  %v8109_v61 = vld [vmem:[#allocation3 + $0xe4c] sm:$0xf0]  ;;  %v7299_v28 = vld [vmem:[#allocation3 + $0xf40] sm:$0xf] }
 0x175   :  { %3963 = vmatpush.bf16.msra.mxu2 %v7236_v1  ;;  %3976 = vmatpush.bf16.msra.mxu3 %v7364_v4  ;;  %v5461_v1 = vld [vmem:[#allocation3 + $0xf0] sm:$0xf0]  ;;  %v678_v4 = vmax.f32 %v604_v47, 0.0  ;;  %v7300_v16 = vor.u32 %v8141_v63, %v7299_v28  ;;  %v7703_v47 = vld [vmem:[#allocation3 + $0x1a4] sm:$0xf] }
 0x176   :  { %v5464_v21 = vor.u32 %v7679_v0, %v5461_v1  ;;  %v7667_v28 = vld [vmem:[#allocation3 + $0x84] sm:$0xf]  ;;  %v5413_v63 = vld [vmem:[#allocation3 + $0x90] sm:$0xf0]  ;;  %v5848_v1 = vor.u32 %v7775_v54, %v5845_v55 }
 0x177   :  { %v8728_v26 = vpack.c.bf16 %v678_v4, %v678_v4  ;;  %v7699_v4 = vld [vmem:[#allocation3 + $0x184] sm:$0xf]  ;;  %v5653_v55 = vld [vmem:[#allocation3 + $0x270] sm:$0xf0] }
 0x178   :  { %3940 = vmatpush.bf16.msra.mxu0 %v6932_v12  ;;  %3953 = vmatpush.bf16.msra.mxu1 %v7060_v13  ;;  %v258_v12 = vperm.slane %v8698_v7, 7  ;;  %v7172_v13 = vor.u32 %v8109_v61, %v7171_v60  ;;  %v5573_v7 = vld [vmem:[#allocation3 + $0x1d0] sm:$0xf0]  ;;  %v5432_v60 = vor.u32 %v7671_v45, %v5429_v46  ;;  %v5560_v61 = vor.u32 %v7703_v47, %v5557_v48  ;;  %v7655_v47 = vld [vmem:[#allocation3 + $0x24] sm:$0xf] }
 0x179   :  { %3964 = vmatpush.bf16.msra.mxu2 %v7220_v18  ;;  %3977 = vmatpush.bf16.msra.mxu3 %v7348_v19  ;;  %v7155_v18 = vld [vmem:[#allocation3 + $0xe20] sm:$0xf]  ;;  %v8105_v19 = vld [vmem:[#allocation3 + $0xe2c] sm:$0xf0]  ;;  %v5365_v48 = vld [vmem:[#allocation3 + $0x30] sm:$0xf0] }
 0x17a   :  { %v664_v32 = vadd.f32 %v663_v20, %v258_v12  ;;  %v7156_v36 = vor.u32 %v8105_v19, %v7155_v18  ;;  %v5829_v12 = vld [vmem:[#allocation3 + $0x3d0] sm:$0xf0]  ;;  %v7727_v54 = vld [vmem:[#allocation3 + $0x264] sm:$0xf] }
 0x17b   :  { %v5397_v18 = vld [vmem:[#allocation3 + $0x70] sm:$0xf0]  ;;  %v5832_v20 = vor.u32 %v7771_v11, %v5829_v12  ;;  %v7755_v11 = vld [vmem:[#allocation3 + $0x344] sm:$0xf] }
 0x17c   :  { %3941 = vmatpush.bf16.msra.mxu0 %v6916_v29  ;;  %3954 = vmatpush.bf16.msra.mxu1 %v7044_v30  ;;  %v5445_v29 = vld [vmem:[#allocation3 + $0xd0] sm:$0xf0]  ;;  %v7707_v30 = vld [vmem:[#allocation3 + $0x1c4] sm:$0xf]  ;;  %v681_v53 = vmax.f32 %v664_v32, 0.0 }
 0x17d   :  { %3965 = vmatpush.bf16.msra.mxu2 %v7204_v39  ;;  %3978 = vmatpush.bf16.msra.mxu3 %v7332_v40  ;;  %v7284_v39 = vor.u32 %v8137_v24, %v7283_v23  ;;  %v8101_v40 = vld [vmem:[#allocation3 + $0xe0c] sm:$0xf0]  ;;  %v5448_v43 = vor.u32 %v7675_v25, %v5445_v29  ;;  %v5576_v44 = vor.u32 %v7707_v30, %v5573_v7  ;;  %v7735_v23 = vld [vmem:[#allocation3 + $0x2a4] sm:$0xf]  ;;  %v5685_v24 = vld [vmem:[#allocation3 + $0x2b0] sm:$0xf0] }
 0x17e   :  { %v7767_v25 = vld [vmem:[#allocation3 + $0x3a4] sm:$0xf]  ;;  %v5813_v29 = vld [vmem:[#allocation3 + $0x3b0] sm:$0xf0]  ;;  %v5400_v30 = vor.u32 %v7663_v17, %v5397_v18 }
 0x17f   :  { %v5381_v32 = vld [vmem:[#allocation3 + $0x50] sm:$0xf0]  ;;  %v7839_v17 = vld [vmem:[#allocation3 + $0x5e4] sm:$0xf] }
 0x180   :  { %3942 = vmatpush.bf16.msra.mxu0 %v6900_v51  ;;  %3955 = vmatpush.bf16.msra.mxu1 %v7028_v52  ;;  %v5717_v51 = vld [vmem:[#allocation3 + $0x2f0] sm:$0xf0]  ;;  %v680_v52 = vmax.f32 %v644_v31, 0.0  ;;  %v7659_v31 = vld [vmem:[#allocation3 + $0x44] sm:$0xf] }
 0x181   :  { %3966 = vmatpush.bf16.msra.mxu2 %v7188_v58  ;;  %3979 = vmatpush.bf16.msra.mxu3 %v7316_v59  ;;  %v7140_v58 = vor.u32 %v8101_v40, %v7139_v33  ;;  %v7268_v59 = vor.u32 %v8133_v42, %v7267_v41  ;;  %v5720_v0 = vor.u32 %v7743_v50, %v5717_v51  ;;  %v5509_v40 = vld [vmem:[#allocation3 + $0x150] sm:$0xf0]  ;;  %v7731_v41 = vld [vmem:[#allocation3 + $0x284] sm:$0xf] }
 0x182   :  { %v8734_v8 = vpack.c.bf16 %v680_v52, %v680_v52  ;;  %v5688_v33 = vor.u32 %v7735_v23, %v5685_v24  ;;  %v5669_v42 = vld [vmem:[#allocation3 + $0x290] sm:$0xf0]  ;;  %v5384_v45 = vor.u32 %v7659_v31, %v5381_v32  ;;  %v7687_v52 = vld [vmem:[#allocation3 + $0x124] sm:$0xf] }
 0x183   :  { %v5672_v50 = vor.u32 %v7731_v41, %v5669_v42  ;;  %v5765_v12 = vld [vmem:[#allocation3 + $0x350] sm:$0xf0]  ;;  %v7719_v23 = vld [vmem:[#allocation3 + $0x224] sm:$0xf] }
 0x184   :  { %3943 = vmatpush.bf16.msra.mxu0 %v6884_v9  ;;  %3956 = vmatpush.bf16.msra.mxu1 %v7012_v10  ;;  %v8736_v9 = vpack.c.bf16 %v681_v53, %v681_v53  ;;  %v5701_v10 = vld [vmem:[#allocation3 + $0x2d0] sm:$0xf0]  ;;  %v7803_v31 = vld [vmem:[#allocation3 + $0x4c4] sm:$0xf] }
 0x185   :  { %3967 = vmatpush.bf16.msra.mxu2 %v7172_v13  ;;  %3980 = vmatpush.bf16.msra.mxu3 %v7300_v16  ;;  %v5416_v13 = vor.u32 %v7667_v28, %v5413_v63  ;;  %v5544_v16 = vor.u32 %v7699_v4, %v5541_v5  ;;  %v5704_v19 = vor.u32 %v7739_v6, %v5701_v10  ;;  %v5493_v53 = vld [vmem:[#allocation3 + $0x130] sm:$0xf0]  ;;  %v7651_v28 = vld [vmem:[#allocation3 + $0x4] sm:$0xf] }
 0x186   :  { %v5349_v63 = vld [vmem:[#allocation3 + $0x10] sm:$0xf0]  ;;  %v7723_v6 = vld [vmem:[#allocation3 + $0x244] sm:$0xf] }
 0x187   :  { %3944 = vmatmul.bf16.vlgmr.msra.gmra.mxu0 %v8728_v26  ;;  %3957 = vmatmul.bf16.vlgmr.msra.gmra.mxu1 %v8730_v27  ;;  %v5477_v5 = vld [vmem:[#allocation3 + $0x110] sm:$0xf0]  ;;  %v7715_v41 = vld [vmem:[#allocation3 + $0x204] sm:$0xf] }
 0x188   :  { %3988 = vmatpush.bf16.msrb.mxu0 %v5464_v21  ;;  %4001 = vmatpush.bf16.msrb.mxu1 %v5592_v22  ;;  %v7695_v21 = vld [vmem:[#allocation3 + $0x164] sm:$0xf]  ;;  %v5525_v22 = vld [vmem:[#allocation3 + $0x170] sm:$0xf0] }
 0x189   :  { %3968 = vmatpush.bf16.msra.mxu2 %v7156_v36  ;;  %3981 = vmatpush.bf16.msra.mxu3 %v7284_v39  ;;  %v5528_v7 = vor.u32 %v7695_v21, %v5525_v22  ;;  %v5816_v36 = vor.u32 %v7767_v25, %v5813_v29  ;;  %v7691_v39 = vld [vmem:[#allocation3 + $0x144] sm:$0xf]  ;;  %v5637_v10 = vld [vmem:[#allocation3 + $0x250] sm:$0xf0]  ;;  %v5768_v22 = vor.u32 %v7755_v11, %v5765_v12 }
 0x18a   :  { %v5512_v46 = vor.u32 %v7691_v39, %v5509_v40  ;;  %v6101_v18 = vld [vmem:[#allocation3 + $0x5f0] sm:$0xf0]  ;;  %v5640_v21 = vor.u32 %v7723_v6, %v5637_v10  ;;  %v7867_v6 = vld [vmem:[#allocation3 + $0x6c4] sm:$0xf] }
 0x18b   :  { %v5621_v24 = vld [vmem:[#allocation3 + $0x230] sm:$0xf0]  ;;  %v6104_v29 = vor.u32 %v7839_v17, %v6101_v18  ;;  %v7899_v11 = vld [vmem:[#allocation3 + $0x7c4] sm:$0xf] }
 0x18c   :  { %3989 = vmatpush.bf16.msrb.mxu0 %v5448_v43  ;;  %4002 = vmatpush.bf16.msrb.mxu1 %v5576_v44  ;;  %v7763_v43 = vld [vmem:[#allocation3 + $0x384] sm:$0xf]  ;;  %v5797_v44 = vld [vmem:[#allocation3 + $0x390] sm:$0xf0]  ;;  %v5624_v39 = vor.u32 %v7719_v23, %v5621_v24 }
 0x18d   :  { %3969 = vmatpush.bf16.msra.mxu2 %v7140_v58  ;;  %3982 = vmatpush.bf16.msra.mxu3 %v7268_v59  ;;  %v5800_v51 = vor.u32 %v7763_v43, %v5797_v44  ;;  %v7759_v58 = vld [vmem:[#allocation3 + $0x364] sm:$0xf]  ;;  %v5781_v59 = vld [vmem:[#allocation3 + $0x370] sm:$0xf0] }
 0x18e   :  { %v5784_v4 = vor.u32 %v7759_v58, %v5781_v59  ;;  %v5957_v32 = vld [vmem:[#allocation3 + $0x4d0] sm:$0xf0]  ;;  %v7747_v43 = vld [vmem:[#allocation3 + $0x304] sm:$0xf] }
 0x18f   :  { %v5605_v42 = vld [vmem:[#allocation3 + $0x210] sm:$0xf0]  ;;  %v5960_v44 = vor.u32 %v7803_v31, %v5957_v32  ;;  %v7791_v17 = vld [vmem:[#allocation3 + $0x464] sm:$0xf] }
 0x190   :  { %3990 = vmatpush.bf16.msrb.mxu0 %v5432_v60  ;;  %4003 = vmatpush.bf16.msrb.mxu1 %v5560_v61  ;;  %v5368_v60 = vor.u32 %v7655_v47, %v5365_v48  ;;  %v5496_v61 = vor.u32 %v7687_v52, %v5493_v53  ;;  %v7799_v47 = vld [vmem:[#allocation3 + $0x4a4] sm:$0xf]  ;;  %v5941_v48 = vld [vmem:[#allocation3 + $0x4b0] sm:$0xf0]  ;;  %v5608_v58 = vor.u32 %v7715_v41, %v5605_v42 }
 0x191   :  { %4014 = vmatpush.bf16.msrb.mxu2 %v5720_v0  ;;  %4027 = vmatpush.bf16.msrb.mxu3 %v5848_v1  ;;  %v7683_v0 = vld [vmem:[#allocation3 + $0x104] sm:$0xf]  ;;  %v5656_v1 = vor.u32 %v7727_v54, %v5653_v55  ;;  %v6229_v53 = vld [vmem:[#allocation3 + $0x6f0] sm:$0xf0] }
 0x192   :  { %3970 = vmatmul.bf16.vlgmr.msra.gmra.mxu2 %v8734_v8  ;;  %3983 = vmatmul.bf16.vlgmr.msra.gmra.mxu3 %v8736_v9  ;;  %v7871_v52 = vld [vmem:[#allocation3 + $0x6e4] sm:$0xf]  ;;  %v6357_v55 = vld [vmem:[#allocation3 + $0x7f0] sm:$0xf0] }
 0x193   :  { %v7903_v54 = vld [vmem:[#allocation3 + $0x7e4] sm:$0xf]  ;;  %v6213_v10 = vld [vmem:[#allocation3 + $0x6d0] sm:$0xf0] }
 0x194   :  { %3991 = vmatpush.bf16.msrb.mxu0 %v5416_v13  ;;  %4004 = vmatpush.bf16.msrb.mxu1 %v5544_v16  ;;  %v7807_v13 = vld [vmem:[#allocation3 + $0x4e4] sm:$0xf]  ;;  %v5973_v16 = vld [vmem:[#allocation3 + $0x4f0] sm:$0xf0] }
 0x195   :  { %4015 = vmatpush.bf16.msrb.mxu2 %v5704_v19  ;;  %4028 = vmatpush.bf16.msrb.mxu3 %v5832_v20  ;;  %v5352_v19 = vor.u32 %v7651_v28, %v5349_v63  ;;  %v5480_v20 = vor.u32 %v7683_v0, %v5477_v5  ;;  %v5976_v25 = vor.u32 %v7807_v13, %v5973_v16  ;;  %v7795_v28 = vld [vmem:[#allocation3 + $0x484] sm:$0xf]  ;;  %v5925_v63 = vld [vmem:[#allocation3 + $0x490] sm:$0xf0] }
 0x196   :  { %v6232_v0 = vor.u32 %v7871_v52, %v6229_v53  ;;  %v6053_v5 = vld [vmem:[#allocation3 + $0x590] sm:$0xf0]  ;;  %v5928_v13 = vor.u32 %v7795_v28, %v5925_v63  ;;  %v7863_v23 = vld [vmem:[#allocation3 + $0x6a4] sm:$0xf] }
 0x197   :  { %v6341_v12 = vld [vmem:[#allocation3 + $0x7d0] sm:$0xf0]  ;;  %v7787_v31 = vld [vmem:[#allocation3 + $0x444] sm:$0xf] }
 0x198   :  { %3992 = vmatpush.bf16.msrb.mxu0 %v5400_v30  ;;  %4005 = vmatpush.bf16.msrb.mxu1 %v5528_v7  ;;  %v7751_v30 = vld [vmem:[#allocation3 + $0x324] sm:$0xf]  ;;  %v5749_v7 = vld [vmem:[#allocation3 + $0x330] sm:$0xf0] }
 0x199   :  { %4016 = vmatpush.bf16.msrb.mxu2 %v5688_v33  ;;  %4029 = vmatpush.bf16.msrb.mxu3 %v5816_v36  ;;  %v7835_v33 = vld [vmem:[#allocation3 + $0x5c4] sm:$0xf]  ;;  %v6085_v36 = vld [vmem:[#allocation3 + $0x5d0] sm:$0xf0]  ;;  %v5752_v40 = vor.u32 %v7751_v30, %v5749_v7 }
 0x19a   :  { %v5909_v18 = vld [vmem:[#allocation3 + $0x470] sm:$0xf0]  ;;  %v7859_v41 = vld [vmem:[#allocation3 + $0x684] sm:$0xf] }
 0x19b   :  { %v6197_v24 = vld [vmem:[#allocation3 + $0x6b0] sm:$0xf0]  ;;  %v5912_v30 = vor.u32 %v7791_v17, %v5909_v18  ;;  %v7815_v52 = vld [vmem:[#allocation3 + $0x524] sm:$0xf] }
 0x19c   :  { %3993 = vmatpush.bf16.msrb.mxu0 %v5384_v45  ;;  %4006 = vmatpush.bf16.msrb.mxu1 %v5512_v46  ;;  %v6088_v45 = vor.u32 %v7835_v33, %v6085_v36  ;;  %v5733_v46 = vld [vmem:[#allocation3 + $0x310] sm:$0xf0]  ;;  %v6200_v33 = vor.u32 %v7863_v23, %v6197_v24  ;;  %v7779_v28 = vld [vmem:[#allocation3 + $0x404] sm:$0xf] }
 0x19d   :  { %4017 = vmatpush.bf16.msrb.mxu2 %v5672_v50  ;;  %4030 = vmatpush.bf16.msrb.mxu3 %v5800_v51  ;;  %v7831_v50 = vld [vmem:[#allocation3 + $0x5a4] sm:$0xf]  ;;  %v6069_v51 = vld [vmem:[#allocation3 + $0x5b0] sm:$0xf0]  ;;  %v5736_v59 = vor.u32 %v7747_v43, %v5733_v46 }
 0x19e   :  { %v5893_v32 = vld [vmem:[#allocation3 + $0x450] sm:$0xf0]  ;;  %v7891_v43 = vld [vmem:[#allocation3 + $0x784] sm:$0xf] }
 0x19f   :  { %v6181_v42 = vld [vmem:[#allocation3 + $0x690] sm:$0xf0]  ;;  %v7967_v17 = vld [vmem:[#allocation3 + $0x9e4] sm:$0xf] }
 0x1a0   :  { %3994 = vmatpush.bf16.msrb.mxu0 %v5368_v60  ;;  %4007 = vmatpush.bf16.msrb.mxu1 %v5496_v61  ;;  %v5944_v60 = vor.u32 %v7799_v47, %v5941_v48  ;;  %v6072_v61 = vor.u32 %v7831_v50, %v6069_v51  ;;  %v7783_v47 = vld [vmem:[#allocation3 + $0x424] sm:$0xf]  ;;  %v5877_v48 = vld [vmem:[#allocation3 + $0x430] sm:$0xf0]  ;;  %v6184_v50 = vor.u32 %v7859_v41, %v6181_v42 }
 0x1a1   :  { %4018 = vmatpush.bf16.msrb.mxu2 %v5656_v1  ;;  %4031 = vmatpush.bf16.msrb.mxu3 %v5784_v4  ;;  %v6360_v1 = vor.u32 %v7903_v54, %v6357_v55  ;;  %v7827_v4 = vld [vmem:[#allocation3 + $0x584] sm:$0xf]  ;;  %v6005_v53 = vld [vmem:[#allocation3 + $0x530] sm:$0xf0] }
 0x1a2   :  { %v6056_v16 = vor.u32 %v7827_v4, %v6053_v5  ;;  %v7855_v54 = vld [vmem:[#allocation3 + $0x664] sm:$0xf]  ;;  %v6165_v55 = vld [vmem:[#allocation3 + $0x670] sm:$0xf0] }
 0x1a3   :  { %v5861_v63 = vld [vmem:[#allocation3 + $0x410] sm:$0xf0]  ;;  %v7847_v23 = vld [vmem:[#allocation3 + $0x624] sm:$0xf] }
 0x1a4   :  { %3995 = vmatpush.bf16.msrb.mxu0 %v5352_v19  ;;  %4008 = vmatpush.bf16.msrb.mxu1 %v5480_v20  ;;  %v6216_v19 = vor.u32 %v7867_v6, %v6213_v10  ;;  %v6344_v20 = vor.u32 %v7899_v11, %v6341_v12  ;;  %v5989_v5 = vld [vmem:[#allocation3 + $0x510] sm:$0xf0]  ;;  %v7851_v6 = vld [vmem:[#allocation3 + $0x644] sm:$0xf] }
 0x1a5   :  { %4019 = vmatpush.bf16.msrb.mxu2 %v5640_v21  ;;  %4032 = vmatpush.bf16.msrb.mxu3 %v5768_v22  ;;  %v7823_v21 = vld [vmem:[#allocation3 + $0x564] sm:$0xf]  ;;  %v6037_v22 = vld [vmem:[#allocation3 + $0x570] sm:$0xf0] }
 0x1a6   :  { %v6040_v7 = vor.u32 %v7823_v21, %v6037_v22  ;;  %v6149_v10 = vld [vmem:[#allocation3 + $0x650] sm:$0xf0]  ;;  %v7883_v11 = vld [vmem:[#allocation3 + $0x744] sm:$0xf] }
 0x1a7   :  { %3996 = vmatmul.bf16.vlgmr.msrb.gmra.mxu0 %v8678_v2  ;;  %4009 = vmatmul.bf16.vlgmr.msrb.gmra.mxu1 %v8680_v3  ;;  %v6277_v12 = vld [vmem:[#allocation3 + $0x750] sm:$0xf0]  ;;  %v6152_v21 = vor.u32 %v7851_v6, %v6149_v10 }
 0x1a8   :  { %4040 = vmatpush.bf16.msra.mxu0 %v5976_v25  ;;  %4053 = vmatpush.bf16.msra.mxu1 %v6104_v29  ;;  %v7895_v25 = vld [vmem:[#allocation3 + $0x7a4] sm:$0xf]  ;;  %v6325_v29 = vld [vmem:[#allocation3 + $0x7b0] sm:$0xf0]  ;;  %v6280_v22 = vor.u32 %v7883_v11, %v6277_v12 }
 0x1a9   :  { %4020 = vmatpush.bf16.msrb.mxu2 %v5624_v39  ;;  %4033 = vmatpush.bf16.msrb.mxu3 %v5752_v40  ;;  %v6328_v36 = vor.u32 %v7895_v25, %v6325_v29  ;;  %v7819_v39 = vld [vmem:[#allocation3 + $0x544] sm:$0xf]  ;;  %v6021_v40 = vld [vmem:[#allocation3 + $0x550] sm:$0xf0] }
 0x1aa   :  { %v6024_v46 = vor.u32 %v7819_v39, %v6021_v40  ;;  %v6613_v18 = vld [vmem:[#allocation3 + $0x9f0] sm:$0xf0]  ;;  %v7843_v39 = vld [vmem:[#allocation3 + $0x604] sm:$0xf]  ;;  %v8744_v40 = vld [vmem:[#allocation10] sm:$0xf] }
 0x1ab   :  { %v6133_v24 = vld [vmem:[#allocation3 + $0x630] sm:$0xf0]  ;;  %v6616_v29 = vor.u32 %v7967_v17, %v6613_v18  ;;  %v7955_v12 = vld [vmem:[#allocation3 + $0x984] sm:$0xf] }
 0x1ac   :  { %4041 = vmatpush.bf16.msra.mxu0 %v5960_v44  ;;  %4054 = vmatpush.bf16.msra.mxu1 %v6088_v45  ;;  %v6309_v44 = vld [vmem:[#allocation3 + $0x790] sm:$0xf0]  ;;  %v5896_v45 = vor.u32 %v7787_v31, %v5893_v32  ;;  %v7931_v31 = vld [vmem:[#allocation3 + $0x8c4] sm:$0xf]  ;;  %v6136_v41 = vor.u32 %v7847_v23, %v6133_v24 }
 0x1ad   :  { %4021 = vmatpush.bf16.msrb.mxu2 %v5608_v58  ;;  %4034 = vmatpush.bf16.msrb.mxu3 %v5736_v59  ;;  %v6312_v51 = vor.u32 %v7891_v43, %v6309_v44  ;;  %v7887_v58 = vld [vmem:[#allocation3 + $0x764] sm:$0xf]  ;;  %v6293_v59 = vld [vmem:[#allocation3 + $0x770] sm:$0xf0] }
 0x1ae   :  { %v6296_v4 = vor.u32 %v7887_v58, %v6293_v59  ;;  %v6469_v32 = vld [vmem:[#allocation3 + $0x8d0] sm:$0xf0]  ;;  %v7875_v44 = vld [vmem:[#allocation3 + $0x704] sm:$0xf] }
 0x1af   :  { %v6117_v43 = vld [vmem:[#allocation3 + $0x610] sm:$0xf0]  ;;  %v8031_v58 = vld [vmem:[#allocation3 + $0xbe4] sm:$0xf] }
 0x1b0   :  { %4042 = vmatpush.bf16.msra.mxu0 %v5944_v60  ;;  %4055 = vmatpush.bf16.msra.mxu1 %v6072_v61  ;;  %v5880_v60 = vor.u32 %v7783_v47, %v5877_v48  ;;  %v6008_v61 = vor.u32 %v7815_v52, %v6005_v53  ;;  %v7927_v48 = vld [vmem:[#allocation3 + $0x8a4] sm:$0xf]  ;;  %v6581_v52 = vld [vmem:[#allocation3 + $0x9b0] sm:$0xf0] }
 0x1b1   :  { %4066 = vmatpush.bf16.msra.mxu2 %v6232_v0  ;;  %4079 = vmatpush.bf16.msra.mxu3 %v6360_v1  ;;  %v7811_v0 = vld [vmem:[#allocation3 + $0x504] sm:$0xf]  ;;  %v6168_v1 = vor.u32 %v7855_v54, %v6165_v55  ;;  %v1212_v54 = vperm.slane %v8744_v40, 0  ;;  %v6741_v55 = vld [vmem:[#allocation3 + $0xaf0] sm:$0xf0] }
 0x1b2   :  { %4022 = vmatmul.bf16.vlgmr.msrb.gmra.mxu2 %v8686_v34  ;;  %4035 = vmatmul.bf16.vlgmr.msrb.gmra.mxu3 %v8688_v35  ;;  %v7999_v53 = vld [vmem:[#allocation3 + $0xae4] sm:$0xf]  ;;  %v6869_v59 = vld [vmem:[#allocation3 + $0xbf0] sm:$0xf0] }
 0x1b3   :  { %v6744_v6 = vor.u32 %v7999_v53, %v6741_v55  ;;  %v6872_v10 = vor.u32 %v8031_v58, %v6869_v59  ;;  %v6725_v17 = vld [vmem:[#allocation3 + $0xad0] sm:$0xf0]  ;;  %v8027_v18 = vld [vmem:[#allocation3 + $0xbc4] sm:$0xf] }
 0x1b4   :  { %4043 = vmatpush.bf16.msra.mxu0 %v5928_v13  ;;  %4056 = vmatpush.bf16.msra.mxu1 %v6056_v16  ;;  %v7935_v13 = vld [vmem:[#allocation3 + $0x8e4] sm:$0xf]  ;;  %v6485_v16 = vld [vmem:[#allocation3 + $0x8f0] sm:$0xf0] }
 0x1b5   :  { %4067 = vmatpush.bf16.msra.mxu2 %v6216_v19  ;;  %4080 = vmatpush.bf16.msra.mxu3 %v6344_v20  ;;  %v5864_v19 = vor.u32 %v7779_v28, %v5861_v63  ;;  %v5992_v20 = vor.u32 %v7811_v0, %v5989_v5  ;;  %v6488_v25 = vor.u32 %v7935_v13, %v6485_v16  ;;  %v6437_v5 = vld [vmem:[#allocation3 + $0x890] sm:$0xf0]  ;;  %v7995_v16 = vld [vmem:[#allocation3 + $0xac4] sm:$0xf] }
 0x1b6   :  { %v6565_v13 = vld [vmem:[#allocation3 + $0x990] sm:$0xf0]  ;;  %v7919_v23 = vld [vmem:[#allocation3 + $0x864] sm:$0xf] }
 0x1b7   :  { %v6421_v24 = vld [vmem:[#allocation3 + $0x870] sm:$0xf0]  ;;  %v8019_v53 = vld [vmem:[#allocation3 + $0xb84] sm:$0xf] }
 0x1b8   :  { %4044 = vmatpush.bf16.msra.mxu0 %v5912_v30  ;;  %4057 = vmatpush.bf16.msra.mxu1 %v6040_v7  ;;  %v7879_v30 = vld [vmem:[#allocation3 + $0x724] sm:$0xf]  ;;  %v6261_v7 = vld [vmem:[#allocation3 + $0x730] sm:$0xf0] }
 0x1b9   :  { %4068 = vmatpush.bf16.msra.mxu2 %v6200_v33  ;;  %4081 = vmatpush.bf16.msra.mxu3 %v6328_v36  ;;  %v7963_v33 = vld [vmem:[#allocation3 + $0x9c4] sm:$0xf]  ;;  %v6597_v36 = vld [vmem:[#allocation3 + $0x9d0] sm:$0xf0]  ;;  %v6264_v42 = vor.u32 %v7879_v30, %v6261_v7 }
 0x1ba   :  { %v6600_v47 = vor.u32 %v7963_v33, %v6597_v36  ;;  %v7951_v30 = vld [vmem:[#allocation3 + $0x964] sm:$0xf]  ;;  %v6549_v7 = vld [vmem:[#allocation3 + $0x970] sm:$0xf0] }
 0x1bb   :  { %v8023_v33 = vld [vmem:[#allocation3 + $0xba4] sm:$0xf]  ;;  %v6837_v36 = vld [vmem:[#allocation3 + $0xbb0] sm:$0xf0] }
 0x1bc   :  { %4045 = vmatpush.bf16.msra.mxu0 %v5896_v45  ;;  %4058 = vmatpush.bf16.msra.mxu1 %v6024_v46  ;;  %v6245_v45 = vld [vmem:[#allocation3 + $0x710] sm:$0xf0]  ;;  %v6472_v46 = vor.u32 %v7931_v31, %v6469_v32  ;;  %v7991_v31 = vld [vmem:[#allocation3 + $0xaa4] sm:$0xf] }
 0x1bd   :  { %4069 = vmatpush.bf16.msra.mxu2 %v6184_v50  ;;  %4082 = vmatpush.bf16.msra.mxu3 %v6312_v51  ;;  %v6453_v50 = vld [vmem:[#allocation3 + $0x8b0] sm:$0xf0]  ;;  %v7959_v51 = vld [vmem:[#allocation3 + $0x9a4] sm:$0xf] }
 0x1be   :  { %v6456_v28 = vor.u32 %v7927_v48, %v6453_v50  ;;  %v6584_v63 = vor.u32 %v7959_v51, %v6581_v52  ;;  %v6709_v32 = vld [vmem:[#allocation3 + $0xab0] sm:$0xf0]  ;;  %v7947_v48 = vld [vmem:[#allocation3 + $0x944] sm:$0xf] }
 0x1bf   :  { %v6533_v50 = vld [vmem:[#allocation3 + $0x950] sm:$0xf0]  ;;  %v7987_v51 = vld [vmem:[#allocation3 + $0xa84] sm:$0xf] }
 0x1c0   :  { %4046 = vmatpush.bf16.msra.mxu0 %v5880_v60  ;;  %4059 = vmatpush.bf16.msra.mxu1 %v6008_v61  ;;  %v6120_v60 = vor.u32 %v7843_v39, %v6117_v43  ;;  %v6248_v61 = vor.u32 %v7875_v44, %v6245_v45  ;;  %v6424_v39 = vor.u32 %v7919_v23, %v6421_v24  ;;  %v7915_v44 = vld [vmem:[#allocation3 + $0x844] sm:$0xf]  ;;  %v6405_v45 = vld [vmem:[#allocation3 + $0x850] sm:$0xf0] }
 0x1c1   :  { %4070 = vmatpush.bf16.msra.mxu2 %v6168_v1  ;;  %4083 = vmatpush.bf16.msra.mxu3 %v6296_v4  ;;  %v7923_v4 = vld [vmem:[#allocation3 + $0x884] sm:$0xf]  ;;  %v6693_v52 = vld [vmem:[#allocation3 + $0xa90] sm:$0xf0]  ;;  %v6408_v55 = vor.u32 %v7915_v44, %v6405_v45  ;;  %v6536_v58 = vor.u32 %v7947_v48, %v6533_v50 }
 0x1c2   :  { %v7911_v59 = vld [vmem:[#allocation3 + $0x824] sm:$0xf]  ;;  %v6645_v48 = vld [vmem:[#allocation3 + $0xa30] sm:$0xf0] }
 0x1c4   :  { %4047 = vmatpush.bf16.msra.mxu0 %v5864_v19  ;;  %4060 = vmatpush.bf16.msra.mxu1 %v5992_v20  ;;  %v3789_v0 = vpop.f32.mrf.mxu0  ;;  %v3802_v1 = vpop.f32.mrf.mxu1  ;;  %v6853_v19 = vld [vmem:[#allocation3 + $0xbd0] sm:$0xf0] }
 0x1c5   :  { %4071 = vmatpush.bf16.msra.mxu2 %v6152_v21  ;;  %4084 = vmatpush.bf16.msra.mxu3 %v6280_v22  ;;  %v3790_v11 = vadd.f32 %v3789_v0, %v1212_v54  ;;  %v6440_v21 = vor.u32 %v7923_v4, %v6437_v5  ;;  %v6568_v22 = vor.u32 %v7955_v12, %v6565_v13  ;;  %v6821_v54 = vld [vmem:[#allocation3 + $0xb90] sm:$0xf0] }
 0x1c6   :  { %v6517_v0 = vld [vmem:[#allocation3 + $0x930] sm:$0xf0] }
 0x1c7   :  { %4048 = vmatmul.bf16.vlgmr.msra.gmra.mxu0 %v8694_v62  ;;  %4061 = vmatmul.bf16.vlgmr.msra.gmra.mxu1 %v8696_v49  ;;  %v3803_v20 = vadd.f32 %v3802_v1, %v3790_v11  ;;  %v7983_v1 = vld [vmem:[#allocation3 + $0xa64] sm:$0xf]  ;;  %v6805_v11 = vld [vmem:[#allocation3 + $0xb70] sm:$0xf0] }
 0x1c8   :  { %4092 = vmatpush.bf16.msrb.mxu0 %v6488_v25  ;;  %4105 = vmatpush.bf16.msrb.mxu1 %v6616_v29  ;;  %v6728_v25 = vor.u32 %v7995_v16, %v6725_v17  ;;  %v6856_v29 = vor.u32 %v8027_v18, %v6853_v19  ;;  %v7907_v18 = vld [vmem:[#allocation3 + $0x804] sm:$0xf]  ;;  %v6373_v19 = vld [vmem:[#allocation3 + $0x810] sm:$0xf0] }
 0x1c9   :  { %4072 = vmatpush.bf16.msra.mxu2 %v6136_v41  ;;  %4085 = vmatpush.bf16.msra.mxu3 %v6264_v42  ;;  %v6552_v41 = vor.u32 %v7951_v30, %v6549_v7  ;;  %v7979_v30 = vld [vmem:[#allocation3 + $0xa44] sm:$0xf]  ;;  %v6661_v7 = vld [vmem:[#allocation3 + $0xa50] sm:$0xf0] }
 0x1ca   :  { %v6664_v44 = vor.u32 %v7979_v30, %v6661_v7 }
 0x1cc   :  { %4093 = vmatpush.bf16.msrb.mxu0 %v6472_v46  ;;  %4106 = vmatpush.bf16.msrb.mxu1 %v6600_v47  ;;  %v3791_v42 = vpop.f32.mrf.mxu0  ;;  %v3804_v43 = vpop.f32.mrf.mxu1  ;;  %v6712_v46 = vor.u32 %v7991_v31, %v6709_v32  ;;  %v6840_v47 = vor.u32 %v8023_v33, %v6837_v36  ;;  %v8011_v31 = vld [vmem:[#allocation3 + $0xb44] sm:$0xf]  ;;  %v6789_v32 = vld [vmem:[#allocation3 + $0xb50] sm:$0xf0] }
 0x1cd   :  { %4073 = vmatpush.bf16.msra.mxu2 %v6120_v60  ;;  %4086 = vmatpush.bf16.msra.mxu3 %v6248_v61  ;;  %v6389_v60 = vld [vmem:[#allocation3 + $0x830] sm:$0xf0]  ;;  %v6696_v61 = vor.u32 %v7987_v51, %v6693_v52  ;;  %v6376_v42 = vor.u32 %v7907_v18, %v6373_v19  ;;  %v6792_v45 = vor.u32 %v8011_v31, %v6789_v32  ;;  %v8127_v19 = vld [vmem:[#allocation3 + $0xee4] sm:$0xf] }
 0x1ce   :  { %v6392_v13 = vor.u32 %v7911_v59, %v6389_v60  ;;  %v6997_v36 = vld [vmem:[#allocation3 + $0xcf0] sm:$0xf0]  ;;  %v8091_v60 = vld [vmem:[#allocation3 + $0xdc4] sm:$0xf] }
 0x1cf   :  { %v6981_v59 = vld [vmem:[#allocation3 + $0xcd0] sm:$0xf0]  ;;  %v8051_v32 = vld [vmem:[#allocation3 + $0xc84] sm:$0xf] }
 0x1d0   :  { %4094 = vmatpush.bf16.msrb.mxu0 %v6456_v28  ;;  %4107 = vmatpush.bf16.msrb.mxu1 %v6584_v63  ;;  %v6824_v28 = vor.u32 %v8019_v53, %v6821_v54  ;;  %v7943_v63 = vld [vmem:[#allocation3 + $0x924] sm:$0xf]  ;;  %v7093_v18 = vld [vmem:[#allocation3 + $0xdb0] sm:$0xf0] }
 0x1d1   :  { %4118 = vmatpush.bf16.msrb.mxu2 %v6744_v6  ;;  %4131 = vmatpush.bf16.msrb.mxu3 %v6872_v10  ;;  %v6677_v6 = vld [vmem:[#allocation3 + $0xa70] sm:$0xf0]  ;;  %v8015_v10 = vld [vmem:[#allocation3 + $0xb64] sm:$0xf]  ;;  %v6520_v16 = vor.u32 %v7943_v63, %v6517_v0 }
 0x1d2   :  { %4074 = vmatmul.bf16.vlgmr.msra.gmra.mxu2 %v8704_v37  ;;  %4087 = vmatmul.bf16.vlgmr.msra.gmra.mxu3 %v8706_v38  ;;  %v3815_v4 = vpop.f32.mrf.mxu2  ;;  %v3828_v5 = vpop.f32.mrf.mxu3  ;;  %v6680_v24 = vor.u32 %v7983_v1, %v6677_v6  ;;  %v8007_v54 = vld [vmem:[#allocation3 + $0xb24] sm:$0xf] }
 0x1d3   :  { %v3816_v12 = vadd.f32 %v3815_v4, %v3803_v20  ;;  %v8063_v20 = vld [vmem:[#allocation3 + $0xce4] sm:$0xf] }
 0x1d4   :  { %4095 = vmatpush.bf16.msrb.mxu0 %v6440_v21  ;;  %4108 = vmatpush.bf16.msrb.mxu1 %v6568_v22  ;;  %v3841_v17 = vpop.f32.mrf.mxu0  ;;  %v7939_v21 = vld [vmem:[#allocation3 + $0x904] sm:$0xf]  ;;  %v3854_v22 = vpop.f32.mrf.mxu1  ;;  %v7000_v50 = vor.u32 %v8063_v20, %v6997_v36  ;;  %v6949_v20 = vld [vmem:[#allocation3 + $0xc90] sm:$0xf0] }
 0x1d5   :  { %4119 = vmatpush.bf16.msrb.mxu2 %v6728_v25  ;;  %4132 = vmatpush.bf16.msrb.mxu3 %v6856_v29  ;;  %v3829_v23 = vadd.f32 %v3828_v5, %v3816_v12  ;;  %v6808_v25 = vor.u32 %v8015_v10, %v6805_v11  ;;  %v6501_v29 = vld [vmem:[#allocation3 + $0x910] sm:$0xf0]  ;;  %v7971_v4 = vld [vmem:[#allocation3 + $0xa04] sm:$0xf] }
 0x1d6   :  { %v6504_v43 = vor.u32 %v7939_v21, %v6501_v29  ;;  %v6629_v5 = vld [vmem:[#allocation3 + $0xa10] sm:$0xf0]  ;;  %v8003_v6 = vld [vmem:[#allocation3 + $0xb04] sm:$0xf] }
 0x1d7   :  { %v3842_v33 = vadd.f32 %v3841_v17, %v3829_v23  ;;  %v6757_v12 = vld [vmem:[#allocation3 + $0xb10] sm:$0xf0]  ;;  %v8087_v17 = vld [vmem:[#allocation3 + $0xda4] sm:$0xf] }
 0x1d8   :  { %4096 = vmatpush.bf16.msrb.mxu0 %v6424_v39  ;;  %4109 = vmatpush.bf16.msrb.mxu1 %v6552_v41  ;;  %v8095_v39 = vld [vmem:[#allocation3 + $0xde4] sm:$0xf]  ;;  %v7125_v41 = vld [vmem:[#allocation3 + $0xdf0] sm:$0xf0]  ;;  %v7096_v30 = vor.u32 %v8087_v17, %v7093_v18 }
 0x1d9   :  { %4120 = vmatpush.bf16.msrb.mxu2 %v6712_v46  ;;  %4133 = vmatpush.bf16.msrb.mxu3 %v6840_v47  ;;  %v3855_v46 = vadd.f32 %v3854_v22, %v3842_v33  ;;  %v7975_v47 = vld [vmem:[#allocation3 + $0xa24] sm:$0xf]  ;;  %v7128_v51 = vor.u32 %v8095_v39, %v7125_v41  ;;  %v7253_v21 = vld [vmem:[#allocation3 + $0xef0] sm:$0xf0] }
 0x1da   :  { %v3817_v52 = vpop.f32.mrf.mxu2  ;;  %v3830_v53 = vpop.f32.mrf.mxu3  ;;  %v6648_v0 = vor.u32 %v7975_v47, %v6645_v48  ;;  %v8159_v22 = vld [vmem:[#allocation3 + $0xfe4] sm:$0xf]  ;;  %v7381_v23 = vld [vmem:[#allocation3 + $0xff0] sm:$0xf0]  ;;  %v7256_v33 = vor.u32 %v8127_v19, %v7253_v21 }
 0x1db   :  { %v7384_v36 = vor.u32 %v8159_v22, %v7381_v23  ;;  %v8083_v41 = vld [vmem:[#allocation3 + $0xd84] sm:$0xf]  ;;  %v7365_v47 = vld [vmem:[#allocation3 + $0xfd0] sm:$0xf0]  ;;  %v6952_v52 = vor.u32 %v8051_v32, %v6949_v20 }
 0x1dc   :  { %4097 = vmatpush.bf16.msrb.mxu0 %v6408_v55  ;;  %4110 = vmatpush.bf16.msrb.mxu1 %v6536_v58  ;;  %v6773_v55 = vld [vmem:[#allocation3 + $0xb30] sm:$0xf0]  ;;  %v8059_v58 = vld [vmem:[#allocation3 + $0xcc4] sm:$0xf]  ;;  %v3856_v63 = vpop.f32.mrf.mxu1 }
 0x1dd   :  { %4121 = vmatpush.bf16.msrb.mxu2 %v6696_v61  ;;  %4134 = vmatpush.bf16.msrb.mxu3 %v6824_v28  ;;  %v7109_v61 = vld [vmem:[#allocation3 + $0xdd0] sm:$0xf0]  ;;  %v3843_v28 = vpop.f32.mrf.mxu0  ;;  %v6776_v1 = vor.u32 %v8007_v54, %v6773_v55  ;;  %v6984_v10 = vor.u32 %v8059_v58, %v6981_v59  ;;  %v8047_v54 = vld [vmem:[#allocation3 + $0xc64] sm:$0xf] }
 0x1de   :  { %v7112_v11 = vor.u32 %v8091_v60, %v7109_v61  ;;  %v6933_v55 = vld [vmem:[#allocation3 + $0xc70] sm:$0xf0]  ;;  %v8079_v60 = vld [vmem:[#allocation3 + $0xd64] sm:$0xf] }
 0x1df   :  { %v7061_v61 = vld [vmem:[#allocation3 + $0xd70] sm:$0xf0]  ;;  %v8119_v28 = vld [vmem:[#allocation3 + $0xea4] sm:$0xf] }
 0x1e0   :  { %4098 = vmatpush.bf16.msrb.mxu0 %v6392_v13  ;;  %4111 = vmatpush.bf16.msrb.mxu1 %v6520_v16  ;;  %v8055_v13 = vld [vmem:[#allocation3 + $0xca4] sm:$0xf]  ;;  %v6965_v16 = vld [vmem:[#allocation3 + $0xcb0] sm:$0xf0] }
 0x1e1   :  { %4122 = vmatpush.bf16.msrb.mxu2 %v6680_v24  ;;  %4135 = vmatpush.bf16.msrb.mxu3 %v6808_v25  ;;  %v6632_v24 = vor.u32 %v7971_v4, %v6629_v5  ;;  %v6760_v25 = vor.u32 %v8003_v6, %v6757_v12  ;;  %v6968_v29 = vor.u32 %v8055_v13, %v6965_v16  ;;  %v7221_v63 = vld [vmem:[#allocation3 + $0xeb0] sm:$0xf0]  ;;  %v8043_v12 = vld [vmem:[#allocation3 + $0xc44] sm:$0xf] }
 0x1e2   :  { %v3867_v7 = vpop.f32.mrf.mxu2  ;;  %v3880_v31 = vpop.f32.mrf.mxu3  ;;  %v6936_v5 = vor.u32 %v8047_v54, %v6933_v55  ;;  %v7064_v6 = vor.u32 %v8079_v60, %v7061_v61  ;;  %v6917_v13 = vld [vmem:[#allocation3 + $0xc50] sm:$0xf0]  ;;  %v7224_v16 = vor.u32 %v8119_v28, %v7221_v63  ;;  %v8075_v18 = vld [vmem:[#allocation3 + $0xd44] sm:$0xf]  ;;  %v5467_v63 = vld [vmem:[#allocation3 + $0xe8] sm:$0xf] }
 0x1e3   :  { %v3868_v39 = vadd.f32 %v3867_v7, %v3855_v46  ;;  %v7045_v19 = vld [vmem:[#allocation3 + $0xd50] sm:$0xf0]  ;;  %v8115_v21 = vld [vmem:[#allocation3 + $0xe84] sm:$0xf] }
 0x1e4   :  { %4099 = vmatpush.bf16.msrb.mxu0 %v6376_v42  ;;  %4112 = vmatpush.bf16.msrb.mxu1 %v6504_v43  ;;  %v7077_v42 = vld [vmem:[#allocation3 + $0xd90] sm:$0xf0]  ;;  %v8123_v43 = vld [vmem:[#allocation3 + $0xec4] sm:$0xf]  ;;  %v7048_v7 = vor.u32 %v8075_v18, %v7045_v19 }
 0x1e5   :  { %4123 = vmatpush.bf16.msrb.mxu2 %v6664_v44  ;;  %4136 = vmatpush.bf16.msrb.mxu3 %v6792_v45  ;;  %v7237_v44 = vld [vmem:[#allocation3 + $0xed0] sm:$0xf0]  ;;  %v8155_v45 = vld [vmem:[#allocation3 + $0xfc4] sm:$0xf]  ;;  %v3893_v48 = vpop.f32.mrf.mxu0  ;;  %v7080_v53 = vor.u32 %v8083_v41, %v7077_v42 }
 0x1e6   :  { %v7240_v46 = vor.u32 %v8123_v43, %v7237_v44  ;;  %v7368_v58 = vor.u32 %v8155_v45, %v7365_v47  ;;  %v7205_v22 = vld [vmem:[#allocation3 + $0xe90] sm:$0xf0]  ;;  %v8147_v23 = vld [vmem:[#allocation3 + $0xf84] sm:$0xf] }
 0x1e7   :  { %4100 = vmatmul.bf16.vlgmr.msrb.gmra.mxu0 %v8712_v14  ;;  %4113 = vmatmul.bf16.vlgmr.msrb.gmra.mxu1 %v8714_v15  ;;  %v6901_v32 = vld [vmem:[#allocation3 + $0xc30] sm:$0xf0]  ;;  %v7208_v20 = vor.u32 %v8115_v21, %v7205_v22  ;;  %v8111_v41 = vld [vmem:[#allocation3 + $0xe64] sm:$0xf]  ;;  %v5451_v22 = vld [vmem:[#allocation3 + $0xc8] sm:$0xf] }
 0x1e8   :  { %4144 = vmatpush.bf16.msra.mxu0 %v7000_v50  ;;  %4157 = vmatpush.bf16.msra.mxu1 %v7128_v51  ;;  %v3906_v50 = vpop.f32.mrf.mxu1  ;;  %v3881_v51 = vadd.f32 %v3880_v31, %v3868_v39  ;;  %v8039_v31 = vld [vmem:[#allocation3 + $0xc24] sm:$0xf]  ;;  %v7029_v39 = vld [vmem:[#allocation3 + $0xd30] sm:$0xf0] }
 0x1e9   :  { %4124 = vmatpush.bf16.msrb.mxu2 %v6648_v0  ;;  %4137 = vmatpush.bf16.msrb.mxu3 %v6776_v1  ;;  %v8151_v0 = vld [vmem:[#allocation3 + $0xfa4] sm:$0xf]  ;;  %v7349_v1 = vld [vmem:[#allocation3 + $0xfb0] sm:$0xf0]  ;;  %v6904_v45 = vor.u32 %v8039_v31, %v6901_v32 }
 0x1ea   :  { %v3894_v59 = vadd.f32 %v3893_v48, %v3881_v51  ;;  %v7352_v17 = vor.u32 %v8151_v0, %v7349_v1  ;;  %v7189_v42 = vld [vmem:[#allocation3 + $0xe70] sm:$0xf0]  ;;  %v8143_v43 = vld [vmem:[#allocation3 + $0xf64] sm:$0xf]  ;;  %v7682_v0 = vld [vmem:[#allocation3 + $0xf4] sm:$0xf0] }
 0x1eb   :  { %v7317_v44 = vld [vmem:[#allocation3 + $0xf70] sm:$0xf0]  ;;  %v8035_v48 = vld [vmem:[#allocation3 + $0xc04] sm:$0xf]  ;;  %v5595_v1 = vld [vmem:[#allocation3 + $0x1e8] sm:$0xf]  ;;  %v5468_v18 = vor.u32 %v7682_v0, %v5467_v63 }
 0x1ec   :  { %4145 = vmatpush.bf16.msra.mxu0 %v6984_v10  ;;  %4158 = vmatpush.bf16.msra.mxu1 %v7112_v11  ;;  %v3907_v4 = vadd.f32 %v3906_v50, %v3894_v59  ;;  %v3869_v10 = vpop.f32.mrf.mxu2  ;;  %v3882_v11 = vpop.f32.mrf.mxu3  ;;  %v6885_v50 = vld [vmem:[#allocation3 + $0xc10] sm:$0xf0]  ;;  %v8067_v51 = vld [vmem:[#allocation3 + $0xd04] sm:$0xf]  ;;  %v5707_v63 = vld [vmem:[#allocation3 + $0x2c8] sm:$0xf] }
 0x1ed   :  { %4125 = vmatpush.bf16.msrb.mxu2 %v6632_v24  ;;  %4138 = vmatpush.bf16.msrb.mxu3 %v6760_v25  ;;  %v7333_v24 = vld [vmem:[#allocation3 + $0xf90] sm:$0xf0]  ;;  %v3895_v25 = vpop.f32.mrf.mxu0  ;;  %v8139_v61 = vld [vmem:[#allocation3 + $0xf44] sm:$0xf]  ;;  %v6888_v10 = vor.u32 %v8035_v48, %v6885_v50  ;;  %v7746_v48 = vld [vmem:[#allocation3 + $0x2f4] sm:$0xf0] }
 0x1ee   :  { %v7173_v59 = vld [vmem:[#allocation3 + $0xe50] sm:$0xf0]  ;;  %v8135_v19 = vld [vmem:[#allocation3 + $0xf24] sm:$0xf]  ;;  %v7710_v25 = vld [vmem:[#allocation3 + $0x1d4] sm:$0xf0] }
 0x1ef   :  { %v7301_v28 = vld [vmem:[#allocation3 + $0xf50] sm:$0xf0]  ;;  %v8131_v32 = vld [vmem:[#allocation3 + $0xf04] sm:$0xf]  ;;  %v5851_v50 = vld [vmem:[#allocation3 + $0x3e8] sm:$0xf] }
 0x1f0   :  { %4146 = vmatpush.bf16.msra.mxu0 %v6968_v29  ;;  %4159 = vmatpush.bf16.msra.mxu1 %v7096_v30  ;;  %v3908_v29 = vpop.f32.mrf.mxu1  ;;  %v6920_v30 = vor.u32 %v8043_v12, %v6917_v13  ;;  %v7304_v13 = vor.u32 %v8139_v61, %v7301_v28  ;;  %v7285_v21 = vld [vmem:[#allocation3 + $0xf30] sm:$0xf0]  ;;  %v5547_v61 = vld [vmem:[#allocation3 + $0x188] sm:$0xf]  ;;  %v7702_v28 = vld [vmem:[#allocation3 + $0x194] sm:$0xf0] }
 0x1f1   :  { %4170 = vmatpush.bf16.msra.mxu2 %v7256_v33  ;;  %4183 = vmatpush.bf16.msra.mxu3 %v7384_v36  ;;  %v7336_v33 = vor.u32 %v8147_v23, %v7333_v24  ;;  %v8071_v36 = vld [vmem:[#allocation3 + $0xd24] sm:$0xf]  ;;  %v7678_v23 = vld [vmem:[#allocation3 + $0xd4] sm:$0xf0]  ;;  %v5579_v24 = vld [vmem:[#allocation3 + $0x1c8] sm:$0xf] }
 0x1f2   :  { %4126 = vmatmul.bf16.vlgmr.msrb.gmra.mxu2 %v8718_v56  ;;  %4139 = vmatmul.bf16.vlgmr.msrb.gmra.mxu3 %v8720_v57  ;;  %v7032_v47 = vor.u32 %v8071_v36, %v7029_v39  ;;  %v7141_v31 = vld [vmem:[#allocation3 + $0xe10] sm:$0xf0]  ;;  %v5452_v36 = vor.u32 %v7678_v23, %v5451_v22  ;;  %v5580_v39 = vor.u32 %v7710_v25, %v5579_v24  ;;  %v5531_v22 = vld [vmem:[#allocation3 + $0x168] sm:$0xf]  ;;  %v7698_v23 = vld [vmem:[#allocation3 + $0x174] sm:$0xf0] }
 0x1f3   :  { %v5691_v24 = vld [vmem:[#allocation3 + $0x2a8] sm:$0xf]  ;;  %v7738_v25 = vld [vmem:[#allocation3 + $0x2b4] sm:$0xf0] }
 0x1f4   :  { %4147 = vmatpush.bf16.msra.mxu0 %v6952_v52  ;;  %4160 = vmatpush.bf16.msra.mxu1 %v7080_v53  ;;  %v7192_v52 = vor.u32 %v8111_v41, %v7189_v42  ;;  %v7320_v53 = vor.u32 %v8143_v43, %v7317_v44  ;;  %v7269_v41 = vld [vmem:[#allocation3 + $0xf10] sm:$0xf0]  ;;  %v5435_v42 = vld [vmem:[#allocation3 + $0xa8] sm:$0xf]  ;;  %v7674_v43 = vld [vmem:[#allocation3 + $0xb4] sm:$0xf0] }
 0x1f5   :  { %4171 = vmatpush.bf16.msra.mxu2 %v7240_v46  ;;  %4184 = vmatpush.bf16.msra.mxu3 %v7368_v58  ;;  %v3919_v54 = vpop.f32.mrf.mxu2  ;;  %v3932_v55 = vpop.f32.mrf.mxu3  ;;  %v7013_v46 = vld [vmem:[#allocation3 + $0xd10] sm:$0xf0]  ;;  %v8107_v58 = vld [vmem:[#allocation3 + $0xe44] sm:$0xf]  ;;  %v5563_v44 = vld [vmem:[#allocation3 + $0x1a8] sm:$0xf] }
 0x1f6   :  { %v3920_v60 = vadd.f32 %v3919_v54, %v3907_v4  ;;  %v7016_v11 = vor.u32 %v8067_v51, %v7013_v46  ;;  %v7176_v12 = vor.u32 %v8107_v58, %v7173_v59  ;;  %v7778_v51 = vld [vmem:[#allocation3 + $0x3f4] sm:$0xf0]  ;;  %v5436_v54 = vor.u32 %v7674_v43, %v5435_v42  ;;  %v5419_v46 = vld [vmem:[#allocation3 + $0x88] sm:$0xf] }
 0x1f7   :  { %v7670_v58 = vld [vmem:[#allocation3 + $0x94] sm:$0xf0]  ;;  %v5803_v43 = vld [vmem:[#allocation3 + $0x388] sm:$0xf] }
 0x1f8   :  { %4148 = vmatpush.bf16.msra.mxu0 %v6936_v5  ;;  %4161 = vmatpush.bf16.msra.mxu1 %v7064_v6  ;;  %v7714_v5 = vld [vmem:[#allocation3 + $0x1f4] sm:$0xf0]  ;;  %v8755_v6 = vadd.f32 %v3932_v55, %v3920_v60  ;;  %v5852_v60 = vor.u32 %v7778_v51, %v5851_v50  ;;  %v5371_v51 = vld [vmem:[#allocation3 + $0x28] sm:$0xf] }
 0x1f9   :  { %4172 = vmatpush.bf16.msra.mxu2 %v7224_v16  ;;  %4185 = vmatpush.bf16.msra.mxu3 %v7352_v17  ;;  %v8103_v16 = vld [vmem:[#allocation3 + $0xe24] sm:$0xf]  ;;  %v7157_v17 = vld [vmem:[#allocation3 + $0xe30] sm:$0xf0]  ;;  %v5596_v4 = vor.u32 %v7714_v5, %v5595_v1  ;;  %v7742_v1 = vld [vmem:[#allocation3 + $0x2d4] sm:$0xf0] }
 0x1fa   :  { %v7160_v29 = vor.u32 %v8103_v16, %v7157_v17  ;;  %v5835_v5 = vld [vmem:[#allocation3 + $0x3c8] sm:$0xf]  ;;  %v5548_v16 = vor.u32 %v7702_v28, %v5547_v61  ;;  %v7734_v42 = vld [vmem:[#allocation3 + $0x294] sm:$0xf0] }
 0x1fb   :  { %v5403_v17 = vld [vmem:[#allocation3 + $0x68] sm:$0xf]  ;;  %v7762_v61 = vld [vmem:[#allocation3 + $0x374] sm:$0xf0] }
 0x1fc   :  { %4149 = vmatpush.bf16.msra.mxu0 %v6920_v30  ;;  %4162 = vmatpush.bf16.msra.mxu1 %v7048_v7  ;;  %v7288_v30 = vor.u32 %v8135_v19, %v7285_v21  ;;  %v8099_v7 = vld [vmem:[#allocation3 + $0xe04] sm:$0xf] }
 0x1fd   :  { %4173 = vmatpush.bf16.msra.mxu2 %v7208_v20  ;;  %4186 = vmatpush.bf16.msra.mxu3 %v7336_v33  ;;  %v3921_v20 = vpop.f32.mrf.mxu2  ;;  %v3934_v33 = vpop.f32.mrf.mxu3 }
 0x1fe   :  { %v5692_v20 = vor.u32 %v7738_v25, %v5691_v24  ;;  %v7810_v24 = vld [vmem:[#allocation3 + $0x4f4] sm:$0xf0]  ;;  %v6107_v25 = vld [vmem:[#allocation3 + $0x5e8] sm:$0xf] }
 0x200   :  { %4150 = vmatpush.bf16.msra.mxu0 %v6904_v45  ;;  %4163 = vmatpush.bf16.msra.mxu1 %v7032_v47  ;;  %v7706_v45 = vld [vmem:[#allocation3 + $0x1b4] sm:$0xf0]  ;;  %v5723_v47 = vld [vmem:[#allocation3 + $0x2e8] sm:$0xf] }
 0x201   :  { %4174 = vmatpush.bf16.msra.mxu2 %v7192_v52  ;;  %4187 = vmatpush.bf16.msra.mxu3 %v7320_v53  ;;  %v7144_v52 = vor.u32 %v8099_v7, %v7141_v31  ;;  %v7272_v53 = vor.u32 %v8131_v32, %v7269_v41  ;;  %v5564_v55 = vor.u32 %v7706_v45, %v5563_v44  ;;  %v5387_v31 = vld [vmem:[#allocation3 + $0x48] sm:$0xf]  ;;  %v7662_v32 = vld [vmem:[#allocation3 + $0x54] sm:$0xf0] }
 0x202   :  { %v5724_v59 = vor.u32 %v7746_v48, %v5723_v47  ;;  %v5532_v7 = vor.u32 %v7698_v23, %v5531_v22  ;;  %v5675_v41 = vld [vmem:[#allocation3 + $0x288] sm:$0xf]  ;;  %v7766_v44 = vld [vmem:[#allocation3 + $0x394] sm:$0xf0]  ;;  %v5388_v48 = vor.u32 %v7662_v32, %v5387_v31 }
 0x203   :  { %v7758_v22 = vld [vmem:[#allocation3 + $0x354] sm:$0xf0]  ;;  %v5979_v23 = vld [vmem:[#allocation3 + $0x4e8] sm:$0xf] }
 0x204   :  { %4151 = vmatpush.bf16.msra.mxu0 %v6888_v10  ;;  %4164 = vmatpush.bf16.msra.mxu1 %v7016_v11  ;;  %v3945_v0 = vpop.f32.mrf.mxu0  ;;  %v7774_v10 = vld [vmem:[#allocation3 + $0x3d4] sm:$0xf0]  ;;  %v3958_v11 = vpop.f32.mrf.mxu1 }
 0x205   :  { %4175 = vmatpush.bf16.msra.mxu2 %v7176_v12  ;;  %4188 = vmatpush.bf16.msra.mxu3 %v7304_v13  ;;  %v3946_v12 = vadd.f32 %v3945_v0, %v8755_v6  ;;  %v5420_v13 = vor.u32 %v7670_v58, %v5419_v46  ;;  %v5836_v19 = vor.u32 %v7774_v10, %v5835_v5  ;;  %v5819_v6 = vld [vmem:[#allocation3 + $0x3a8] sm:$0xf]  ;;  %v7690_v46 = vld [vmem:[#allocation3 + $0x134] sm:$0xf0] }
 0x206   :  { %v5659_v58 = vld [vmem:[#allocation3 + $0x268] sm:$0xf] }
 0x207   :  { %4152 = vmatmul.bf16.vlgmr.msra.gmra.mxu0 %v8728_v26  ;;  %4165 = vmatmul.bf16.vlgmr.msra.gmra.mxu1 %v8730_v27  ;;  %v3959_v21 = vadd.f32 %v3958_v11, %v3946_v12  ;;  %v5355_v0 = vld [vmem:[#allocation3 + $0x8] sm:$0xf] }
 0x208   :  { %4196 = vmatpush.bf16.msrb.mxu0 %v5468_v18  ;;  %4209 = vmatpush.bf16.msrb.mxu1 %v5596_v4  ;;  %v7666_v18 = vld [vmem:[#allocation3 + $0x74] sm:$0xf0]  ;;  %v5708_v4 = vor.u32 %v7742_v1, %v5707_v63  ;;  %v5483_v5 = vld [vmem:[#allocation3 + $0x108] sm:$0xf] }
 0x209   :  { %4176 = vmatpush.bf16.msra.mxu2 %v7160_v29  ;;  %4189 = vmatpush.bf16.msra.mxu3 %v7288_v30  ;;  %v7770_v29 = vld [vmem:[#allocation3 + $0x3b4] sm:$0xf0]  ;;  %v5404_v30 = vor.u32 %v7666_v18, %v5403_v17  ;;  %v5643_v17 = vld [vmem:[#allocation3 + $0x248] sm:$0xf] }
 0x20a   :  { %v5820_v33 = vor.u32 %v7770_v29, %v5819_v6  ;;  %v7654_v1 = vld [vmem:[#allocation3 + $0x14] sm:$0xf0] }
 0x20b   :  { %v7726_v18 = vld [vmem:[#allocation3 + $0x254] sm:$0xf0] }
 0x20c   :  { %4197 = vmatpush.bf16.msrb.mxu0 %v5452_v36  ;;  %4210 = vmatpush.bf16.msrb.mxu1 %v5580_v39  ;;  %v5515_v36 = vld [vmem:[#allocation3 + $0x148] sm:$0xf]  ;;  %v7694_v39 = vld [vmem:[#allocation3 + $0x154] sm:$0xf0]  ;;  %v3947_v45 = vpop.f32.mrf.mxu0  ;;  %v3960_v47 = vpop.f32.mrf.mxu1  ;;  %v5644_v31 = vor.u32 %v7726_v18, %v5643_v17 }
 0x20d   :  { %4177 = vmatpush.bf16.msra.mxu2 %v7144_v52  ;;  %4190 = vmatpush.bf16.msra.mxu3 %v7272_v53  ;;  %v5516_v50 = vor.u32 %v7694_v39, %v5515_v36  ;;  %v7658_v52 = vld [vmem:[#allocation3 + $0x34] sm:$0xf0]  ;;  %v5676_v53 = vor.u32 %v7734_v42, %v5675_v41  ;;  %v5980_v36 = vor.u32 %v7810_v24, %v5979_v23  ;;  %v5755_v39 = vld [vmem:[#allocation3 + $0x328] sm:$0xf] }
 0x20e   :  { %v5372_v28 = vor.u32 %v7658_v52, %v5371_v51  ;;  %v7842_v6 = vld [vmem:[#allocation3 + $0x5f4] sm:$0xf0]  ;;  %v5963_v42 = vld [vmem:[#allocation3 + $0x4c8] sm:$0xf] }
 0x20f   :  { %v7754_v41 = vld [vmem:[#allocation3 + $0x334] sm:$0xf0]  ;;  %v5739_v52 = vld [vmem:[#allocation3 + $0x308] sm:$0xf] }
 0x210   :  { %4198 = vmatpush.bf16.msrb.mxu0 %v5436_v54  ;;  %4211 = vmatpush.bf16.msrb.mxu1 %v5564_v55  ;;  %v5804_v54 = vor.u32 %v7766_v44, %v5803_v43  ;;  %v5499_v55 = vld [vmem:[#allocation3 + $0x128] sm:$0xf]  ;;  %v7806_v43 = vld [vmem:[#allocation3 + $0x4d4] sm:$0xf0] }
 0x211   :  { %4222 = vmatpush.bf16.msrb.mxu2 %v5724_v59  ;;  %4235 = vmatpush.bf16.msrb.mxu3 %v5852_v60  ;;  %v7730_v59 = vld [vmem:[#allocation3 + $0x274] sm:$0xf0]  ;;  %v5787_v60 = vld [vmem:[#allocation3 + $0x368] sm:$0xf]  ;;  %v5500_v63 = vor.u32 %v7690_v46, %v5499_v55  ;;  %v5964_v55 = vor.u32 %v7806_v43, %v5963_v42 }
 0x212   :  { %4178 = vmatmul.bf16.vlgmr.msra.gmra.mxu2 %v8734_v8  ;;  %4191 = vmatmul.bf16.vlgmr.msra.gmra.mxu3 %v8736_v9  ;;  %v5660_v10 = vor.u32 %v7730_v59, %v5659_v58  ;;  %v5788_v11 = vor.u32 %v7762_v61, %v5787_v60  ;;  %v6091_v44 = vld [vmem:[#allocation3 + $0x5c8] sm:$0xf]  ;;  %v7838_v45 = vld [vmem:[#allocation3 + $0x5d4] sm:$0xf0] }
 0x213   :  { %v7718_v51 = vld [vmem:[#allocation3 + $0x214] sm:$0xf0]  ;;  %v6092_v46 = vor.u32 %v7838_v45, %v6091_v44  ;;  %v5947_v59 = vld [vmem:[#allocation3 + $0x4a8] sm:$0xf] }
 0x214   :  { %4199 = vmatpush.bf16.msrb.mxu0 %v5420_v13  ;;  %4212 = vmatpush.bf16.msrb.mxu1 %v5548_v16  ;;  %v7686_v16 = vld [vmem:[#allocation3 + $0x114] sm:$0xf0]  ;;  %v6075_v61 = vld [vmem:[#allocation3 + $0x5a8] sm:$0xf] }
 0x215   :  { %4223 = vmatpush.bf16.msrb.mxu2 %v5708_v4  ;;  %4236 = vmatpush.bf16.msrb.mxu3 %v5836_v19  ;;  %v3971_v12 = vpop.f32.mrf.mxu2  ;;  %v3984_v13 = vpop.f32.mrf.mxu3  ;;  %v5771_v19 = vld [vmem:[#allocation3 + $0x348] sm:$0xf]  ;;  %v7750_v58 = vld [vmem:[#allocation3 + $0x314] sm:$0xf0] }
 0x216   :  { %v3972_v4 = vadd.f32 %v3971_v12, %v3959_v21  ;;  %v5772_v32 = vor.u32 %v7758_v22, %v5771_v19  ;;  %v6108_v21 = vor.u32 %v7842_v6, %v6107_v25  ;;  %v7802_v60 = vld [vmem:[#allocation3 + $0x4b4] sm:$0xf0]  ;;  %v1213_v12 = vperm.slane %v8744_v40, 1  ;;  %v5931_v17 = vld [vmem:[#allocation3 + $0x488] sm:$0xf] }
 0x217   :  { %v7798_v18 = vld [vmem:[#allocation3 + $0x494] sm:$0xf0]  ;;  %v6059_v22 = vld [vmem:[#allocation3 + $0x588] sm:$0xf] }
 0x218   :  { %4200 = vmatpush.bf16.msrb.mxu0 %v5404_v30  ;;  %4213 = vmatpush.bf16.msrb.mxu1 %v5532_v7  ;;  %v8762_v29 = vadd.f32 %v3984_v13, %v3972_v4  ;;  %v5356_v30 = vor.u32 %v7654_v1, %v5355_v0  ;;  %v5484_v7 = vor.u32 %v7686_v16, %v5483_v5  ;;  %v7874_v0 = vld [vmem:[#allocation3 + $0x6f4] sm:$0xf0]  ;;  %v6363_v1 = vld [vmem:[#allocation3 + $0x7e8] sm:$0xf] }
 0x219   :  { %4224 = vmatpush.bf16.msrb.mxu2 %v5692_v20  ;;  %4237 = vmatpush.bf16.msrb.mxu3 %v5820_v33  ;;  %v5627_v20 = vld [vmem:[#allocation3 + $0x228] sm:$0xf]  ;;  %v7722_v33 = vld [vmem:[#allocation3 + $0x234] sm:$0xf0]  ;;  %v5948_v13 = vor.u32 %v7802_v60, %v5947_v59  ;;  %v5932_v40 = vor.u32 %v7798_v18, %v5931_v17 }
 0x21a   :  { %v5628_v47 = vor.u32 %v7722_v33, %v5627_v20  ;;  %v7906_v5 = vld [vmem:[#allocation3 + $0x7f4] sm:$0xf0]  ;;  %v6219_v24 = vld [vmem:[#allocation3 + $0x6c8] sm:$0xf] }
 0x21b   :  { %v6364_v19 = vor.u32 %v7906_v5, %v6363_v1  ;;  %v7830_v23 = vld [vmem:[#allocation3 + $0x594] sm:$0xf0]  ;;  %v5915_v33 = vld [vmem:[#allocation3 + $0x468] sm:$0xf] }
 0x21c   :  { %4201 = vmatpush.bf16.msrb.mxu0 %v5388_v48  ;;  %4214 = vmatpush.bf16.msrb.mxu1 %v5516_v50  ;;  %v5756_v48 = vor.u32 %v7754_v41, %v5755_v39  ;;  %v5611_v50 = vld [vmem:[#allocation3 + $0x208] sm:$0xf]  ;;  %v6060_v20 = vor.u32 %v7830_v23, %v6059_v22  ;;  %v7826_v43 = vld [vmem:[#allocation3 + $0x574] sm:$0xf0] }
 0x21d   :  { %4225 = vmatpush.bf16.msrb.mxu2 %v5676_v53  ;;  %4238 = vmatpush.bf16.msrb.mxu3 %v5804_v54  ;;  %v3973_v53 = vpop.f32.mrf.mxu2  ;;  %v3986_v54 = vpop.f32.mrf.mxu3  ;;  %v6043_v42 = vld [vmem:[#allocation3 + $0x568] sm:$0xf]  ;;  %v7866_v45 = vld [vmem:[#allocation3 + $0x6b4] sm:$0xf0] }
 0x21e   :  { %v6203_v44 = vld [vmem:[#allocation3 + $0x6a8] sm:$0xf]  ;;  %v7790_v53 = vld [vmem:[#allocation3 + $0x454] sm:$0xf0] }
 0x21f   :  { %v6204_v54 = vor.u32 %v7866_v45, %v6203_v44  ;;  %v6187_v59 = vld [vmem:[#allocation3 + $0x688] sm:$0xf]  ;;  %v7818_v17 = vld [vmem:[#allocation3 + $0x534] sm:$0xf0] }
 0x220   :  { %4202 = vmatpush.bf16.msrb.mxu0 %v5372_v28  ;;  %4215 = vmatpush.bf16.msrb.mxu1 %v5500_v63  ;;  %v7834_v28 = vld [vmem:[#allocation3 + $0x5b4] sm:$0xf0]  ;;  %v6235_v63 = vld [vmem:[#allocation3 + $0x6e8] sm:$0xf] }
 0x221   :  { %4226 = vmatpush.bf16.msrb.mxu2 %v5660_v10  ;;  %4239 = vmatpush.bf16.msrb.mxu3 %v5788_v11  ;;  %v5612_v10 = vor.u32 %v7718_v51, %v5611_v50  ;;  %v5740_v11 = vor.u32 %v7750_v58, %v5739_v52  ;;  %v6076_v16 = vor.u32 %v7834_v28, %v6075_v61  ;;  %v5899_v52 = vld [vmem:[#allocation3 + $0x448] sm:$0xf]  ;;  %v7822_v58 = vld [vmem:[#allocation3 + $0x554] sm:$0xf0] }
 0x222   :  { %v6236_v4 = vor.u32 %v7874_v0, %v6235_v63  ;;  %v6044_v51 = vor.u32 %v7826_v43, %v6043_v42  ;;  %v7862_v28 = vld [vmem:[#allocation3 + $0x694] sm:$0xf0]  ;;  %v6315_v63 = vld [vmem:[#allocation3 + $0x788] sm:$0xf]  ;;  %v5900_v1 = vor.u32 %v7790_v53, %v5899_v52 }
 0x223   :  { %v7894_v0 = vld [vmem:[#allocation3 + $0x794] sm:$0xf0]  ;;  %v6171_v18 = vld [vmem:[#allocation3 + $0x668] sm:$0xf] }
 0x224   :  { %4203 = vmatpush.bf16.msrb.mxu0 %v5356_v30  ;;  %4216 = vmatpush.bf16.msrb.mxu1 %v5484_v7  ;;  %v3997_v25 = vpop.f32.mrf.mxu0  ;;  %v4010_v6 = vpop.f32.mrf.mxu1  ;;  %v7870_v30 = vld [vmem:[#allocation3 + $0x6d4] sm:$0xf0]  ;;  %v6347_v7 = vld [vmem:[#allocation3 + $0x7c8] sm:$0xf] }
 0x225   :  { %4227 = vmatpush.bf16.msrb.mxu2 %v5644_v31  ;;  %4240 = vmatpush.bf16.msrb.mxu3 %v5772_v32  ;;  %v7902_v31 = vld [vmem:[#allocation3 + $0x7d4] sm:$0xf0]  ;;  %v3998_v32 = vadd.f32 %v3997_v25, %v1213_v12  ;;  %v6220_v39 = vor.u32 %v7870_v30, %v6219_v24  ;;  %v6188_v12 = vor.u32 %v7862_v28, %v6187_v59  ;;  %v5867_v25 = vld [vmem:[#allocation3 + $0x408] sm:$0xf] }
 0x226   :  { %v6348_v41 = vor.u32 %v7902_v31, %v6347_v7  ;;  %v7890_v22 = vld [vmem:[#allocation3 + $0x774] sm:$0xf0]  ;;  %v5995_v30 = vld [vmem:[#allocation3 + $0x508] sm:$0xf] }
 0x227   :  { %4204 = vmatmul.bf16.vlgmr.msrb.gmra.mxu0 %v8678_v2  ;;  %4217 = vmatmul.bf16.vlgmr.msrb.gmra.mxu1 %v8680_v3  ;;  %v7886_v42 = vld [vmem:[#allocation3 + $0x754] sm:$0xf0]  ;;  %v6491_v43 = vld [vmem:[#allocation3 + $0x8e8] sm:$0xf] }
 0x228   :  { %4248 = vmatpush.bf16.msra.mxu0 %v5980_v36  ;;  %4261 = vmatpush.bf16.msra.mxu1 %v6108_v21  ;;  %v7794_v36 = vld [vmem:[#allocation3 + $0x474] sm:$0xf0]  ;;  %v4011_v21 = vadd.f32 %v4010_v6, %v3998_v32  ;;  %v6619_v45 = vld [vmem:[#allocation3 + $0x9e8] sm:$0xf] }
 0x229   :  { %4228 = vmatpush.bf16.msrb.mxu2 %v5628_v47  ;;  %4241 = vmatpush.bf16.msrb.mxu3 %v5756_v48  ;;  %v6331_v47 = vld [vmem:[#allocation3 + $0x7a8] sm:$0xf]  ;;  %v7898_v48 = vld [vmem:[#allocation3 + $0x7b4] sm:$0xf0]  ;;  %v5916_v50 = vor.u32 %v7794_v36, %v5915_v33 }
 0x22a   :  { %v7782_v6 = vld [vmem:[#allocation3 + $0x414] sm:$0xf0]  ;;  %v6155_v33 = vld [vmem:[#allocation3 + $0x648] sm:$0xf] }
 0x22b   :  { %v7854_v36 = vld [vmem:[#allocation3 + $0x654] sm:$0xf0]  ;;  %v6603_v28 = vld [vmem:[#allocation3 + $0x9c8] sm:$0xf] }
 0x22c   :  { %4249 = vmatpush.bf16.msra.mxu0 %v5964_v55  ;;  %4262 = vmatpush.bf16.msra.mxu1 %v6092_v46  ;;  %v6332_v55 = vor.u32 %v7898_v48, %v6331_v47  ;;  %v6027_v46 = vld [vmem:[#allocation3 + $0x548] sm:$0xf]  ;;  %v3999_v60 = vpop.f32.mrf.mxu0  ;;  %v4012_v61 = vpop.f32.mrf.mxu1  ;;  %v7938_v44 = vld [vmem:[#allocation3 + $0x8f4] sm:$0xf0]  ;;  %v6156_v52 = vor.u32 %v7854_v36, %v6155_v33 }
 0x22d   :  { %4229 = vmatpush.bf16.msrb.mxu2 %v5612_v10  ;;  %4242 = vmatpush.bf16.msrb.mxu3 %v5740_v11  ;;  %v6028_v5 = vor.u32 %v7822_v58, %v6027_v46  ;;  %v5883_v10 = vld [vmem:[#allocation3 + $0x428] sm:$0xf]  ;;  %v7786_v11 = vld [vmem:[#allocation3 + $0x434] sm:$0xf0]  ;;  %v6492_v46 = vor.u32 %v7938_v44, %v6491_v43 }
 0x22e   :  { %v5884_v23 = vor.u32 %v7786_v11, %v5883_v10  ;;  %v7970_v47 = vld [vmem:[#allocation3 + $0x9f4] sm:$0xf0]  ;;  %v6267_v58 = vld [vmem:[#allocation3 + $0x728] sm:$0xf] }
 0x22f   :  { %v7882_v59 = vld [vmem:[#allocation3 + $0x734] sm:$0xf0]  ;;  %v6475_v60 = vld [vmem:[#allocation3 + $0x8c8] sm:$0xf] }
 0x230   :  { %4250 = vmatpush.bf16.msra.mxu0 %v5948_v13  ;;  %4263 = vmatpush.bf16.msra.mxu1 %v6076_v16  ;;  %v6316_v13 = vor.u32 %v7894_v0, %v6315_v63  ;;  %v6011_v16 = vld [vmem:[#allocation3 + $0x528] sm:$0xf]  ;;  %v7934_v61 = vld [vmem:[#allocation3 + $0x8d4] sm:$0xf0] }
 0x231   :  { %4274 = vmatpush.bf16.msra.mxu2 %v6236_v4  ;;  %4287 = vmatpush.bf16.msra.mxu3 %v6364_v19  ;;  %v7858_v4 = vld [vmem:[#allocation3 + $0x674] sm:$0xf0]  ;;  %v6299_v19 = vld [vmem:[#allocation3 + $0x768] sm:$0xf]  ;;  %v6012_v24 = vor.u32 %v7818_v17, %v6011_v16  ;;  %v6476_v16 = vor.u32 %v7934_v61, %v6475_v60 }
 0x232   :  { %4230 = vmatmul.bf16.vlgmr.msrb.gmra.mxu2 %v8686_v34  ;;  %4243 = vmatmul.bf16.vlgmr.msrb.gmra.mxu3 %v8688_v35  ;;  %v6172_v7 = vor.u32 %v7858_v4, %v6171_v18  ;;  %v6300_v31 = vor.u32 %v7890_v22, %v6299_v19  ;;  %v7966_v63 = vld [vmem:[#allocation3 + $0x9d4] sm:$0xf0]  ;;  %v6123_v11 = vld [vmem:[#allocation3 + $0x608] sm:$0xf] }
 0x233   :  { %v6604_v17 = vor.u32 %v7966_v63, %v6603_v28  ;;  %v7878_v18 = vld [vmem:[#allocation3 + $0x714] sm:$0xf0]  ;;  %v6459_v4 = vld [vmem:[#allocation3 + $0x8a8] sm:$0xf] }
 0x234   :  { %4251 = vmatpush.bf16.msra.mxu0 %v5932_v40  ;;  %4264 = vmatpush.bf16.msra.mxu1 %v6060_v20  ;;  %v7814_v20 = vld [vmem:[#allocation3 + $0x514] sm:$0xf0]  ;;  %v6587_v22 = vld [vmem:[#allocation3 + $0x9a8] sm:$0xf] }
 0x235   :  { %4275 = vmatpush.bf16.msra.mxu2 %v6220_v39  ;;  %4288 = vmatpush.bf16.msra.mxu3 %v6348_v41  ;;  %v4023_v32 = vpop.f32.mrf.mxu2  ;;  %v4036_v40 = vpop.f32.mrf.mxu3  ;;  %v6283_v41 = vld [vmem:[#allocation3 + $0x748] sm:$0xf]  ;;  %v7930_v19 = vld [vmem:[#allocation3 + $0x8b4] sm:$0xf0] }
 0x236   :  { %v4024_v39 = vadd.f32 %v4023_v32, %v4011_v21  ;;  %v6284_v53 = vor.u32 %v7886_v42, %v6283_v41  ;;  %v6620_v21 = vor.u32 %v7970_v47, %v6619_v45  ;;  %v6460_v32 = vor.u32 %v7930_v19, %v6459_v4  ;;  %v7926_v33 = vld [vmem:[#allocation3 + $0x894] sm:$0xf0]  ;;  %v6571_v41 = vld [vmem:[#allocation3 + $0x988] sm:$0xf] }
 0x237   :  { %v7958_v42 = vld [vmem:[#allocation3 + $0x994] sm:$0xf0]  ;;  %v6731_v43 = vld [vmem:[#allocation3 + $0xac8] sm:$0xf] }
 0x238   :  { %4252 = vmatpush.bf16.msra.mxu0 %v5916_v50  ;;  %4265 = vmatpush.bf16.msra.mxu1 %v6044_v51  ;;  %v8769_v48 = vadd.f32 %v4036_v40, %v4024_v39  ;;  %v5868_v50 = vor.u32 %v7782_v6, %v5867_v25  ;;  %v5996_v51 = vor.u32 %v7814_v20, %v5995_v30  ;;  %v8002_v25 = vld [vmem:[#allocation3 + $0xaf4] sm:$0xf0]  ;;  %v6875_v6 = vld [vmem:[#allocation3 + $0xbe8] sm:$0xf] }
 0x239   :  { %4276 = vmatpush.bf16.msra.mxu2 %v6204_v54  ;;  %4289 = vmatpush.bf16.msra.mxu3 %v6332_v55  ;;  %v6139_v54 = vld [vmem:[#allocation3 + $0x628] sm:$0xf]  ;;  %v7850_v55 = vld [vmem:[#allocation3 + $0x634] sm:$0xf0] }
 0x23a   :  { %v6140_v0 = vor.u32 %v7850_v55, %v6139_v54  ;;  %v8034_v30 = vld [vmem:[#allocation3 + $0xbf4] sm:$0xf0]  ;;  %v6443_v20 = vld [vmem:[#allocation3 + $0x888] sm:$0xf]  ;;  %v6572_v54 = vor.u32 %v7958_v42, %v6571_v41 }
 0x23b   :  { %v6876_v39 = vor.u32 %v8034_v30, %v6875_v6  ;;  %v7998_v47 = vld [vmem:[#allocation3 + $0xad4] sm:$0xf0]  ;;  %v6427_v55 = vld [vmem:[#allocation3 + $0x868] sm:$0xf] }
 0x23c   :  { %4253 = vmatpush.bf16.msra.mxu0 %v5900_v1  ;;  %4266 = vmatpush.bf16.msra.mxu1 %v6028_v5  ;;  %v6268_v1 = vor.u32 %v7882_v59, %v6267_v58  ;;  %v6732_v58 = vor.u32 %v7998_v47, %v6731_v43  ;;  %v6555_v60 = vld [vmem:[#allocation3 + $0x968] sm:$0xf]  ;;  %v7954_v61 = vld [vmem:[#allocation3 + $0x974] sm:$0xf0] }
 0x23d   :  { %4277 = vmatpush.bf16.msra.mxu2 %v6188_v12  ;;  %4290 = vmatpush.bf16.msra.mxu3 %v6316_v13  ;;  %v4025_v5 = vpop.f32.mrf.mxu2  ;;  %v4038_v10 = vpop.f32.mrf.mxu3  ;;  %v7846_v12 = vld [vmem:[#allocation3 + $0x614] sm:$0xf0]  ;;  %v6251_v13 = vld [vmem:[#allocation3 + $0x708] sm:$0xf] }
 0x23e   :  { %v6715_v28 = vld [vmem:[#allocation3 + $0xaa8] sm:$0xf]  ;;  %v7994_v63 = vld [vmem:[#allocation3 + $0xab4] sm:$0xf0]  ;;  %v6556_v5 = vor.u32 %v7954_v61, %v6555_v60 }
 0x23f   :  { %v6411_v10 = vld [vmem:[#allocation3 + $0x848] sm:$0xf]  ;;  %v8018_v41 = vld [vmem:[#allocation3 + $0xb74] sm:$0xf0] }
 0x240   :  { %4254 = vmatpush.bf16.msra.mxu0 %v5884_v23  ;;  %4267 = vmatpush.bf16.msra.mxu1 %v6012_v24  ;;  %v7962_v23 = vld [vmem:[#allocation3 + $0x9b4] sm:$0xf0]  ;;  %v6747_v24 = vld [vmem:[#allocation3 + $0xae8] sm:$0xf] }
 0x241   :  { %4278 = vmatpush.bf16.msra.mxu2 %v6172_v7  ;;  %4291 = vmatpush.bf16.msra.mxu3 %v6300_v31  ;;  %v6124_v7 = vor.u32 %v7846_v12, %v6123_v11  ;;  %v6252_v31 = vor.u32 %v7878_v18, %v6251_v13  ;;  %v6588_v40 = vor.u32 %v7962_v23, %v6587_v22  ;;  %v7918_v11 = vld [vmem:[#allocation3 + $0x854] sm:$0xf0]  ;;  %v6699_v18 = vld [vmem:[#allocation3 + $0xa88] sm:$0xf] }
 0x242   :  { %v6748_v36 = vor.u32 %v8002_v25, %v6747_v24  ;;  %v6716_v12 = vor.u32 %v7994_v63, %v6715_v28  ;;  %v7990_v22 = vld [vmem:[#allocation3 + $0xa94] sm:$0xf0]  ;;  %v6827_v23 = vld [vmem:[#allocation3 + $0xb88] sm:$0xf]  ;;  %v6412_v25 = vor.u32 %v7918_v11, %v6411_v10 }
 0x243   :  { %v8022_v24 = vld [vmem:[#allocation3 + $0xb94] sm:$0xf0]  ;;  %v6395_v30 = vld [vmem:[#allocation3 + $0x828] sm:$0xf] }
 0x244   :  { %4255 = vmatpush.bf16.msra.mxu0 %v5868_v50  ;;  %4268 = vmatpush.bf16.msra.mxu1 %v5996_v51  ;;  %v4049_v44 = vpop.f32.mrf.mxu0  ;;  %v4062_v45 = vpop.f32.mrf.mxu1  ;;  %v6859_v50 = vld [vmem:[#allocation3 + $0xbc8] sm:$0xf]  ;;  %v8030_v51 = vld [vmem:[#allocation3 + $0xbd4] sm:$0xf0] }
 0x245   :  { %4279 = vmatpush.bf16.msra.mxu2 %v6156_v52  ;;  %4292 = vmatpush.bf16.msra.mxu3 %v6284_v53  ;;  %v4050_v52 = vadd.f32 %v4049_v44, %v8769_v48  ;;  %v6444_v53 = vor.u32 %v7926_v33, %v6443_v20  ;;  %v6860_v59 = vor.u32 %v8030_v51, %v6859_v50  ;;  %v6843_v48 = vld [vmem:[#allocation3 + $0xba8] sm:$0xf]  ;;  %v7946_v20 = vld [vmem:[#allocation3 + $0x934] sm:$0xf0] }
 0x246   :  { %v6683_v33 = vld [vmem:[#allocation3 + $0xa68] sm:$0xf]  ;;  %v8014_v60 = vld [vmem:[#allocation3 + $0xb54] sm:$0xf0] }
 0x247   :  { %4256 = vmatmul.bf16.vlgmr.msra.gmra.mxu0 %v8694_v62  ;;  %4269 = vmatmul.bf16.vlgmr.msra.gmra.mxu1 %v8696_v49  ;;  %v6379_v44 = vld [vmem:[#allocation3 + $0x808] sm:$0xf]  ;;  %v8066_v28 = vld [vmem:[#allocation3 + $0xcf4] sm:$0xf0] }
 0x248   :  { %4300 = vmatpush.bf16.msrb.mxu0 %v6492_v46  ;;  %4313 = vmatpush.bf16.msrb.mxu1 %v6620_v21  ;;  %v7922_v46 = vld [vmem:[#allocation3 + $0x874] sm:$0xf0]  ;;  %v4063_v21 = vadd.f32 %v4062_v45, %v4050_v52  ;;  %v6507_v47 = vld [vmem:[#allocation3 + $0x908] sm:$0xf] }
 0x249   :  { %4280 = vmatpush.bf16.msra.mxu2 %v6140_v0  ;;  %4293 = vmatpush.bf16.msra.mxu3 %v6268_v1  ;;  %v8026_v0 = vld [vmem:[#allocation3 + $0xbb4] sm:$0xf0]  ;;  %v6428_v1 = vor.u32 %v7922_v46, %v6427_v55  ;;  %v6667_v55 = vld [vmem:[#allocation3 + $0xa48] sm:$0xf] }
 0x24a   :  { %v6844_v13 = vor.u32 %v8026_v0, %v6843_v48  ;;  %v7910_v45 = vld [vmem:[#allocation3 + $0x814] sm:$0xf0]  ;;  %v7003_v61 = vld [vmem:[#allocation3 + $0xce8] sm:$0xf] }
 0x24b   :  { %v7982_v46 = vld [vmem:[#allocation3 + $0xa54] sm:$0xf0]  ;;  %v7131_v63 = vld [vmem:[#allocation3 + $0xde8] sm:$0xf] }
 0x24c   :  { %4301 = vmatpush.bf16.msrb.mxu0 %v6476_v16  ;;  %4314 = vmatpush.bf16.msrb.mxu1 %v6604_v17  ;;  %v6539_v16 = vld [vmem:[#allocation3 + $0x948] sm:$0xf]  ;;  %v7950_v17 = vld [vmem:[#allocation3 + $0x954] sm:$0xf0]  ;;  %v4051_v4 = vpop.f32.mrf.mxu0  ;;  %v4064_v19 = vpop.f32.mrf.mxu1  ;;  %v6668_v10 = vor.u32 %v7982_v46, %v6667_v55 }
 0x24d   :  { %4281 = vmatpush.bf16.msra.mxu2 %v6124_v7  ;;  %4294 = vmatpush.bf16.msra.mxu3 %v6252_v31  ;;  %v6540_v6 = vor.u32 %v7950_v17, %v6539_v16  ;;  %v7914_v7 = vld [vmem:[#allocation3 + $0x834] sm:$0xf0]  ;;  %v6700_v31 = vor.u32 %v7990_v22, %v6699_v18  ;;  %v7004_v16 = vor.u32 %v8066_v28, %v7003_v61  ;;  %v6779_v17 = vld [vmem:[#allocation3 + $0xb28] sm:$0xf] }
 0x24e   :  { %v6396_v42 = vor.u32 %v7914_v7, %v6395_v30  ;;  %v8098_v48 = vld [vmem:[#allocation3 + $0xdf4] sm:$0xf0]  ;;  %v6987_v4 = vld [vmem:[#allocation3 + $0xcc8] sm:$0xf] }
 0x24f   :  { %v8010_v18 = vld [vmem:[#allocation3 + $0xb34] sm:$0xf0]  ;;  %v7115_v22 = vld [vmem:[#allocation3 + $0xdc8] sm:$0xf] }
 0x250   :  { %4302 = vmatpush.bf16.msrb.mxu0 %v6460_v32  ;;  %4315 = vmatpush.bf16.msrb.mxu1 %v6588_v40  ;;  %v6828_v32 = vor.u32 %v8022_v24, %v6827_v23  ;;  %v6523_v40 = vld [vmem:[#allocation3 + $0x928] sm:$0xf]  ;;  %v8062_v19 = vld [vmem:[#allocation3 + $0xcd4] sm:$0xf0] }
 0x251   :  { %4326 = vmatpush.bf16.msrb.mxu2 %v6748_v36  ;;  %4339 = vmatpush.bf16.msrb.mxu3 %v6876_v39  ;;  %v7986_v36 = vld [vmem:[#allocation3 + $0xa74] sm:$0xf0]  ;;  %v6811_v39 = vld [vmem:[#allocation3 + $0xb68] sm:$0xf]  ;;  %v6524_v43 = vor.u32 %v7946_v20, %v6523_v40  ;;  %v6988_v40 = vor.u32 %v8062_v19, %v6987_v4 }
 0x252   :  { %4282 = vmatmul.bf16.vlgmr.msra.gmra.mxu2 %v8704_v37  ;;  %4295 = vmatmul.bf16.vlgmr.msra.gmra.mxu3 %v8706_v38  ;;  %v6684_v50 = vor.u32 %v7986_v36, %v6683_v33  ;;  %v6812_v51 = vor.u32 %v8018_v41, %v6811_v39  ;;  %v8094_v23 = vld [vmem:[#allocation3 + $0xdd4] sm:$0xf0]  ;;  %v6635_v7 = vld [vmem:[#allocation3 + $0xa08] sm:$0xf] }
 0x253   :  { %v7116_v20 = vor.u32 %v8094_v23, %v7115_v22  ;;  %v8006_v33 = vld [vmem:[#allocation3 + $0xb14] sm:$0xf0]  ;;  %v6971_v36 = vld [vmem:[#allocation3 + $0xca8] sm:$0xf] }
 0x254   :  { %4303 = vmatpush.bf16.msrb.mxu0 %v6444_v53  ;;  %4316 = vmatpush.bf16.msrb.mxu1 %v6572_v54  ;;  %v7942_v54 = vld [vmem:[#allocation3 + $0x914] sm:$0xf0]  ;;  %v7099_v41 = vld [vmem:[#allocation3 + $0xda8] sm:$0xf] }
 0x255   :  { %4327 = vmatpush.bf16.msrb.mxu2 %v6732_v58  ;;  %4340 = vmatpush.bf16.msrb.mxu3 %v6860_v59  ;;  %v4075_v52 = vpop.f32.mrf.mxu2  ;;  %v4088_v53 = vpop.f32.mrf.mxu3  ;;  %v6795_v59 = vld [vmem:[#allocation3 + $0xb48] sm:$0xf]  ;;  %v8058_v39 = vld [vmem:[#allocation3 + $0xcb4] sm:$0xf0] }
 0x256   :  { %v4076_v58 = vadd.f32 %v4075_v52, %v4063_v21  ;;  %v6796_v11 = vor.u32 %v8014_v60, %v6795_v59  ;;  %v7132_v21 = vor.u32 %v8098_v48, %v7131_v63  ;;  %v6972_v52 = vor.u32 %v8058_v39, %v6971_v36  ;;  %v8054_v55 = vld [vmem:[#allocation3 + $0xc94] sm:$0xf0]  ;;  %v7083_v59 = vld [vmem:[#allocation3 + $0xd88] sm:$0xf] }
 0x257   :  { %v8086_v60 = vld [vmem:[#allocation3 + $0xd94] sm:$0xf0]  ;;  %v7243_v61 = vld [vmem:[#allocation3 + $0xec8] sm:$0xf] }
 0x258   :  { %4304 = vmatpush.bf16.msrb.mxu0 %v6428_v1  ;;  %4317 = vmatpush.bf16.msrb.mxu1 %v6556_v5  ;;  %v8776_v0 = vadd.f32 %v4088_v53, %v4076_v58  ;;  %v6380_v1 = vor.u32 %v7910_v45, %v6379_v44  ;;  %v6508_v5 = vor.u32 %v7942_v54, %v6507_v47  ;;  %v8130_v44 = vld [vmem:[#allocation3 + $0xef4] sm:$0xf0]  ;;  %v7387_v45 = vld [vmem:[#allocation3 + $0xfe8] sm:$0xf] }
 0x259   :  { %4328 = vmatpush.bf16.msrb.mxu2 %v6716_v12  ;;  %4341 = vmatpush.bf16.msrb.mxu3 %v6844_v13  ;;  %v6651_v12 = vld [vmem:[#allocation3 + $0xa28] sm:$0xf]  ;;  %v7978_v13 = vld [vmem:[#allocation3 + $0xa34] sm:$0xf0] }
 0x25a   :  { %v6652_v24 = vor.u32 %v7978_v13, %v6651_v12  ;;  %v8162_v47 = vld [vmem:[#allocation3 + $0xff4] sm:$0xf0]  ;;  %v6955_v54 = vld [vmem:[#allocation3 + $0xc88] sm:$0xf] }
 0x25b   :  { %v7388_v58 = vor.u32 %v8162_v47, %v7387_v45  ;;  %v8126_v48 = vld [vmem:[#allocation3 + $0xed4] sm:$0xf0]  ;;  %v6939_v12 = vld [vmem:[#allocation3 + $0xc68] sm:$0xf] }
 0x25c   :  { %4305 = vmatpush.bf16.msrb.mxu0 %v6412_v25  ;;  %4318 = vmatpush.bf16.msrb.mxu1 %v6540_v6  ;;  %v6780_v25 = vor.u32 %v8010_v18, %v6779_v17  ;;  %v8050_v13 = vld [vmem:[#allocation3 + $0xc74] sm:$0xf0]  ;;  %v7067_v17 = vld [vmem:[#allocation3 + $0xd68] sm:$0xf] }
 0x25d   :  { %4329 = vmatpush.bf16.msrb.mxu2 %v6700_v31  ;;  %4342 = vmatpush.bf16.msrb.mxu3 %v6828_v32  ;;  %v4077_v6 = vpop.f32.mrf.mxu2  ;;  %v4090_v30 = vpop.f32.mrf.mxu3  ;;  %v7974_v31 = vld [vmem:[#allocation3 + $0xa14] sm:$0xf0]  ;;  %v6763_v32 = vld [vmem:[#allocation3 + $0xb08] sm:$0xf] }
 0x25e   :  { %v8082_v18 = vld [vmem:[#allocation3 + $0xd74] sm:$0xf0]  ;;  %v7227_v4 = vld [vmem:[#allocation3 + $0xea8] sm:$0xf] }
 0x25f   :  { %v8122_v19 = vld [vmem:[#allocation3 + $0xeb4] sm:$0xf0]  ;;  %v7355_v22 = vld [vmem:[#allocation3 + $0xfa8] sm:$0xf] }
 0x260   :  { %4306 = vmatpush.bf16.msrb.mxu0 %v6396_v42  ;;  %4319 = vmatpush.bf16.msrb.mxu1 %v6524_v43  ;;  %v8090_v42 = vld [vmem:[#allocation3 + $0xdb4] sm:$0xf0]  ;;  %v7259_v43 = vld [vmem:[#allocation3 + $0xee8] sm:$0xf] }
 0x261   :  { %4330 = vmatpush.bf16.msrb.mxu2 %v6684_v50  ;;  %4343 = vmatpush.bf16.msrb.mxu3 %v6812_v51  ;;  %v6636_v50 = vor.u32 %v7974_v31, %v6635_v7  ;;  %v6764_v51 = vor.u32 %v8006_v33, %v6763_v32  ;;  %v7100_v53 = vor.u32 %v8090_v42, %v7099_v41  ;;  %v8154_v23 = vld [vmem:[#allocation3 + $0xfb4] sm:$0xf0]  ;;  %v6923_v6 = vld [vmem:[#allocation3 + $0xc48] sm:$0xf] }
 0x262   :  { %v7260_v46 = vor.u32 %v8130_v44, %v7259_v43  ;;  %v8046_v30 = vld [vmem:[#allocation3 + $0xc54] sm:$0xf0]  ;;  %v7228_v7 = vor.u32 %v8122_v19, %v7227_v4  ;;  %v7356_v31 = vor.u32 %v8154_v23, %v7355_v22  ;;  %v7051_v32 = vld [vmem:[#allocation3 + $0xd48] sm:$0xf]  ;;  %v5469_v19 = vld [vmem:[#allocation3 + $0xf8] sm:$0xf0] }
 0x263   :  { %v8118_v39 = vld [vmem:[#allocation3 + $0xe94] sm:$0xf0]  ;;  %v7339_v41 = vld [vmem:[#allocation3 + $0xf88] sm:$0xf]  ;;  %v6924_v44 = vor.u32 %v8046_v30, %v6923_v6  ;;  %v7712_v22 = vld [vmem:[#allocation3 + $0x1ec] sm:$0xf] }
 0x264   :  { %4307 = vmatpush.bf16.msrb.mxu0 %v6380_v1  ;;  %4320 = vmatpush.bf16.msrb.mxu1 %v6508_v5  ;;  %v4101_v28 = vpop.f32.mrf.mxu0  ;;  %v4114_v63 = vpop.f32.mrf.mxu1  ;;  %v7371_v1 = vld [vmem:[#allocation3 + $0xfc8] sm:$0xf]  ;;  %v8158_v5 = vld [vmem:[#allocation3 + $0xfd4] sm:$0xf0]  ;;  %v5597_v23 = vld [vmem:[#allocation3 + $0x1f8] sm:$0xf0] }
 0x265   :  { %4331 = vmatpush.bf16.msrb.mxu2 %v6668_v10  ;;  %4344 = vmatpush.bf16.msrb.mxu3 %v6796_v11  ;;  %v6956_v10 = vor.u32 %v8054_v55, %v6955_v54  ;;  %v7084_v11 = vor.u32 %v8086_v60, %v7083_v59  ;;  %v8150_v42 = vld [vmem:[#allocation3 + $0xf94] sm:$0xf0]  ;;  %v4102_v43 = vadd.f32 %v4101_v28, %v8776_v0  ;;  %v6907_v47 = vld [vmem:[#allocation3 + $0xc28] sm:$0xf] }
 0x266   :  { %v8074_v54 = vld [vmem:[#allocation3 + $0xd34] sm:$0xf0]  ;;  %v7195_v55 = vld [vmem:[#allocation3 + $0xe68] sm:$0xf] }
 0x267   :  { %4308 = vmatmul.bf16.vlgmr.msrb.gmra.mxu0 %v8712_v14  ;;  %4321 = vmatmul.bf16.vlgmr.msrb.gmra.mxu1 %v8714_v15  ;;  %v8146_v59 = vld [vmem:[#allocation3 + $0xf74] sm:$0xf0]  ;;  %v4115_v60 = vadd.f32 %v4114_v63, %v4102_v43  ;;  %v6891_v28 = vld [vmem:[#allocation3 + $0xc08] sm:$0xf]  ;;  %v7680_v63 = vld [vmem:[#allocation3 + $0xec] sm:$0xf] }
 0x268   :  { %4352 = vmatpush.bf16.msra.mxu0 %v7004_v16  ;;  %4365 = vmatpush.bf16.msra.mxu1 %v7132_v21  ;;  %v7244_v16 = vor.u32 %v8126_v48, %v7243_v61  ;;  %v7372_v21 = vor.u32 %v8158_v5, %v7371_v1  ;;  %v8038_v48 = vld [vmem:[#allocation3 + $0xc14] sm:$0xf0]  ;;  %v7019_v1 = vld [vmem:[#allocation3 + $0xd08] sm:$0xf]  ;;  %v5581_v43 = vld [vmem:[#allocation3 + $0x1d8] sm:$0xf0] }
 0x269   :  { %4332 = vmatpush.bf16.msrb.mxu2 %v6652_v24  ;;  %4345 = vmatpush.bf16.msrb.mxu3 %v6780_v25  ;;  %v6940_v24 = vor.u32 %v8050_v13, %v6939_v12  ;;  %v7068_v25 = vor.u32 %v8082_v18, %v7067_v17  ;;  %v8070_v13 = vld [vmem:[#allocation3 + $0xd14] sm:$0xf0]  ;;  %v7307_v18 = vld [vmem:[#allocation3 + $0xf48] sm:$0xf] }
 0x26a   :  { %v8142_v4 = vld [vmem:[#allocation3 + $0xf54] sm:$0xf0]  ;;  %v7020_v6 = vor.u32 %v8070_v13, %v7019_v1  ;;  %v5853_v1 = vld [vmem:[#allocation3 + $0x3f8] sm:$0xf0]  ;;  %v7668_v13 = vld [vmem:[#allocation3 + $0x8c] sm:$0xf] }
 0x26c   :  { %4353 = vmatpush.bf16.msra.mxu0 %v6988_v40  ;;  %4366 = vmatpush.bf16.msra.mxu1 %v7116_v20  ;;  %v8078_v40 = vld [vmem:[#allocation3 + $0xd54] sm:$0xf0]  ;;  %v7211_v20 = vld [vmem:[#allocation3 + $0xe88] sm:$0xf]  ;;  %v4103_v33 = vpop.f32.mrf.mxu0  ;;  %v4116_v36 = vpop.f32.mrf.mxu1 }
 0x26d   :  { %4333 = vmatpush.bf16.msrb.mxu2 %v6636_v50  ;;  %4346 = vmatpush.bf16.msrb.mxu3 %v6764_v51  ;;  %v7052_v45 = vor.u32 %v8078_v40, %v7051_v32  ;;  %v8042_v50 = vld [vmem:[#allocation3 + $0xc34] sm:$0xf0]  ;;  %v7212_v51 = vor.u32 %v8118_v39, %v7211_v20  ;;  %v5472_v40 = vor.u32 %v7680_v63, %v5469_v19  ;;  %v7291_v33 = vld [vmem:[#allocation3 + $0xf28] sm:$0xf]  ;;  %v7676_v39 = vld [vmem:[#allocation3 + $0xcc] sm:$0xf] }
 0x26e   :  { %v6908_v0 = vor.u32 %v8042_v50, %v6907_v47  ;;  %v8106_v32 = vld [vmem:[#allocation3 + $0xe34] sm:$0xf0]  ;;  %v5600_v20 = vor.u32 %v7712_v22, %v5597_v23  ;;  %v7740_v63 = vld [vmem:[#allocation3 + $0x2cc] sm:$0xf]  ;;  %v5709_v23 = vld [vmem:[#allocation3 + $0x2d8] sm:$0xf0] }
 0x26f   :  { %v8138_v36 = vld [vmem:[#allocation3 + $0xf34] sm:$0xf0] }
 0x270   :  { %4354 = vmatpush.bf16.msra.mxu0 %v6972_v52  ;;  %4367 = vmatpush.bf16.msra.mxu1 %v7100_v53  ;;  %v7340_v52 = vor.u32 %v8150_v42, %v7339_v41  ;;  %v7035_v53 = vld [vmem:[#allocation3 + $0xd28] sm:$0xf]  ;;  %v5453_v41 = vld [vmem:[#allocation3 + $0xd8] sm:$0xf0]  ;;  %v7708_v42 = vld [vmem:[#allocation3 + $0x1cc] sm:$0xf] }
 0x271   :  { %4378 = vmatpush.bf16.msra.mxu2 %v7260_v46  ;;  %4391 = vmatpush.bf16.msra.mxu3 %v7388_v58  ;;  %v8114_v46 = vld [vmem:[#allocation3 + $0xe74] sm:$0xf0]  ;;  %v7323_v58 = vld [vmem:[#allocation3 + $0xf68] sm:$0xf]  ;;  %v7036_v61 = vor.u32 %v8074_v54, %v7035_v53  ;;  %v5456_v54 = vor.u32 %v7676_v39, %v5453_v41  ;;  %v7696_v39 = vld [vmem:[#allocation3 + $0x16c] sm:$0xf] }
 0x272   :  { %4334 = vmatmul.bf16.vlgmr.msrb.gmra.mxu2 %v8718_v56  ;;  %4347 = vmatmul.bf16.vlgmr.msrb.gmra.mxu3 %v8720_v57  ;;  %v7196_v5 = vor.u32 %v8114_v46, %v7195_v55  ;;  %v7275_v53 = vld [vmem:[#allocation3 + $0xf08] sm:$0xf]  ;;  %v5584_v55 = vor.u32 %v7708_v42, %v5581_v43  ;;  %v8134_v46 = vld [vmem:[#allocation3 + $0xf14] sm:$0xf0]  ;;  %v5533_v41 = vld [vmem:[#allocation3 + $0x178] sm:$0xf0] }
 0x273   :  { %v7736_v42 = vld [vmem:[#allocation3 + $0x2ac] sm:$0xf]  ;;  %v5693_v43 = vld [vmem:[#allocation3 + $0x2b8] sm:$0xf0] }
 0x274   :  { %4355 = vmatpush.bf16.msra.mxu0 %v6956_v10  ;;  %4368 = vmatpush.bf16.msra.mxu1 %v7084_v11  ;;  %v7324_v10 = vor.u32 %v8146_v59, %v7323_v58  ;;  %v7672_v58 = vld [vmem:[#allocation3 + $0xac] sm:$0xf]  ;;  %v5437_v59 = vld [vmem:[#allocation3 + $0xb8] sm:$0xf0] }
 0x275   :  { %4379 = vmatpush.bf16.msra.mxu2 %v7244_v16  ;;  %4392 = vmatpush.bf16.msra.mxu3 %v7372_v21  ;;  %v4127_v11 = vpop.f32.mrf.mxu2  ;;  %v4140_v12 = vpop.f32.mrf.mxu3  ;;  %v7179_v16 = vld [vmem:[#allocation3 + $0xe48] sm:$0xf]  ;;  %v8110_v21 = vld [vmem:[#allocation3 + $0xe54] sm:$0xf0] }
 0x276   :  { %v4128_v17 = vadd.f32 %v4127_v11, %v4115_v60  ;;  %v7180_v30 = vor.u32 %v8110_v21, %v7179_v16  ;;  %v7704_v60 = vld [vmem:[#allocation3 + $0x1ac] sm:$0xf]  ;;  %v5440_v11 = vor.u32 %v7672_v58, %v5437_v59  ;;  %v5421_v16 = vld [vmem:[#allocation3 + $0x98] sm:$0xf0] }
 0x278   :  { %4356 = vmatpush.bf16.msra.mxu0 %v6940_v24  ;;  %4369 = vmatpush.bf16.msra.mxu1 %v7068_v25  ;;  %v8783_v24 = vadd.f32 %v4140_v12, %v4128_v17  ;;  %v6892_v25 = vor.u32 %v8038_v48, %v6891_v28  ;;  %v5725_v28 = vld [vmem:[#allocation3 + $0x2f8] sm:$0xf0]  ;;  %v7776_v48 = vld [vmem:[#allocation3 + $0x3ec] sm:$0xf] }
 0x279   :  { %4380 = vmatpush.bf16.msra.mxu2 %v7228_v7  ;;  %4393 = vmatpush.bf16.msra.mxu3 %v7356_v31  ;;  %v7308_v7 = vor.u32 %v8142_v4, %v7307_v18  ;;  %v7163_v31 = vld [vmem:[#allocation3 + $0xe28] sm:$0xf]  ;;  %v5856_v17 = vor.u32 %v7776_v48, %v5853_v1  ;;  %v7700_v18 = vld [vmem:[#allocation3 + $0x18c] sm:$0xf]  ;;  %v5549_v4 = vld [vmem:[#allocation3 + $0x198] sm:$0xf0] }
 0x27a   :  { %v7656_v1 = vld [vmem:[#allocation3 + $0x2c] sm:$0xf] }
 0x27c   :  { %4357 = vmatpush.bf16.msra.mxu0 %v6924_v44  ;;  %4370 = vmatpush.bf16.msra.mxu1 %v7052_v45  ;;  %v7164_v44 = vor.u32 %v8106_v32, %v7163_v31  ;;  %v7292_v45 = vor.u32 %v8138_v36, %v7291_v33  ;;  %v5552_v31 = vor.u32 %v7700_v18, %v5549_v4  ;;  %v7664_v32 = vld [vmem:[#allocation3 + $0x6c] sm:$0xf]  ;;  %v5789_v18 = vld [vmem:[#allocation3 + $0x378] sm:$0xf0] }
 0x27d   :  { %4381 = vmatpush.bf16.msra.mxu2 %v7212_v51  ;;  %4394 = vmatpush.bf16.msra.mxu3 %v7340_v52  ;;  %v4129_v47 = vpop.f32.mrf.mxu2  ;;  %v4142_v50 = vpop.f32.mrf.mxu3  ;;  %v7147_v51 = vld [vmem:[#allocation3 + $0xe08] sm:$0xf]  ;;  %v8102_v52 = vld [vmem:[#allocation3 + $0xe14] sm:$0xf0]  ;;  %v5712_v33 = vor.u32 %v7740_v63, %v5709_v23  ;;  %v7684_v23 = vld [vmem:[#allocation3 + $0x10c] sm:$0xf] }
 0x27e   :  { %v5536_v47 = vor.u32 %v7696_v39, %v5533_v41  ;;  %v7660_v50 = vld [vmem:[#allocation3 + $0x4c] sm:$0xf]  ;;  %v5773_v39 = vld [vmem:[#allocation3 + $0x358] sm:$0xf0] }
 0x27f   :  { %v7808_v41 = vld [vmem:[#allocation3 + $0x4ec] sm:$0xf] }
 0x280   :  { %4358 = vmatpush.bf16.msra.mxu0 %v6908_v0  ;;  %4371 = vmatpush.bf16.msra.mxu1 %v7036_v61  ;;  %v5565_v0 = vld [vmem:[#allocation3 + $0x1b8] sm:$0xf0]  ;;  %v7744_v61 = vld [vmem:[#allocation3 + $0x2ec] sm:$0xf] }
 0x281   :  { %4382 = vmatpush.bf16.msra.mxu2 %v7196_v5  ;;  %4395 = vmatpush.bf16.msra.mxu3 %v7324_v10  ;;  %v7148_v5 = vor.u32 %v8102_v52, %v7147_v51  ;;  %v7276_v10 = vor.u32 %v8134_v46, %v7275_v53  ;;  %v5568_v12 = vor.u32 %v7704_v60, %v5565_v0  ;;  %v5389_v51 = vld [vmem:[#allocation3 + $0x58] sm:$0xf0]  ;;  %v7732_v46 = vld [vmem:[#allocation3 + $0x28c] sm:$0xf] }
 0x282   :  { %v5728_v21 = vor.u32 %v7744_v61, %v5725_v28  ;;  %v5696_v52 = vor.u32 %v7736_v42, %v5693_v43  ;;  %v5677_v60 = vld [vmem:[#allocation3 + $0x298] sm:$0xf0]  ;;  %v7764_v0 = vld [vmem:[#allocation3 + $0x38c] sm:$0xf]  ;;  %v5392_v28 = vor.u32 %v7660_v50, %v5389_v51 }
 0x283   :  { %v5805_v61 = vld [vmem:[#allocation3 + $0x398] sm:$0xf0]  ;;  %v7840_v43 = vld [vmem:[#allocation3 + $0x5ec] sm:$0xf] }
 0x284   :  { %4359 = vmatpush.bf16.msra.mxu0 %v6892_v25  ;;  %4372 = vmatpush.bf16.msra.mxu1 %v7020_v6  ;;  %v4153_v19 = vpop.f32.mrf.mxu0  ;;  %v4166_v22 = vpop.f32.mrf.mxu1  ;;  %v7772_v25 = vld [vmem:[#allocation3 + $0x3cc] sm:$0xf]  ;;  %v5837_v6 = vld [vmem:[#allocation3 + $0x3d8] sm:$0xf0] }
 0x285   :  { %4383 = vmatpush.bf16.msra.mxu2 %v7180_v30  ;;  %4396 = vmatpush.bf16.msra.mxu3 %v7308_v7  ;;  %v4154_v30 = vadd.f32 %v4153_v19, %v8783_v24  ;;  %v5424_v7 = vor.u32 %v7668_v13, %v5421_v16  ;;  %v5840_v36 = vor.u32 %v7772_v25, %v5837_v6  ;;  %v7768_v24 = vld [vmem:[#allocation3 + $0x3ac] sm:$0xf]  ;;  %v5501_v13 = vld [vmem:[#allocation3 + $0x138] sm:$0xf0] }
 0x286   :  { %v7728_v16 = vld [vmem:[#allocation3 + $0x26c] sm:$0xf]  ;;  %v5981_v42 = vld [vmem:[#allocation3 + $0x4f8] sm:$0xf0] }
 0x287   :  { %4360 = vmatmul.bf16.vlgmr.msra.gmra.mxu0 %v8728_v26  ;;  %4373 = vmatmul.bf16.vlgmr.msra.gmra.mxu1 %v8730_v27  ;;  %v7652_v19 = vld [vmem:[#allocation3 + $0xc] sm:$0xf] }
 0x288   :  { %4404 = vmatpush.bf16.msrb.mxu0 %v5472_v40  ;;  %4417 = vmatpush.bf16.msrb.mxu1 %v5600_v20  ;;  %v5405_v40 = vld [vmem:[#allocation3 + $0x78] sm:$0xf0]  ;;  %v4167_v20 = vadd.f32 %v4166_v22, %v4154_v30 }
 0x289   :  { %4384 = vmatpush.bf16.msra.mxu2 %v7164_v44  ;;  %4397 = vmatpush.bf16.msra.mxu3 %v7292_v45  ;;  %v5821_v44 = vld [vmem:[#allocation3 + $0x3b8] sm:$0xf0]  ;;  %v5408_v45 = vor.u32 %v7664_v32, %v5405_v40  ;;  %v7724_v32 = vld [vmem:[#allocation3 + $0x24c] sm:$0xf] }
 0x28a   :  { %v5824_v53 = vor.u32 %v7768_v24, %v5821_v44  ;;  %v5357_v22 = vld [vmem:[#allocation3 + $0x18] sm:$0xf0] }
 0x28b   :  { %v5645_v40 = vld [vmem:[#allocation3 + $0x258] sm:$0xf0] }
 0x28c   :  { %4405 = vmatpush.bf16.msrb.mxu0 %v5456_v54  ;;  %4418 = vmatpush.bf16.msrb.mxu1 %v5584_v55  ;;  %v7692_v54 = vld [vmem:[#allocation3 + $0x14c] sm:$0xf]  ;;  %v5517_v55 = vld [vmem:[#allocation3 + $0x158] sm:$0xf0]  ;;  %v4155_v58 = vpop.f32.mrf.mxu0  ;;  %v4168_v59 = vpop.f32.mrf.mxu1  ;;  %v5648_v50 = vor.u32 %v7724_v32, %v5645_v40 }
 0x28d   :  { %4385 = vmatpush.bf16.msra.mxu2 %v7148_v5  ;;  %4398 = vmatpush.bf16.msra.mxu3 %v7276_v10  ;;  %v5520_v48 = vor.u32 %v7692_v54, %v5517_v55  ;;  %v5373_v5 = vld [vmem:[#allocation3 + $0x38] sm:$0xf0]  ;;  %v5680_v10 = vor.u32 %v7732_v46, %v5677_v60  ;;  %v5984_v54 = vor.u32 %v7808_v41, %v5981_v42  ;;  %v7752_v55 = vld [vmem:[#allocation3 + $0x32c] sm:$0xf] }
 0x28e   :  { %v5376_v4 = vor.u32 %v7656_v1, %v5373_v5  ;;  %v6109_v24 = vld [vmem:[#allocation3 + $0x5f8] sm:$0xf0]  ;;  %v7804_v58 = vld [vmem:[#allocation3 + $0x4cc] sm:$0xf] }
 0x28f   :  { %v5757_v46 = vld [vmem:[#allocation3 + $0x338] sm:$0xf0]  ;;  %v7836_v60 = vld [vmem:[#allocation3 + $0x5cc] sm:$0xf] }
 0x290   :  { %4406 = vmatpush.bf16.msrb.mxu0 %v5440_v11  ;;  %4419 = vmatpush.bf16.msrb.mxu1 %v5568_v12  ;;  %v5808_v11 = vor.u32 %v7764_v0, %v5805_v61  ;;  %v7688_v12 = vld [vmem:[#allocation3 + $0x12c] sm:$0xf]  ;;  %v5965_v59 = vld [vmem:[#allocation3 + $0x4d8] sm:$0xf0] }
 0x291   :  { %4430 = vmatpush.bf16.msrb.mxu2 %v5728_v21  ;;  %4443 = vmatpush.bf16.msrb.mxu3 %v5856_v17  ;;  %v5661_v21 = vld [vmem:[#allocation3 + $0x278] sm:$0xf0]  ;;  %v7760_v17 = vld [vmem:[#allocation3 + $0x36c] sm:$0xf]  ;;  %v5504_v63 = vor.u32 %v7688_v12, %v5501_v13  ;;  %v5968_v12 = vor.u32 %v7804_v58, %v5965_v59 }
 0x292   :  { %4386 = vmatmul.bf16.vlgmr.msra.gmra.mxu2 %v8734_v8  ;;  %4399 = vmatmul.bf16.vlgmr.msra.gmra.mxu3 %v8736_v9  ;;  %v5664_v25 = vor.u32 %v7728_v16, %v5661_v21  ;;  %v5792_v6 = vor.u32 %v7760_v17, %v5789_v18  ;;  %v6093_v0 = vld [vmem:[#allocation3 + $0x5d8] sm:$0xf0]  ;;  %v7716_v5 = vld [vmem:[#allocation3 + $0x20c] sm:$0xf] }
 0x293   :  { %v6096_v13 = vor.u32 %v7836_v60, %v6093_v0  ;;  %v5741_v16 = vld [vmem:[#allocation3 + $0x318] sm:$0xf0]  ;;  %v7800_v21 = vld [vmem:[#allocation3 + $0x4ac] sm:$0xf] }
 0x294   :  { %4407 = vmatpush.bf16.msrb.mxu0 %v5424_v7  ;;  %4420 = vmatpush.bf16.msrb.mxu1 %v5552_v31  ;;  %v5485_v31 = vld [vmem:[#allocation3 + $0x118] sm:$0xf0]  ;;  %v7832_v18 = vld [vmem:[#allocation3 + $0x5ac] sm:$0xf] }
 0x295   :  { %4431 = vmatpush.bf16.msrb.mxu2 %v5712_v33  ;;  %4444 = vmatpush.bf16.msrb.mxu3 %v5840_v36  ;;  %v4179_v30 = vpop.f32.mrf.mxu2  ;;  %v4192_v7 = vpop.f32.mrf.mxu3  ;;  %v7756_v36 = vld [vmem:[#allocation3 + $0x34c] sm:$0xf]  ;;  %v5949_v17 = vld [vmem:[#allocation3 + $0x4b8] sm:$0xf0] }
 0x296   :  { %v4180_v33 = vadd.f32 %v4179_v30, %v4167_v20  ;;  %v5776_v51 = vor.u32 %v7756_v36, %v5773_v39  ;;  %v6112_v20 = vor.u32 %v7840_v43, %v6109_v24  ;;  %v8252_v30 = vld [vmem:[#allocation10] sm:$0xf]  ;;  %v7796_v40 = vld [vmem:[#allocation3 + $0x48c] sm:$0xf]  ;;  %v6061_v39 = vld [vmem:[#allocation3 + $0x598] sm:$0xf0] }
 0x297   :  { %v7828_v36 = vld [vmem:[#allocation3 + $0x58c] sm:$0xf]  ;;  %v6221_v24 = vld [vmem:[#allocation3 + $0x6d8] sm:$0xf0] }
 0x298   :  { %4408 = vmatpush.bf16.msrb.mxu0 %v5408_v45  ;;  %4421 = vmatpush.bf16.msrb.mxu1 %v5536_v47  ;;  %v8790_v44 = vadd.f32 %v4192_v7, %v4180_v33  ;;  %v5360_v45 = vor.u32 %v7652_v19, %v5357_v22  ;;  %v5488_v47 = vor.u32 %v7684_v23, %v5485_v31  ;;  %v6237_v19 = vld [vmem:[#allocation3 + $0x6f8] sm:$0xf0]  ;;  %v7904_v22 = vld [vmem:[#allocation3 + $0x7ec] sm:$0xf]  ;;  %v1214_v7 = vperm.slane %v8252_v30, 2 }
 0x299   :  { %4432 = vmatpush.bf16.msrb.mxu2 %v5696_v52  ;;  %4445 = vmatpush.bf16.msrb.mxu3 %v5824_v53  ;;  %v7720_v52 = vld [vmem:[#allocation3 + $0x22c] sm:$0xf]  ;;  %v5629_v53 = vld [vmem:[#allocation3 + $0x238] sm:$0xf0]  ;;  %v5952_v31 = vor.u32 %v7800_v21, %v5949_v17 }
 0x29a   :  { %v5632_v61 = vor.u32 %v7720_v52, %v5629_v53  ;;  %v6365_v23 = vld [vmem:[#allocation3 + $0x7f8] sm:$0xf0]  ;;  %v7868_v41 = vld [vmem:[#allocation3 + $0x6cc] sm:$0xf]  ;;  %v6064_v52 = vor.u32 %v7828_v36, %v6061_v39 }
 0x29b   :  { %v7792_v53 = vld [vmem:[#allocation3 + $0x46c] sm:$0xf]  ;;  %v6045_v59 = vld [vmem:[#allocation3 + $0x578] sm:$0xf0] }
 0x29c   :  { %4409 = vmatpush.bf16.msrb.mxu0 %v5392_v28  ;;  %4422 = vmatpush.bf16.msrb.mxu1 %v5520_v48  ;;  %v5760_v28 = vor.u32 %v7752_v55, %v5757_v46  ;;  %v6224_v55 = vor.u32 %v7868_v41, %v6221_v24  ;;  %v7824_v58 = vld [vmem:[#allocation3 + $0x56c] sm:$0xf]  ;;  %v6205_v0 = vld [vmem:[#allocation3 + $0x6b8] sm:$0xf0] }
 0x29d   :  { %4433 = vmatpush.bf16.msrb.mxu2 %v5680_v10  ;;  %4446 = vmatpush.bf16.msrb.mxu3 %v5808_v11  ;;  %v4181_v48 = vpop.f32.mrf.mxu2  ;;  %v4194_v1 = vpop.f32.mrf.mxu3  ;;  %v5613_v10 = vld [vmem:[#allocation3 + $0x218] sm:$0xf0]  ;;  %v7748_v11 = vld [vmem:[#allocation3 + $0x30c] sm:$0xf] }
 0x29e   :  { %v7864_v60 = vld [vmem:[#allocation3 + $0x6ac] sm:$0xf]  ;;  %v6048_v1 = vor.u32 %v7824_v58, %v6045_v59  ;;  %v5869_v39 = vld [vmem:[#allocation3 + $0x418] sm:$0xf0] }
 0x29f   :  { %v7860_v21 = vld [vmem:[#allocation3 + $0x68c] sm:$0xf]  ;;  %v6621_v59 = vld [vmem:[#allocation3 + $0x9f8] sm:$0xf0] }
 0x2a0   :  { %4410 = vmatpush.bf16.msrb.mxu0 %v5376_v4  ;;  %4423 = vmatpush.bf16.msrb.mxu1 %v5504_v63  ;;  %v6077_v4 = vld [vmem:[#allocation3 + $0x5b8] sm:$0xf0]  ;;  %v7872_v63 = vld [vmem:[#allocation3 + $0x6ec] sm:$0xf] }
 0x2a1   :  { %4434 = vmatpush.bf16.msrb.mxu2 %v5664_v25  ;;  %4447 = vmatpush.bf16.msrb.mxu3 %v5792_v6  ;;  %v5616_v25 = vor.u32 %v7716_v5, %v5613_v10  ;;  %v5744_v6 = vor.u32 %v7748_v11, %v5741_v16  ;;  %v6080_v32 = vor.u32 %v7832_v18, %v6077_v4  ;;  %v7788_v5 = vld [vmem:[#allocation3 + $0x44c] sm:$0xf]  ;;  %v5901_v10 = vld [vmem:[#allocation3 + $0x458] sm:$0xf0] }
 0x2a2   :  { %v6240_v33 = vor.u32 %v7872_v63, %v6237_v19  ;;  %v6208_v11 = vor.u32 %v7864_v60, %v6205_v0  ;;  %v6029_v16 = vld [vmem:[#allocation3 + $0x558] sm:$0xf0]  ;;  %v5904_v63 = vor.u32 %v7788_v5, %v5901_v10  ;;  %v7816_v30 = vld [vmem:[#allocation3 + $0x52c] sm:$0xf] }
 0x2a3   :  { %v6189_v18 = vld [vmem:[#allocation3 + $0x698] sm:$0xf0]  ;;  %v7780_v36 = vld [vmem:[#allocation3 + $0x40c] sm:$0xf] }
 0x2a4   :  { %4411 = vmatpush.bf16.msrb.mxu0 %v5360_v45  ;;  %4424 = vmatpush.bf16.msrb.mxu1 %v5488_v47  ;;  %v4205_v42 = vpop.f32.mrf.mxu0  ;;  %v4218_v43 = vpop.f32.mrf.mxu1  ;;  %v7900_v45 = vld [vmem:[#allocation3 + $0x7cc] sm:$0xf]  ;;  %v6349_v47 = vld [vmem:[#allocation3 + $0x7d8] sm:$0xf0]  ;;  %v5872_v0 = vor.u32 %v7780_v36, %v5869_v39 }
 0x2a5   :  { %4435 = vmatpush.bf16.msrb.mxu2 %v5648_v50  ;;  %4448 = vmatpush.bf16.msrb.mxu3 %v5776_v51  ;;  %v4206_v50 = vadd.f32 %v4205_v42, %v1214_v7  ;;  %v6352_v46 = vor.u32 %v7900_v45, %v6349_v47  ;;  %v6317_v4 = vld [vmem:[#allocation3 + $0x798] sm:$0xf0]  ;;  %v7812_v41 = vld [vmem:[#allocation3 + $0x50c] sm:$0xf] }
 0x2a6   :  { %v6013_v7 = vld [vmem:[#allocation3 + $0x538] sm:$0xf0]  ;;  %v7968_v58 = vld [vmem:[#allocation3 + $0x9ec] sm:$0xf] }
 0x2a7   :  { %4412 = vmatmul.bf16.vlgmr.msrb.gmra.mxu0 %v8678_v2  ;;  %4425 = vmatmul.bf16.vlgmr.msrb.gmra.mxu1 %v8680_v3  ;;  %v5933_v2 = vld [vmem:[#allocation3 + $0x498] sm:$0xf0]  ;;  %v6368_v3 = vor.u32 %v7904_v22, %v6365_v23  ;;  %v7784_v22 = vld [vmem:[#allocation3 + $0x42c] sm:$0xf] }
 0x2a8   :  { %4456 = vmatpush.bf16.msra.mxu0 %v5984_v54  ;;  %4469 = vmatpush.bf16.msra.mxu1 %v6112_v20  ;;  %v5936_v51 = vor.u32 %v7796_v40, %v5933_v2  ;;  %v5917_v54 = vld [vmem:[#allocation3 + $0x478] sm:$0xf0]  ;;  %v4219_v20 = vadd.f32 %v4218_v43, %v4206_v50  ;;  %v7888_v40 = vld [vmem:[#allocation3 + $0x76c] sm:$0xf] }
 0x2a9   :  { %4436 = vmatpush.bf16.msrb.mxu2 %v5632_v61  ;;  %4449 = vmatpush.bf16.msrb.mxu3 %v5760_v28  ;;  %v7896_v61 = vld [vmem:[#allocation3 + $0x7ac] sm:$0xf]  ;;  %v6333_v28 = vld [vmem:[#allocation3 + $0x7b8] sm:$0xf0]  ;;  %v5920_v48 = vor.u32 %v7792_v53, %v5917_v54 }
 0x2aa   :  { %v5885_v23 = vld [vmem:[#allocation3 + $0x438] sm:$0xf0]  ;;  %v7852_v50 = vld [vmem:[#allocation3 + $0x64c] sm:$0xf] }
 0x2ab   :  { %v6301_v2 = vld [vmem:[#allocation3 + $0x778] sm:$0xf0]  ;;  %v7884_v53 = vld [vmem:[#allocation3 + $0x74c] sm:$0xf] }
 0x2ac   :  { %4457 = vmatpush.bf16.msra.mxu0 %v5968_v12  ;;  %4470 = vmatpush.bf16.msra.mxu1 %v6096_v13  ;;  %v6336_v12 = vor.u32 %v7896_v61, %v6333_v28  ;;  %v7820_v13 = vld [vmem:[#allocation3 + $0x54c] sm:$0xf]  ;;  %v4207_v17 = vpop.f32.mrf.mxu0  ;;  %v6304_v43 = vor.u32 %v7888_v40, %v6301_v2  ;;  %v5997_v47 = vld [vmem:[#allocation3 + $0x518] sm:$0xf0] }
 0x2ad   :  { %4437 = vmatpush.bf16.msrb.mxu2 %v5616_v25  ;;  %4450 = vmatpush.bf16.msrb.mxu3 %v5744_v6  ;;  %v6032_v19 = vor.u32 %v7820_v13, %v6029_v16  ;;  %v6192_v25 = vor.u32 %v7860_v21, %v6189_v18  ;;  %v6285_v54 = vld [vmem:[#allocation3 + $0x758] sm:$0xf0]  ;;  %v6000_v61 = vor.u32 %v7812_v41, %v5997_v47  ;;  %v7932_v13 = vld [vmem:[#allocation3 + $0x8cc] sm:$0xf] }
 0x2ae   :  { %v6141_v5 = vld [vmem:[#allocation3 + $0x638] sm:$0xf0]  ;;  %v7964_v21 = vld [vmem:[#allocation3 + $0x9cc] sm:$0xf] }
 0x2af   :  { %v6477_v16 = vld [vmem:[#allocation3 + $0x8d8] sm:$0xf0]  ;;  %v8000_v40 = vld [vmem:[#allocation3 + $0xaec] sm:$0xf] }
 0x2b0   :  { %4458 = vmatpush.bf16.msra.mxu0 %v5952_v31  ;;  %4471 = vmatpush.bf16.msra.mxu1 %v6080_v32  ;;  %v7856_v31 = vld [vmem:[#allocation3 + $0x66c] sm:$0xf]  ;;  %v6173_v32 = vld [vmem:[#allocation3 + $0x678] sm:$0xf0] }
 0x2b1   :  { %4482 = vmatpush.bf16.msra.mxu2 %v6240_v33  ;;  %4495 = vmatpush.bf16.msra.mxu3 %v6368_v3  ;;  %v5888_v33 = vor.u32 %v7784_v22, %v5885_v23  ;;  %v6016_v3 = vor.u32 %v7816_v30, %v6013_v7  ;;  %v6176_v42 = vor.u32 %v7856_v31, %v6173_v32  ;;  %v6605_v17 = vld [vmem:[#allocation3 + $0x9d8] sm:$0xf0]  ;;  %v7876_v22 = vld [vmem:[#allocation3 + $0x70c] sm:$0xf] }
 0x2b2   :  { %4438 = vmatmul.bf16.vlgmr.msrb.gmra.mxu2 %v8686_v34  ;;  %4451 = vmatmul.bf16.vlgmr.msrb.gmra.mxu3 %v8688_v35  ;;  %v4220_v34 = vpop.f32.mrf.mxu1  ;;  %v7892_v35 = vld [vmem:[#allocation3 + $0x78c] sm:$0xf]  ;;  %v6480_v23 = vor.u32 %v7932_v13, %v6477_v16  ;;  %v6461_v7 = vld [vmem:[#allocation3 + $0x8b8] sm:$0xf0] }
 0x2b3   :  { %v6320_v6 = vor.u32 %v7892_v35, %v6317_v4  ;;  %v7928_v30 = vld [vmem:[#allocation3 + $0x8ac] sm:$0xf]  ;;  %v6589_v32 = vld [vmem:[#allocation3 + $0x9b8] sm:$0xf0] }
 0x2b4   :  { %4459 = vmatpush.bf16.msra.mxu0 %v5936_v51  ;;  %4472 = vmatpush.bf16.msra.mxu1 %v6064_v52  ;;  %v6157_v51 = vld [vmem:[#allocation3 + $0x658] sm:$0xf0]  ;;  %v7960_v31 = vld [vmem:[#allocation3 + $0x9ac] sm:$0xf]  ;;  %v6464_v41 = vor.u32 %v7928_v30, %v6461_v7 }
 0x2b5   :  { %4483 = vmatpush.bf16.msra.mxu2 %v6224_v55  ;;  %4496 = vmatpush.bf16.msra.mxu3 %v6352_v46  ;;  %v4231_v24 = vpop.f32.mrf.mxu2  ;;  %v4244_v45 = vpop.f32.mrf.mxu3  ;;  %v7936_v55 = vld [vmem:[#allocation3 + $0x8ec] sm:$0xf]  ;;  %v6493_v46 = vld [vmem:[#allocation3 + $0x8f8] sm:$0xf0]  ;;  %v6160_v28 = vor.u32 %v7852_v50, %v6157_v51 }
 0x2b6   :  { %v4232_v52 = vadd.f32 %v4231_v24, %v4219_v20  ;;  %v6496_v10 = vor.u32 %v7936_v55, %v6493_v46  ;;  %v6624_v20 = vor.u32 %v7968_v58, %v6621_v59  ;;  %v6749_v2 = vld [vmem:[#allocation3 + $0xaf8] sm:$0xf0]  ;;  %v7956_v47 = vld [vmem:[#allocation3 + $0x98c] sm:$0xf] }
 0x2b7   :  { %v6445_v24 = vld [vmem:[#allocation3 + $0x898] sm:$0xf0]  ;;  %v7996_v50 = vld [vmem:[#allocation3 + $0xacc] sm:$0xf] }
 0x2b8   :  { %4460 = vmatpush.bf16.msra.mxu0 %v5920_v48  ;;  %4473 = vmatpush.bf16.msra.mxu1 %v6048_v1  ;;  %v8796_v60 = vadd.f32 %v4244_v45, %v4232_v52  ;;  %v6288_v48 = vor.u32 %v7884_v53, %v6285_v54  ;;  %v7848_v1 = vld [vmem:[#allocation3 + $0x62c] sm:$0xf]  ;;  %v6752_v45 = vor.u32 %v8000_v40, %v6749_v2  ;;  %v6733_v53 = vld [vmem:[#allocation3 + $0xad8] sm:$0xf0] }
 0x2b9   :  { %4484 = vmatpush.bf16.msra.mxu2 %v6208_v11  ;;  %4497 = vmatpush.bf16.msra.mxu3 %v6336_v12  ;;  %v7880_v11 = vld [vmem:[#allocation3 + $0x72c] sm:$0xf]  ;;  %v6269_v12 = vld [vmem:[#allocation3 + $0x738] sm:$0xf0]  ;;  %v6144_v34 = vor.u32 %v7848_v1, %v6141_v5 }
 0x2ba   :  { %v6272_v18 = vor.u32 %v7880_v11, %v6269_v12  ;;  %v8028_v54 = vld [vmem:[#allocation3 + $0xbcc] sm:$0xf]  ;;  %v6861_v55 = vld [vmem:[#allocation3 + $0xbd8] sm:$0xf0] }
 0x2bb   :  { %v6864_v1 = vor.u32 %v8028_v54, %v6861_v55  ;;  %v7952_v5 = vld [vmem:[#allocation3 + $0x96c] sm:$0xf]  ;;  %v6845_v12 = vld [vmem:[#allocation3 + $0xbb8] sm:$0xf0] }
 0x2bc   :  { %4461 = vmatpush.bf16.msra.mxu0 %v5904_v63  ;;  %4474 = vmatpush.bf16.msra.mxu1 %v6032_v19  ;;  %v7844_v63 = vld [vmem:[#allocation3 + $0x60c] sm:$0xf]  ;;  %v6125_v19 = vld [vmem:[#allocation3 + $0x618] sm:$0xf0] }
 0x2bd   :  { %4485 = vmatpush.bf16.msra.mxu2 %v6192_v25  ;;  %4498 = vmatpush.bf16.msra.mxu3 %v6320_v6  ;;  %v4233_v35 = vpop.f32.mrf.mxu2  ;;  %v4246_v4 = vpop.f32.mrf.mxu3  ;;  %v6608_v25 = vor.u32 %v7964_v21, %v6605_v17  ;;  %v6253_v6 = vld [vmem:[#allocation3 + $0x718] sm:$0xf0]  ;;  %v6128_v36 = vor.u32 %v7844_v63, %v6125_v19  ;;  %v8024_v11 = vld [vmem:[#allocation3 + $0xbac] sm:$0xf] }
 0x2be   :  { %v6256_v39 = vor.u32 %v7876_v22, %v6253_v6  ;;  %v7916_v21 = vld [vmem:[#allocation3 + $0x84c] sm:$0xf]  ;;  %v6413_v17 = vld [vmem:[#allocation3 + $0x858] sm:$0xf0] }
 0x2bf   :  { %v7948_v35 = vld [vmem:[#allocation3 + $0x94c] sm:$0xf]  ;;  %v6541_v4 = vld [vmem:[#allocation3 + $0x958] sm:$0xf0] }
 0x2c0   :  { %4462 = vmatpush.bf16.msra.mxu0 %v5888_v33  ;;  %4475 = vmatpush.bf16.msra.mxu1 %v6016_v3  ;;  %v8032_v33 = vld [vmem:[#allocation3 + $0xbec] sm:$0xf]  ;;  %v6877_v3 = vld [vmem:[#allocation3 + $0xbf8] sm:$0xf0]  ;;  %v6544_v6 = vor.u32 %v7948_v35, %v6541_v4 }
 0x2c1   :  { %4486 = vmatpush.bf16.msra.mxu2 %v6176_v42  ;;  %4499 = vmatpush.bf16.msra.mxu3 %v6304_v43  ;;  %v6592_v42 = vor.u32 %v7960_v31, %v6589_v32  ;;  %v7924_v43 = vld [vmem:[#allocation3 + $0x88c] sm:$0xf]  ;;  %v6701_v22 = vld [vmem:[#allocation3 + $0xa98] sm:$0xf0] }
 0x2c2   :  { %v6448_v58 = vor.u32 %v7924_v43, %v6445_v24  ;;  %v7988_v63 = vld [vmem:[#allocation3 + $0xa8c] sm:$0xf]  ;;  %v6397_v7 = vld [vmem:[#allocation3 + $0x838] sm:$0xf0] }
 0x2c3   :  { %v7912_v30 = vld [vmem:[#allocation3 + $0x82c] sm:$0xf]  ;;  %v6704_v31 = vor.u32 %v7988_v63, %v6701_v22  ;;  %v6525_v2 = vld [vmem:[#allocation3 + $0x938] sm:$0xf0] }
 0x2c4   :  { %4463 = vmatpush.bf16.msra.mxu0 %v5872_v0  ;;  %4476 = vmatpush.bf16.msra.mxu1 %v6000_v61  ;;  %v4257_v51 = vpop.f32.mrf.mxu0  ;;  %v4270_v52 = vpop.f32.mrf.mxu1  ;;  %v7920_v0 = vld [vmem:[#allocation3 + $0x86c] sm:$0xf]  ;;  %v6429_v61 = vld [vmem:[#allocation3 + $0x878] sm:$0xf0] }
 0x2c5   :  { %4487 = vmatpush.bf16.msra.mxu2 %v6160_v28  ;;  %4500 = vmatpush.bf16.msra.mxu3 %v6288_v48  ;;  %v4258_v46 = vadd.f32 %v4257_v51, %v8796_v60  ;;  %v6736_v48 = vor.u32 %v7996_v50, %v6733_v53  ;;  %v6717_v60 = vld [vmem:[#allocation3 + $0xab8] sm:$0xf0]  ;;  %v6432_v13 = vor.u32 %v7920_v0, %v6429_v61  ;;  %v7944_v40 = vld [vmem:[#allocation3 + $0x92c] sm:$0xf] }
 0x2c6   :  { %v7908_v43 = vld [vmem:[#allocation3 + $0x80c] sm:$0xf]  ;;  %v6381_v24 = vld [vmem:[#allocation3 + $0x818] sm:$0xf0] }
 0x2c7   :  { %4464 = vmatmul.bf16.vlgmr.msra.gmra.mxu0 %v8694_v62  ;;  %4477 = vmatmul.bf16.vlgmr.msra.gmra.mxu1 %v8696_v49  ;;  %v6880_v62 = vor.u32 %v8032_v33, %v6877_v3  ;;  %v6573_v49 = vld [vmem:[#allocation3 + $0x998] sm:$0xf0]  ;;  %v8801_v28 = vadd.f32 %v4270_v52, %v4258_v46  ;;  %v7984_v33 = vld [vmem:[#allocation3 + $0xa6c] sm:$0xf]  ;;  %v6384_v61 = vor.u32 %v7908_v43, %v6381_v24 }
 0x2c8   :  { %4508 = vmatpush.bf16.msrb.mxu0 %v6496_v10  ;;  %4521 = vmatpush.bf16.msrb.mxu1 %v6624_v20  ;;  %v6576_v59 = vor.u32 %v7956_v47, %v6573_v49  ;;  %v6557_v10 = vld [vmem:[#allocation3 + $0x978] sm:$0xf0]  ;;  %v7992_v20 = vld [vmem:[#allocation3 + $0xaac] sm:$0xf] }
 0x2c9   :  { %4488 = vmatpush.bf16.msra.mxu2 %v6144_v34  ;;  %4501 = vmatpush.bf16.msra.mxu3 %v6272_v18  ;;  %v6560_v16 = vor.u32 %v7952_v5, %v6557_v10  ;;  %v6720_v34 = vor.u32 %v7992_v20, %v6717_v60  ;;  %v6848_v18 = vor.u32 %v8024_v11, %v6845_v12  ;;  %v6685_v3 = vld [vmem:[#allocation3 + $0xa78] sm:$0xf0]  ;;  %v7980_v52 = vld [vmem:[#allocation3 + $0xa4c] sm:$0xf] }
 0x2ca   :  { %v6509_v51 = vld [vmem:[#allocation3 + $0x918] sm:$0xf0]  ;;  %v8012_v54 = vld [vmem:[#allocation3 + $0xb4c] sm:$0xf] }
 0x2cb   :  { %v6669_v53 = vld [vmem:[#allocation3 + $0xa58] sm:$0xf0]  ;;  %v8064_v46 = vld [vmem:[#allocation3 + $0xcec] sm:$0xf] }
 0x2cc   :  { %4509 = vmatpush.bf16.msrb.mxu0 %v6480_v23  ;;  %4522 = vmatpush.bf16.msrb.mxu1 %v6608_v25  ;;  %v4259_v19 = vpop.f32.mrf.mxu0  ;;  %v6829_v23 = vld [vmem:[#allocation3 + $0xb98] sm:$0xf0]  ;;  %v6416_v25 = vor.u32 %v7916_v21, %v6413_v17  ;;  %v7976_v10 = vld [vmem:[#allocation3 + $0xa2c] sm:$0xf] }
 0x2cd   :  { %4489 = vmatpush.bf16.msra.mxu2 %v6128_v36  ;;  %4502 = vmatpush.bf16.msra.mxu3 %v6256_v39  ;;  %v8016_v36 = vld [vmem:[#allocation3 + $0xb6c] sm:$0xf]  ;;  %v6813_v39 = vld [vmem:[#allocation3 + $0xb78] sm:$0xf0] }
 0x2ce   :  { %v6816_v47 = vor.u32 %v8016_v36, %v6813_v39  ;;  %v6797_v55 = vld [vmem:[#allocation3 + $0xb58] sm:$0xf0]  ;;  %v8008_v12 = vld [vmem:[#allocation3 + $0xb2c] sm:$0xf] }
 0x2cf   :  { %v7133_v0 = vld [vmem:[#allocation3 + $0xdf8] sm:$0xf0]  ;;  %v6800_v5 = vor.u32 %v8012_v54, %v6797_v55  ;;  %v8092_v17 = vld [vmem:[#allocation3 + $0xdcc] sm:$0xf] }
 0x2d0   :  { %4510 = vmatpush.bf16.msrb.mxu0 %v6464_v41  ;;  %4523 = vmatpush.bf16.msrb.mxu1 %v6592_v42  ;;  %v6400_v41 = vor.u32 %v7912_v30, %v6397_v7  ;;  %v6528_v42 = vor.u32 %v7944_v40, %v6525_v2  ;;  %v6653_v20 = vld [vmem:[#allocation3 + $0xa38] sm:$0xf0]  ;;  %v7972_v19 = vld [vmem:[#allocation3 + $0xa0c] sm:$0xf] }
 0x2d1   :  { %4534 = vmatpush.bf16.msrb.mxu2 %v6752_v45  ;;  %4547 = vmatpush.bf16.msrb.mxu3 %v6880_v62  ;;  %v7940_v45 = vld [vmem:[#allocation3 + $0x90c] sm:$0xf]  ;;  %v6688_v62 = vor.u32 %v7984_v33, %v6685_v3  ;;  %v6989_v21 = vld [vmem:[#allocation3 + $0xcd8] sm:$0xf0] }
 0x2d2   :  { %4490 = vmatmul.bf16.vlgmr.msra.gmra.mxu2 %v8704_v37  ;;  %4503 = vmatmul.bf16.vlgmr.msra.gmra.mxu3 %v8706_v38  ;;  %v4272_v37 = vpop.f32.mrf.mxu1  ;;  %v8020_v38 = vld [vmem:[#allocation3 + $0xb8c] sm:$0xf]  ;;  %v6973_v30 = vld [vmem:[#allocation3 + $0xcb8] sm:$0xf0] }
 0x2d3   :  { %v6832_v32 = vor.u32 %v8020_v38, %v6829_v23  ;;  %v6637_v37 = vld [vmem:[#allocation3 + $0xa18] sm:$0xf0]  ;;  %v8004_v22 = vld [vmem:[#allocation3 + $0xb0c] sm:$0xf] }
 0x2d4   :  { %4511 = vmatpush.bf16.msrb.mxu0 %v6448_v58  ;;  %4524 = vmatpush.bf16.msrb.mxu1 %v6576_v59  ;;  %v7005_v58 = vld [vmem:[#allocation3 + $0xcf8] sm:$0xf0]  ;;  %v8096_v59 = vld [vmem:[#allocation3 + $0xdec] sm:$0xf]  ;;  %v6640_v3 = vor.u32 %v7972_v19, %v6637_v37 }
 0x2d5   :  { %4535 = vmatpush.bf16.msrb.mxu2 %v6736_v48  ;;  %4548 = vmatpush.bf16.msrb.mxu3 %v6864_v1  ;;  %v8805_v49 = vpop.f32.mrf.mxu2  ;;  %v8807_v50 = vpop.f32.mrf.mxu3  ;;  %v6512_v48 = vor.u32 %v7940_v45, %v6509_v51  ;;  %v6672_v1 = vor.u32 %v7980_v52, %v6669_v53  ;;  %v7008_v60 = vor.u32 %v8064_v46, %v7005_v58  ;;  %v8088_v7 = vld [vmem:[#allocation3 + $0xdac] sm:$0xf]  ;;  %v7261_v40 = vld [vmem:[#allocation3 + $0xef8] sm:$0xf0] }
 0x2d6   :  { %v7136_v11 = vor.u32 %v8096_v59, %v7133_v0  ;;  %v8160_v2 = vld [vmem:[#allocation3 + $0xfec] sm:$0xf]  ;;  %v7389_v33 = vld [vmem:[#allocation3 + $0xff8] sm:$0xf0] }
 0x2d7   :  { %v6957_v43 = vld [vmem:[#allocation3 + $0xc98] sm:$0xf0]  ;;  %v8084_v45 = vld [vmem:[#allocation3 + $0xd8c] sm:$0xf] }
 0x2d8   :  { %4512 = vmatpush.bf16.msrb.mxu0 %v6432_v13  ;;  %4525 = vmatpush.bf16.msrb.mxu1 %v6560_v16  ;;  %v6781_v13 = vld [vmem:[#allocation3 + $0xb38] sm:$0xf0]  ;;  %v8060_v16 = vld [vmem:[#allocation3 + $0xccc] sm:$0xf] }
 0x2d9   :  { %4536 = vmatpush.bf16.msrb.mxu2 %v6720_v34  ;;  %4549 = vmatpush.bf16.msrb.mxu3 %v6848_v18  ;;  %v7117_v34 = vld [vmem:[#allocation3 + $0xdd8] sm:$0xf0]  ;;  %v6656_v18 = vor.u32 %v7976_v10, %v6653_v20  ;;  %v6784_v35 = vor.u32 %v8008_v12, %v6781_v13  ;;  %v6992_v38 = vor.u32 %v8060_v16, %v6989_v21  ;;  %v8156_v53 = vld [vmem:[#allocation3 + $0xfcc] sm:$0xf] }
 0x2da   :  { %v7120_v23 = vor.u32 %v8092_v17, %v7117_v34  ;;  %v7245_v52 = vld [vmem:[#allocation3 + $0xed8] sm:$0xf0]  ;;  %v8048_v58 = vld [vmem:[#allocation3 + $0xc6c] sm:$0xf] }
 0x2db   :  { %v7373_v54 = vld [vmem:[#allocation3 + $0xfd8] sm:$0xf0]  ;;  %v8152_v20 = vld [vmem:[#allocation3 + $0xfac] sm:$0xf] }
 0x2dc   :  { %4513 = vmatpush.bf16.msrb.mxu0 %v6416_v25  ;;  %4526 = vmatpush.bf16.msrb.mxu1 %v6544_v6  ;;  %v6765_v25 = vld [vmem:[#allocation3 + $0xb18] sm:$0xf0]  ;;  %v8056_v6 = vld [vmem:[#allocation3 + $0xcac] sm:$0xf] }
 0x2dd   :  { %4537 = vmatpush.bf16.msrb.mxu2 %v6704_v31  ;;  %4550 = vmatpush.bf16.msrb.mxu3 %v6832_v32  ;;  %v4285_v4 = vpop.f32.mrf.mxu2  ;;  %v4298_v63 = vpop.f32.mrf.mxu3  ;;  %v7101_v31 = vld [vmem:[#allocation3 + $0xdb8] sm:$0xf0]  ;;  %v8128_v32 = vld [vmem:[#allocation3 + $0xeec] sm:$0xf]  ;;  %v6768_v36 = vor.u32 %v8004_v22, %v6765_v25  ;;  %v6976_v39 = vor.u32 %v8056_v6, %v6973_v30 }
 0x2de   :  { %v7264_v24 = vor.u32 %v8128_v32, %v7261_v40  ;;  %v6941_v59 = vld [vmem:[#allocation3 + $0xc78] sm:$0xf0]  ;;  %v8044_v13 = vld [vmem:[#allocation3 + $0xc4c] sm:$0xf] }
 0x2df   :  { %v7229_v10 = vld [vmem:[#allocation3 + $0xeb8] sm:$0xf0]  ;;  %v8076_v34 = vld [vmem:[#allocation3 + $0xd4c] sm:$0xf] }
 0x2e0   :  { %4514 = vmatpush.bf16.msrb.mxu0 %v6400_v41  ;;  %4527 = vmatpush.bf16.msrb.mxu1 %v6528_v42  ;;  %v7104_v41 = vor.u32 %v8088_v7, %v7101_v31  ;;  %v8052_v42 = vld [vmem:[#allocation3 + $0xc8c] sm:$0xf]  ;;  %v6925_v16 = vld [vmem:[#allocation3 + $0xc58] sm:$0xf0] }
 0x2e1   :  { %4538 = vmatpush.bf16.msrb.mxu2 %v6688_v62  ;;  %4551 = vmatpush.bf16.msrb.mxu3 %v6816_v47  ;;  %v8124_v62 = vld [vmem:[#allocation3 + $0xecc] sm:$0xf]  ;;  %v6960_v55 = vor.u32 %v8052_v42, %v6957_v43  ;;  %v7213_v63 = vld [vmem:[#allocation3 + $0xe98] sm:$0xf0]  ;;  %v6928_v37 = vor.u32 %v8044_v13, %v6925_v16  ;;  %v8176_v13 = vld [vmem:[#allocation4 + $0x64] sm:$0xf0] }
 0x2e2   :  { %v7248_v0 = vor.u32 %v8124_v62, %v7245_v52  ;;  %v7341_v19 = vld [vmem:[#allocation3 + $0xf98] sm:$0xf0]  ;;  %v8072_v30 = vld [vmem:[#allocation3 + $0xd2c] sm:$0xf]  ;;  %v7507_v16 = vld [vmem:[#allocation4 + $0xe0] sm:$0xf] }
 0x2e3   :  { %v7037_v7 = vld [vmem:[#allocation3 + $0xd38] sm:$0xf0]  ;;  %v8112_v31 = vld [vmem:[#allocation3 + $0xe6c] sm:$0xf] }
 0x2e4   :  { %4515 = vmatpush.bf16.msrb.mxu0 %v6384_v61  ;;  %4528 = vmatpush.bf16.msrb.mxu1 %v6512_v48  ;;  %v8811_v47 = vpop.f32.mrf.mxu0  ;;  %v8813_v51 = vpop.f32.mrf.mxu1  ;;  %v7376_v61 = vor.u32 %v8156_v53, %v7373_v54  ;;  %v8080_v48 = vld [vmem:[#allocation3 + $0xd6c] sm:$0xf]  ;;  %v7197_v32 = vld [vmem:[#allocation3 + $0xe78] sm:$0xf0]  ;;  %v7451_v54 = vld [vmem:[#allocation4 + $0x70] sm:$0xf] }
 0x2e5   :  { %4539 = vmatpush.bf16.msrb.mxu2 %v6672_v1  ;;  %4552 = vmatpush.bf16.msrb.mxu3 %v6800_v5  ;;  %v7069_v1 = vld [vmem:[#allocation3 + $0xd78] sm:$0xf0]  ;;  %v8120_v5 = vld [vmem:[#allocation3 + $0xeac] sm:$0xf]  ;;  %v7200_v42 = vor.u32 %v8112_v31, %v7197_v32 }
 0x2e6   :  { %v7072_v12 = vor.u32 %v8080_v48, %v7069_v1  ;;  %v7232_v21 = vor.u32 %v8120_v5, %v7229_v10  ;;  %v8144_v40 = vld [vmem:[#allocation3 + $0xf6c] sm:$0xf]  ;;  %v7181_v62 = vld [vmem:[#allocation3 + $0xe58] sm:$0xf0] }
 0x2e7   :  { %4516 = vmatmul.bf16.vlgmr.msrb.gmra.mxu0 %v8712_v14  ;;  %4529 = vmatmul.bf16.vlgmr.msrb.gmra.mxu1 %v8714_v15  ;;  %v7392_v14 = vor.u32 %v8160_v2, %v7389_v33  ;;  %v7085_v15 = vld [vmem:[#allocation3 + $0xd98] sm:$0xf0]  ;;  %v8140_v52 = vld [vmem:[#allocation3 + $0xf4c] sm:$0xf] }
 0x2e8   :  { %4560 = vmatpush.bf16.msra.mxu0 %v7008_v60  ;;  %4573 = vmatpush.bf16.msra.mxu1 %v7136_v11  ;;  %v7088_v46 = vor.u32 %v8084_v45, %v7085_v15  ;;  %v7357_v60 = vld [vmem:[#allocation3 + $0xfb8] sm:$0xf0]  ;;  %v6944_v11 = vor.u32 %v8048_v58, %v6941_v59  ;;  %v8108_v15 = vld [vmem:[#allocation3 + $0xe4c] sm:$0xf]  ;;  %v8194_v58 = vld [vmem:[#allocation4 + $0xf4] sm:$0xf0] }
 0x2e9   :  { %4540 = vmatpush.bf16.msrb.mxu2 %v6656_v18  ;;  %4553 = vmatpush.bf16.msrb.mxu3 %v6784_v35  ;;  %v7360_v17 = vor.u32 %v8152_v20, %v7357_v60  ;;  %v7053_v18 = vld [vmem:[#allocation3 + $0xd58] sm:$0xf0]  ;;  %v8116_v35 = vld [vmem:[#allocation3 + $0xe8c] sm:$0xf] }
 0x2ea   :  { %v7056_v22 = vor.u32 %v8076_v34, %v7053_v18  ;;  %v7216_v25 = vor.u32 %v8116_v35, %v7213_v63  ;;  %v7325_v2 = vld [vmem:[#allocation3 + $0xf78] sm:$0xf0]  ;;  %v8104_v1 = vld [vmem:[#allocation3 + $0xe2c] sm:$0xf] }
 0x2eb   :  { %v7328_v43 = vor.u32 %v8144_v40, %v7325_v2  ;;  %v7021_v45 = vld [vmem:[#allocation3 + $0xd18] sm:$0xf0]  ;;  %v8136_v60 = vld [vmem:[#allocation3 + $0xf2c] sm:$0xf]  ;;  %v7427_v2 = vld [vmem:[#allocation4 + $0x40] sm:$0xf] }
 0x2ec   :  { %4561 = vmatpush.bf16.msra.mxu0 %v6992_v38  ;;  %4574 = vmatpush.bf16.msra.mxu1 %v7120_v23  ;;  %v4311_v4 = vpop.f32.mrf.mxu0  ;;  %v8040_v38 = vld [vmem:[#allocation3 + $0xc2c] sm:$0xf]  ;;  %v6909_v23 = vld [vmem:[#allocation3 + $0xc38] sm:$0xf0] }
 0x2ed   :  { %4541 = vmatpush.bf16.msrb.mxu2 %v6640_v3  ;;  %4554 = vmatpush.bf16.msrb.mxu3 %v6768_v36  ;;  %v6912_v33 = vor.u32 %v8040_v38, %v6909_v23  ;;  %v7040_v3 = vor.u32 %v8072_v30, %v7037_v7  ;;  %v8036_v36 = vld [vmem:[#allocation3 + $0xc0c] sm:$0xf]  ;;  %v7309_v53 = vld [vmem:[#allocation3 + $0xf58] sm:$0xf0]  ;;  %v8174_v38 = vld [vmem:[#allocation4 + $0x54] sm:$0xf0] }
 0x2ee   :  { %v7312_v48 = vor.u32 %v8140_v52, %v7309_v53  ;;  %v7165_v5 = vld [vmem:[#allocation3 + $0xe38] sm:$0xf0]  ;;  %v8100_v4 = vld [vmem:[#allocation3 + $0xe0c] sm:$0xf]  ;;  %v7499_v23 = vld [vmem:[#allocation4 + $0xd0] sm:$0xf] }
 0x2ef   :  { %v8210_v30 = vld [vmem:[#allocation4 + $0x174] sm:$0xf0] }
 0x2f0   :  { %4562 = vmatpush.bf16.msra.mxu0 %v6976_v39  ;;  %4575 = vmatpush.bf16.msra.mxu1 %v7104_v41  ;;  %v6893_v39 = vld [vmem:[#allocation3 + $0xc18] sm:$0xf0]  ;;  %v8068_v41 = vld [vmem:[#allocation3 + $0xd0c] sm:$0xf]  ;;  %v8170_v53 = vld [vmem:[#allocation4 + $0x34] sm:$0xf0] }
 0x2f1   :  { %4586 = vmatpush.bf16.msra.mxu2 %v7264_v24  ;;  %4599 = vmatpush.bf16.msra.mxu3 %v7392_v14  ;;  %v6896_v59 = vor.u32 %v8036_v36, %v6893_v39  ;;  %v7491_v36 = vld [vmem:[#allocation4 + $0xc0] sm:$0xf] }
 0x2f2   :  { %4542 = vmatmul.bf16.vlgmr.msrb.gmra.mxu2 %v8718_v56  ;;  %4555 = vmatmul.bf16.vlgmr.msrb.gmra.mxu3 %v8720_v57  ;;  %v4324_v56 = vpop.f32.mrf.mxu1  ;;  %v8148_v57 = vld [vmem:[#allocation3 + $0xf8c] sm:$0xf] }
 0x2f3   :  { %v7344_v6 = vor.u32 %v8148_v57, %v7341_v19  ;;  %v7149_v56 = vld [vmem:[#allocation3 + $0xe18] sm:$0xf0]  ;;  %v8132_v19 = vld [vmem:[#allocation3 + $0xf0c] sm:$0xf] }
 0x2f4   :  { %4563 = vmatpush.bf16.msra.mxu0 %v6960_v55  ;;  %4576 = vmatpush.bf16.msra.mxu1 %v7088_v46  ;;  %v8178_v55 = vld [vmem:[#allocation4 + $0x74] sm:$0xf0]  ;;  %v7515_v46 = vld [vmem:[#allocation4 + $0xf0] sm:$0xf]  ;;  %v7152_v7 = vor.u32 %v8100_v4, %v7149_v56 }
 0x2f5   :  { %4587 = vmatpush.bf16.msra.mxu2 %v7248_v0  ;;  %4600 = vmatpush.bf16.msra.mxu3 %v7376_v61  ;;  %v8817_v24 = vpop.f32.mrf.mxu2  ;;  %v8819_v14 = vpop.f32.mrf.mxu3  ;;  %v7024_v0 = vor.u32 %v8068_v41, %v7021_v45  ;;  %v7184_v61 = vor.u32 %v8108_v15, %v7181_v62  ;;  %v7452_v10 = vor.u32 %v8178_v55, %v7451_v54  ;;  %v7419_v62 = vld [vmem:[#allocation4 + $0x30] sm:$0xf]  ;;  %v8186_v55 = vld [vmem:[#allocation4 + $0xb4] sm:$0xf0] }
 0x2f6   :  { %v7516_v20 = vor.u32 %v8194_v58, %v7515_v46  ;;  %v7483_v54 = vld [vmem:[#allocation4 + $0xb0] sm:$0xf]  ;;  %v8206_v46 = vld [vmem:[#allocation4 + $0x154] sm:$0xf0] }
 0x2f8   :  { %4564 = vmatpush.bf16.msra.mxu0 %v6944_v11  ;;  %4577 = vmatpush.bf16.msra.mxu1 %v7072_v12  ;;  %v7293_v11 = vld [vmem:[#allocation3 + $0xf38] sm:$0xf0]  ;;  %v7443_v12 = vld [vmem:[#allocation4 + $0x60] sm:$0xf] }
 0x2f9   :  { %4588 = vmatpush.bf16.msra.mxu2 %v7232_v21  ;;  %4601 = vmatpush.bf16.msra.mxu3 %v7360_v17  ;;  %v8192_v21 = vld [vmem:[#allocation4 + $0xe4] sm:$0xf0]  ;;  %v7168_v17 = vor.u32 %v8104_v1, %v7165_v5  ;;  %v7296_v34 = vor.u32 %v8136_v60, %v7293_v11  ;;  %v7444_v63 = vor.u32 %v8176_v13, %v7443_v12  ;;  %v7475_v5 = vld [vmem:[#allocation4 + $0xa0] sm:$0xf]  ;;  %v7403_v12 = vld [vmem:[#allocation4 + $0x10] sm:$0xf] }
 0x2fa   :  { %v7508_v57 = vor.u32 %v8192_v21, %v7507_v16  ;;  %v8168_v1 = vld [vmem:[#allocation4 + $0x24] sm:$0xf0]  ;;  %v7555_v60 = vld [vmem:[#allocation4 + $0x140] sm:$0xf]  ;;  %v8166_v16 = vld [vmem:[#allocation4 + $0x14] sm:$0xf0] }
 0x2fb   :  { %v7467_v21 = vld [vmem:[#allocation4 + $0x90] sm:$0xf]  ;;  %v7404_v4 = vor.u32 %v8166_v16, %v7403_v12  ;;  %v8207_v12 = vld [vmem:[#allocation4 + $0x164] sm:$0xf] }
 0x2fc   :  { %4565 = vmatpush.bf16.msra.mxu0 %v6928_v37  ;;  %4578 = vmatpush.bf16.msra.mxu1 %v7056_v22  ;;  %v7277_v37 = vld [vmem:[#allocation3 + $0xf18] sm:$0xf0]  ;;  %v7435_v22 = vld [vmem:[#allocation4 + $0x50] sm:$0xf] }
 0x2fd   :  { %4589 = vmatpush.bf16.msra.mxu2 %v7216_v25  ;;  %4602 = vmatpush.bf16.msra.mxu3 %v7344_v6  ;;  %v4337_v18 = vpop.f32.mrf.mxu2  ;;  %v4350_v35 = vpop.f32.mrf.mxu3  ;;  %v8190_v25 = vld [vmem:[#allocation4 + $0xd4] sm:$0xf0]  ;;  %v7579_v6 = vld [vmem:[#allocation4 + $0x170] sm:$0xf]  ;;  %v7280_v31 = vor.u32 %v8132_v19, %v7277_v37  ;;  %v7436_v32 = vor.u32 %v8174_v38, %v7435_v22  ;;  %v7459_v22 = vld [vmem:[#allocation4 + $0x80] sm:$0xf] }
 0x2fe   :  { %v7500_v40 = vor.u32 %v8190_v25, %v7499_v23  ;;  %v7547_v18 = vld [vmem:[#allocation4 + $0x130] sm:$0xf]  ;;  %v8202_v35 = vld [vmem:[#allocation4 + $0x134] sm:$0xf0]  ;;  %v8180_v38 = vld [vmem:[#allocation4 + $0x84] sm:$0xf0] }
 0x2ff   :  { %v7539_v23 = vld [vmem:[#allocation4 + $0x120] sm:$0xf] }
 0x300   :  { %4566 = vmatpush.bf16.msra.mxu0 %v6912_v33  ;;  %4579 = vmatpush.bf16.msra.mxu1 %v7040_v3  ;;  %v7580_v33 = vor.u32 %v8210_v30, %v7579_v6  ;;  %v8172_v3 = vld [vmem:[#allocation4 + $0x44] sm:$0xf0]  ;;  %v8177_v30 = vld [vmem:[#allocation4 + $0x74] sm:$0xf] }
 0x301   :  { %4590 = vmatpush.bf16.msra.mxu2 %v7200_v42  ;;  %4603 = vmatpush.bf16.msra.mxu3 %v7328_v43  ;;  %v7571_v42 = vld [vmem:[#allocation4 + $0x160] sm:$0xf]  ;;  %v8208_v43 = vld [vmem:[#allocation4 + $0x164] sm:$0xf0]  ;;  %v7428_v45 = vor.u32 %v8172_v3, %v7427_v2  ;;  %v7460_v2 = vor.u32 %v8180_v38, %v7459_v22  ;;  %v7565_v22 = vld [vmem:[#allocation4 + $0x158] sm:$0xf0] }
 0x302   :  { %v7572_v52 = vor.u32 %v8208_v43, %v7571_v42  ;;  %v8200_v6 = vld [vmem:[#allocation4 + $0x124] sm:$0xf0]  ;;  %v8175_v42 = vld [vmem:[#allocation4 + $0x64] sm:$0xf]  ;;  %v7445_v43 = vld [vmem:[#allocation4 + $0x68] sm:$0xf0] }
 0x304   :  { %4567 = vmatpush.bf16.msra.mxu0 %v6896_v59  ;;  %4580 = vmatpush.bf16.msra.mxu1 %v7024_v0  ;;  %v8825_v39 = vpop.f32.mrf.mxu0  ;;  %v8827_v41 = vpop.f32.mrf.mxu1  ;;  %v7420_v59 = vor.u32 %v8170_v53, %v7419_v62  ;;  %v7484_v0 = vor.u32 %v8186_v55, %v7483_v54  ;;  %v8844_v62 = vpack.c.bf16 %v8790_v44, %v8790_v44  ;;  %v7501_v44 = vld [vmem:[#allocation4 + $0xd8] sm:$0xf0] }
 0x305   :  { %4591 = vmatpush.bf16.msra.mxu2 %v7184_v61  ;;  %4604 = vmatpush.bf16.msra.mxu3 %v7312_v48  ;;  %v7411_v61 = vld [vmem:[#allocation4 + $0x20] sm:$0xf]  ;;  %v7448_v55 = vor.u32 %v8175_v42, %v7445_v43  ;;  %v8181_v42 = vld [vmem:[#allocation4 + $0x94] sm:$0xf]  ;;  %v7469_v43 = vld [vmem:[#allocation4 + $0x98] sm:$0xf0] }
 0x306   :  { %v7412_v11 = vor.u32 %v8168_v1, %v7411_v61  ;;  %v7581_v61 = vld [vmem:[#allocation4 + $0x178] sm:$0xf0] }
 0x307   :  { %4568 = vmatmul.bf16.vlgmr.msra.gmra.mxu0 %v8728_v26  ;;  %4581 = vmatmul.bf16.vlgmr.msra.gmra.mxu1 %v8730_v27  ;;  %v8188_v26 = vld [vmem:[#allocation4 + $0xc4] sm:$0xf0]  ;;  %v4284_v27 = vadd.f32 %v8805_v49, %v8801_v28  ;;  %v7563_v49 = vld [vmem:[#allocation4 + $0x150] sm:$0xf] }
 0x308   :  { %5006 = vmatpush.bf16.msrb.mxu0 %v7452_v10  ;;  %5019 = vmatpush.bf16.msrb.mxu1 %v7516_v20  ;;  %v7492_v15 = vor.u32 %v8188_v26, %v7491_v36  ;;  %v7564_v48 = vor.u32 %v8206_v46, %v7563_v49  ;;  %v8184_v10 = vld [vmem:[#allocation4 + $0xa4] sm:$0xf0]  ;;  %v7531_v36 = vld [vmem:[#allocation4 + $0x110] sm:$0xf] }
 0x309   :  { %4592 = vmatpush.bf16.msra.mxu2 %v7168_v17  ;;  %4605 = vmatpush.bf16.msra.mxu3 %v7296_v34  ;;  %v4297_v28 = vadd.f32 %v8807_v50, %v4284_v27  ;;  %v8182_v17 = vld [vmem:[#allocation4 + $0x94] sm:$0xf0]  ;;  %v8196_v49 = vld [vmem:[#allocation4 + $0x104] sm:$0xf0] }
 0x30a   :  { %v7468_v56 = vor.u32 %v8182_v17, %v7467_v21  ;;  %v8198_v27 = vld [vmem:[#allocation4 + $0x114] sm:$0xf0] }
 0x30b   :  { %v4310_v58 = vadd.f32 %v8811_v47, %v4297_v28  ;;  %v7476_v47 = vor.u32 %v8184_v10, %v7475_v5  ;;  %v7523_v28 = vld [vmem:[#allocation4 + $0x100] sm:$0xf]  ;;  %v8253_v5 = vld [vmem:[#allocation10] sm:$0xf] }
 0x30c   :  { %5007 = vmatpush.bf16.msrb.mxu0 %v7444_v63  ;;  %5020 = vmatpush.bf16.msrb.mxu1 %v7508_v57  ;;  %v4363_v20 = vpop.f32.mrf.mxu0  ;;  %v4376_v50 = vpop.f32.mrf.mxu1  ;;  %v7395_v63 = vld [vmem:[#allocation4] sm:$0xf]  ;;  %v7548_v57 = vor.u32 %v8202_v35, %v7547_v18  ;;  %v1215_v10 = vperm.slane %v8253_v5, 3  ;;  %v7533_v5 = vld [vmem:[#allocation4 + $0x118] sm:$0xf0] }
 0x30d   :  { %4593 = vmatpush.bf16.msra.mxu2 %v7152_v7  ;;  %4606 = vmatpush.bf16.msra.mxu3 %v7280_v31  ;;  %v8193_v7 = vld [vmem:[#allocation4 + $0xf4] sm:$0xf]  ;;  %v7517_v31 = vld [vmem:[#allocation4 + $0xf8] sm:$0xf0] }
 0x30e   :  { %v7520_v26 = vor.u32 %v8193_v7, %v7517_v31  ;;  %v7477_v7 = vld [vmem:[#allocation4 + $0xa8] sm:$0xf0]  ;;  %v8203_v31 = vld [vmem:[#allocation4 + $0x144] sm:$0xf] }
 0x310   :  { %5008 = vmatpush.bf16.msrb.mxu0 %v7436_v32  ;;  %5021 = vmatpush.bf16.msrb.mxu1 %v7500_v40 }
 0x311   :  { %5032 = vmatpush.bf16.msrb.mxu2 %v7580_v33  ;;  %4607 = vmatmul.bf16.vlgmr.msra.gmra.mxu3 %v8736_v9  ;;  %v4323_v9 = vadd.f32 %v8813_v51, %v4310_v58  ;;  %v8164_v51 = vld [vmem:[#allocation4 + $0x4] sm:$0xf0]  ;;  %v7540_v33 = vor.u32 %v8200_v6, %v7539_v23  ;;  %v8173_v58 = vld [vmem:[#allocation4 + $0x54] sm:$0xf]  ;;  %v8167_v6 = vld [vmem:[#allocation4 + $0x24] sm:$0xf] }
 0x312   :  { %4594 = vmatmul.bf16.vlgmr.msra.gmra.mxu2 %v8734_v8  ;;  %v8204_v8 = vld [vmem:[#allocation4 + $0x144] sm:$0xf0]  ;;  %v7396_v40 = vor.u32 %v8164_v51, %v7395_v63  ;;  %v7421_v63 = vld [vmem:[#allocation4 + $0x38] sm:$0xf0]  ;;  %v8185_v51 = vld [vmem:[#allocation4 + $0xb4] sm:$0xf] }
 0x313   :  { %v7556_v13 = vor.u32 %v8204_v8, %v7555_v60  ;;  %v4336_v34 = vadd.f32 %v8817_v24, %v4323_v9  ;;  %v7453_v24 = vld [vmem:[#allocation4 + $0x78] sm:$0xf0]  ;;  %v8171_v8 = vld [vmem:[#allocation4 + $0x44] sm:$0xf]  ;;  %v7429_v9 = vld [vmem:[#allocation4 + $0x48] sm:$0xf0] }
 0x314   :  { %5009 = vmatpush.bf16.msrb.mxu0 %v7428_v45  ;;  %5022 = vmatpush.bf16.msrb.mxu1 %v7492_v15  ;;  %v7456_v3 = vor.u32 %v8177_v30, %v7453_v24  ;;  %v7509_v45 = vld [vmem:[#allocation4 + $0xe8] sm:$0xf0]  ;;  %v8839_v15 = vpack.c.bf16 %v8762_v29, %v8762_v29  ;;  %v8183_v24 = vld [vmem:[#allocation4 + $0xa4] sm:$0xf] }
 0x315   :  { %5033 = vmatpush.bf16.msrb.mxu2 %v7572_v52  ;;  %v4387_v19 = vpop.f32.mrf.mxu2  ;;  %v4400_v37 = vpop.f32.mrf.mxu3  ;;  %v4349_v25 = vadd.f32 %v8819_v14, %v4336_v34  ;;  %v8191_v14 = vld [vmem:[#allocation4 + $0xe4] sm:$0xf]  ;;  %v7532_v52 = vor.u32 %v8198_v27, %v7531_v36  ;;  %v7432_v34 = vor.u32 %v8171_v8, %v7429_v9  ;;  %v7413_v30 = vld [vmem:[#allocation4 + $0x28] sm:$0xf0]  ;;  %v7405_v27 = vld [vmem:[#allocation4 + $0x18] sm:$0xf0] }
 0x316   :  { %v7512_v29 = vor.u32 %v8191_v14, %v7509_v45  ;;  %v8201_v14 = vld [vmem:[#allocation4 + $0x134] sm:$0xf]  ;;  %v7549_v45 = vld [vmem:[#allocation4 + $0x138] sm:$0xf0]  ;;  %v7525_v8 = vld [vmem:[#allocation4 + $0x108] sm:$0xf0] }
 0x317   :  { %v4362_v32 = vadd.f32 %v8825_v39, %v4349_v25 }
 0x318   :  { %5010 = vmatpush.bf16.msrb.mxu0 %v7420_v59  ;;  %5023 = vmatpush.bf16.msrb.mxu1 %v7484_v0  ;;  %v7437_v59 = vld [vmem:[#allocation4 + $0x58] sm:$0xf0]  ;;  %v8209_v0 = vld [vmem:[#allocation4 + $0x174] sm:$0xf] }
 0x319   :  { %5034 = vmatpush.bf16.msrb.mxu2 %v7564_v48  ;;  %v4375_v39 = vadd.f32 %v8827_v41, %v4362_v32  ;;  %v8189_v41 = vld [vmem:[#allocation4 + $0xd4] sm:$0xf]  ;;  %v7524_v48 = vor.u32 %v8196_v49, %v7523_v28  ;;  %v7440_v1 = vor.u32 %v8173_v58, %v7437_v59  ;;  %v7584_v60 = vor.u32 %v8209_v0, %v7581_v61  ;;  %v7557_v32 = vld [vmem:[#allocation4 + $0x148] sm:$0xf0]  ;;  %v8179_v28 = vld [vmem:[#allocation4 + $0x84] sm:$0xf] }
 0x31a   :  { %v7504_v50 = vor.u32 %v8189_v41, %v7501_v44  ;;  %v7560_v36 = vor.u32 %v8203_v31, %v7557_v32  ;;  %v8199_v58 = vld [vmem:[#allocation4 + $0x124] sm:$0xf]  ;;  %v7541_v59 = vld [vmem:[#allocation4 + $0x128] sm:$0xf0]  ;;  %v8214_v31 = vld [vmem:[#allocation4 + $0x194] sm:$0xf0] }
 0x31b   :  { %v4388_v46 = vadd.f32 %v4387_v19, %v4375_v39  ;;  %v7485_v19 = vld [vmem:[#allocation4 + $0xb8] sm:$0xf0] }
 0x31c   :  { %5011 = vmatpush.bf16.msrb.mxu0 %v7412_v11  ;;  %5024 = vmatpush.bf16.msrb.mxu1 %v7476_v47  ;;  %v8187_v11 = vld [vmem:[#allocation4 + $0xc4] sm:$0xf]  ;;  %v7493_v47 = vld [vmem:[#allocation4 + $0xc8] sm:$0xf0]  ;;  %v7488_v23 = vor.u32 %v8185_v51, %v7485_v19  ;;  %v8220_v19 = vld [vmem:[#allocation4 + $0x1c4] sm:$0xf0] }
 0x31d   :  { %5035 = vmatpush.bf16.msrb.mxu2 %v7556_v13  ;;  %v4389_v53 = vpop.f32.mrf.mxu2  ;;  %v4402_v54 = vpop.f32.mrf.mxu3  ;;  %v4401_v20 = vadd.f32 %v4400_v37, %v4388_v46  ;;  %v7573_v13 = vld [vmem:[#allocation4 + $0x168] sm:$0xf0]  ;;  %v7496_v35 = vor.u32 %v8187_v11, %v7493_v47  ;;  %v8205_v37 = vld [vmem:[#allocation4 + $0x154] sm:$0xf] }
 0x31e   :  { %v7568_v25 = vor.u32 %v8205_v37, %v7565_v22  ;;  %v7552_v53 = vor.u32 %v8201_v14, %v7549_v45  ;;  %v8163_v54 = vld [vmem:[#allocation4 + $0x4] sm:$0xf]  ;;  %v7611_v22 = vld [vmem:[#allocation4 + $0x1b0] sm:$0xf]  ;;  %v7637_v14 = vld [vmem:[#allocation4 + $0x1e8] sm:$0xf0] }
 0x31f   :  { %v8848_v18 = vpack.c.bf16 %v4401_v20, %v4401_v20 }
 0x320   :  { %5012 = vmatpush.bf16.msrb.mxu0 %v7404_v4  ;;  %5025 = vmatpush.bf16.msrb.mxu1 %v7468_v56  ;;  %v7576_v4 = vor.u32 %v8207_v12, %v7573_v13  ;;  %v8169_v56 = vld [vmem:[#allocation4 + $0x34] sm:$0xf]  ;;  %v7643_v12 = vld [vmem:[#allocation4 + $0x1f0] sm:$0xf]  ;;  %v8226_v13 = vld [vmem:[#allocation4 + $0x1f4] sm:$0xf0] }
 0x321   :  { %5036 = vmatpush.bf16.msrb.mxu2 %v7548_v57  ;;  %v7424_v38 = vor.u32 %v8169_v56, %v7421_v63 }
 0x324   :  { %5013 = vmatpush.bf16.msrb.mxu0 %v7396_v40  ;;  %5026 = vmatpush.bf16.msrb.mxu1 %v7460_v2  ;;  %v4413_v16 = vpop.f32.mrf.mxu0  ;;  %v4426_v21 = vpop.f32.mrf.mxu1 }
 0x325   :  { %5037 = vmatpush.bf16.msrb.mxu2 %v7540_v33  ;;  %v4414_v17 = vadd.f32 %v4413_v16, %v1215_v10  ;;  %v7416_v33 = vor.u32 %v8167_v6, %v7413_v30  ;;  %v7644_v16 = vor.u32 %v8226_v13, %v7643_v12  ;;  %v7597_v12 = vld [vmem:[#allocation4 + $0x198] sm:$0xf0] }
 0x327   :  { %5014 = vmatmul.bf16.vlgmr.msrb.gmra.mxu0 %v8839_v15  ;;  %5027 = vmatmul.bf16.vlgmr.msrb.gmra.mxu1 %v8844_v62  ;;  %v4427_v57 = vadd.f32 %v4426_v21, %v4414_v17  ;;  %v7635_v21 = vld [vmem:[#allocation4 + $0x1e0] sm:$0xf]  ;;  %v8224_v17 = vld [vmem:[#allocation4 + $0x1e4] sm:$0xf0] }
 0x328   :  { %5058 = vmatpush.bf16.msra.mxu0 %v7456_v3  ;;  %5071 = vmatpush.bf16.msra.mxu1 %v7520_v26  ;;  %v7480_v3 = vor.u32 %v8183_v24, %v7477_v7  ;;  %v8165_v26 = vld [vmem:[#allocation4 + $0x14] sm:$0xf]  ;;  %v7595_v7 = vld [vmem:[#allocation4 + $0x190] sm:$0xf] }
 0x329   :  { %5038 = vmatpush.bf16.msrb.mxu2 %v7532_v52  ;;  %v7408_v39 = vor.u32 %v8165_v26, %v7405_v27  ;;  %v7472_v52 = vor.u32 %v8181_v42, %v7469_v43  ;;  %5045 = vmatpush.bf16.msrb.mxu3 %v7644_v16  ;;  %v7596_v32 = vor.u32 %v8214_v31, %v7595_v7  ;;  %v7645_v27 = vld [vmem:[#allocation4 + $0x1f8] sm:$0xf0]  ;;  %v8223_v43 = vld [vmem:[#allocation4 + $0x1e4] sm:$0xf] }
 0x32a   :  { %v7640_v45 = vor.u32 %v8223_v43, %v7637_v14 }
 0x32c   :  { %5059 = vmatpush.bf16.msra.mxu0 %v7448_v55  ;;  %5072 = vmatpush.bf16.msra.mxu1 %v7512_v29  ;;  %v4415_v40 = vpop.f32.mrf.mxu0  ;;  %v4428_v2 = vpop.f32.mrf.mxu1  ;;  %v7397_v55 = vld [vmem:[#allocation4 + $0x8] sm:$0xf0] }
 0x32d   :  { %5039 = vmatpush.bf16.msrb.mxu2 %v7524_v48  ;;  %v7461_v29 = vld [vmem:[#allocation4 + $0x88] sm:$0xf0]  ;;  %v7400_v44 = vor.u32 %v8163_v54, %v7397_v55  ;;  %v7544_v48 = vor.u32 %v8199_v58, %v7541_v59  ;;  %v7629_v54 = vld [vmem:[#allocation4 + $0x1d8] sm:$0xf0] }
 0x32e   :  { %v7464_v61 = vor.u32 %v8179_v28, %v7461_v29  ;;  %v7621_v29 = vld [vmem:[#allocation4 + $0x1c8] sm:$0xf0] }
 0x330   :  { %5060 = vmatpush.bf16.msra.mxu0 %v7440_v1  ;;  %5073 = vmatpush.bf16.msra.mxu1 %v7504_v50  ;;  %v8197_v1 = vld [vmem:[#allocation4 + $0x114] sm:$0xf] }
 0x331   :  { %5084 = vmatpush.bf16.msra.mxu2 %v7584_v60  ;;  %v7536_v10 = vor.u32 %v8197_v1, %v7533_v5  ;;  %v8195_v60 = vld [vmem:[#allocation4 + $0x104] sm:$0xf]  ;;  %v7605_v5 = vld [vmem:[#allocation4 + $0x1a8] sm:$0xf0] }
 0x332   :  { %5040 = vmatmul.bf16.vlgmr.msrb.gmra.mxu2 %v8848_v18  ;;  %v7528_v9 = vor.u32 %v8195_v60, %v7525_v8  ;;  %v8215_v1 = vld [vmem:[#allocation4 + $0x1a4] sm:$0xf] }
 0x334   :  { %5061 = vmatpush.bf16.msra.mxu0 %v7432_v34  ;;  %5074 = vmatpush.bf16.msra.mxu1 %v7496_v35  ;;  %v7636_v34 = vor.u32 %v8224_v17, %v7635_v21  ;;  %v8211_v21 = vld [vmem:[#allocation4 + $0x184] sm:$0xf]  ;;  %v7589_v17 = vld [vmem:[#allocation4 + $0x188] sm:$0xf0] }
 0x335   :  { %5085 = vmatpush.bf16.msra.mxu2 %v7576_v4  ;;  %v4439_v49 = vpop.f32.mrf.mxu2  ;;  %v4452_v46 = vpop.f32.mrf.mxu3 }
 0x336   :  { %v4440_v41 = vadd.f32 %v4439_v49, %v4427_v57  ;;  %5046 = vmatpush.bf16.msrb.mxu3 %v7636_v34  ;;  %v7619_v57 = vld [vmem:[#allocation4 + $0x1c0] sm:$0xf]  ;;  %v7592_v34 = vor.u32 %v8211_v21, %v7589_v17 }
 0x337   :  { %v7620_v37 = vor.u32 %v8220_v19, %v7619_v57  ;;  %v5204_v21 = vld [vmem:[#allocation16 + $0x40] sm:$0xff] }
 0x338   :  { %5062 = vmatpush.bf16.msra.mxu0 %v7424_v38  ;;  %5075 = vmatpush.bf16.msra.mxu1 %v7488_v23  ;;  %v8851_v0 = vadd.f32 %v4452_v46, %v4440_v41  ;;  %v8218_v38 = vld [vmem:[#allocation4 + $0x1b4] sm:$0xf0]  ;;  %v7603_v23 = vld [vmem:[#allocation4 + $0x1a0] sm:$0xf]  ;;  %v8219_v46 = vld [vmem:[#allocation4 + $0x1c4] sm:$0xf] }
 0x339   :  { %5086 = vmatpush.bf16.msra.mxu2 %v7568_v25  ;;  %v8216_v25 = vld [vmem:[#allocation4 + $0x1a4] sm:$0xf0]  ;;  %v7624_v59 = vor.u32 %v8219_v46, %v7621_v29  ;;  %v8217_v41 = vld [vmem:[#allocation4 + $0x1b4] sm:$0xf] }
 0x33a   :  { %v7604_v24 = vor.u32 %v8216_v25, %v7603_v23  ;;  %v4680_v23 = vld [vmem:[#allocation11] sm:$0x3] }
 0x33b   :  { %v4682_v25 = vperm.slane %v4680_v23, 0  ;;  %v5211_v46 = vld [vmem:[#allocation16 + $0x78] sm:$0xff] }
 0x33c   :  { %5063 = vmatpush.bf16.msra.mxu0 %v7416_v33  ;;  %5076 = vmatpush.bf16.msra.mxu1 %v7480_v3  ;;  %v7587_v33 = vld [vmem:[#allocation4 + $0x180] sm:$0xf]  ;;  %v8212_v3 = vld [vmem:[#allocation4 + $0x184] sm:$0xf0] }
 0x33d   :  { %5087 = vmatpush.bf16.msra.mxu2 %v7560_v36  ;;  %v4441_v20 = vpop.f32.mrf.mxu2  ;;  %v4454_v50 = vpop.f32.mrf.mxu3  ;;  %v8225_v36 = vld [vmem:[#allocation4 + $0x1f4] sm:$0xf]  ;;  %v7588_v26 = vor.u32 %v8212_v3, %v7587_v33  ;;  %v4683_v3 = vperm.slane %v4680_v23, 1  ;;  %v5200_v23 = vld [vmem:[#allocation16 + $0x20] sm:$0xff] }
 0x33e   :  { %v7648_v42 = vor.u32 %v8225_v36, %v7645_v27  ;;  %v7608_v20 = vor.u32 %v8215_v1, %v7605_v5 }
 0x340   :  { %5064 = vmatpush.bf16.msra.mxu0 %v7408_v39  ;;  %5077 = vmatpush.bf16.msra.mxu1 %v7472_v52 }
 0x341   :  { %5088 = vmatpush.bf16.msra.mxu2 %v7552_v53  ;;  %v8221_v53 = vld [vmem:[#allocation4 + $0x1d4] sm:$0xf] }
 0x342   :  { %v7632_v55 = vor.u32 %v8221_v53, %v7629_v54  ;;  %v8521_v53 = vmov 2.0  }
 0x343   :  { %8242 = vrcp.f32 %v8521_v53 }
 0x344   :  { %5065 = vmatpush.bf16.msra.mxu0 %v7400_v44  ;;  %5078 = vmatpush.bf16.msra.mxu1 %v7464_v61  ;;  %v4465_v11 = vpop.f32.mrf.mxu0  ;;  %v8855_v47 = vpop.f32.mrf.mxu1  ;;  %v7613_v44 = vld [vmem:[#allocation4 + $0x1b8] sm:$0xf0] }
 0x345   :  { %5089 = vmatpush.bf16.msra.mxu2 %v7544_v48  ;;  %v4466_v58 = vadd.f32 %v4465_v11, %v8851_v0  ;;  %v7616_v48 = vor.u32 %v8217_v41, %v7613_v44 }
 0x347   :  { %5066 = vmatmul.bf16.vlgmr.msra.gmra.mxu0 %v8839_v15  ;;  %5079 = vmatmul.bf16.vlgmr.msra.gmra.mxu1 %v8844_v62  ;;  %v7627_v15 = vld [vmem:[#allocation4 + $0x1d0] sm:$0xf]  ;;  %v8222_v62 = vld [vmem:[#allocation4 + $0x1d4] sm:$0xf0]  ;;  %v4479_v61 = vadd.f32 %v8855_v47, %v4466_v58 }
 0x348   :  { %v7628_v56 = vor.u32 %v8222_v62, %v7627_v15  ;;  %5232 = vmatpush.msrb.mxu0 %v5211_v46  ;;  %v5217_v46 = vld [vmem:[#allocation16 + $0xa8] sm:$0xff] }
 0x349   :  { %5090 = vmatpush.bf16.msra.mxu2 %v7536_v10  ;;  %v8243_v54 = vpop.eup %8242 }
 0x34a   :  { %5047 = vmatpush.bf16.msrb.mxu3 %v7628_v56  ;;  %vm5132_vm5 = vweird.f32 %v8243_v54 }
 0x34c   :  { %v4467_v35 = vpop.f32.mrf.mxu0  ;;  %v4480_v4 = vpop.f32.mrf.mxu1 }
 0x34d   :  { %5091 = vmatpush.bf16.msra.mxu2 %v7528_v9  ;;  %v8213_v9 = vld [vmem:[#allocation4 + $0x194] sm:$0xf] }
 0x34e   :  { %5048 = vmatpush.bf16.msrb.mxu3 %v7620_v37  ;;  %v7600_v0 = vor.u32 %v8213_v9, %v7597_v12  ;;  %v5206_v9 = vld [vmem:[#allocation16 + $0x50] sm:$0xff] }
 0x350   :  { %5092 = vmatmul.bf16.vlgmr.msra.gmra.mxu2 %v8848_v18  ;;  %v7612_v18 = vor.u32 %v8218_v38, %v7611_v22 }
 0x352   :  { %5049 = vmatpush.bf16.msrb.mxu3 %v7612_v18 }
 0x355   :  { %v4491_v63 = vpop.f32.mrf.mxu2  ;;  %v4504_v51 = vpop.f32.mrf.mxu3 }
 0x356   :  { %5050 = vmatpush.bf16.msrb.mxu3 %v7604_v24  ;;  %v4492_v10 = vadd.f32 %v4491_v63, %v4479_v61  ;;  %v5209_v61 = vld [vmem:[#allocation16 + $0x68] sm:$0xff] }
 0x358   :  { %v4505_v8 = vadd.f32 %v4504_v51, %v4492_v10  ;;  %v5208_v10 = vld [vmem:[#allocation16 + $0x60] sm:$0xff] }
 0x35a   :  { %5051 = vmatpush.bf16.msrb.mxu3 %v7596_v32 }
 0x35d   :  { %v4493_v6 = vpop.f32.mrf.mxu2  ;;  %v4506_v30 = vpop.f32.mrf.mxu3 }
 0x35e   :  { %5052 = vmatpush.bf16.msrb.mxu3 %v7588_v26 }
 0x362   :  { %5097 = vmatpush.bf16.msra.mxu3 %v7648_v42 }
 0x364   :  { %v4517_v40 = vpop.f32.mrf.mxu0  ;;  %v4530_v2 = vpop.f32.mrf.mxu1 }
 0x365   :  { %v4518_v13 = vadd.f32 %v4517_v40, %v4505_v8 }
 0x366   :  { %5098 = vmatpush.bf16.msra.mxu3 %v7640_v45 }
 0x367   :  { %v4531_v47 = vadd.f32 %v4530_v2, %v4518_v13  ;;  %v5205_v13 = vld [vmem:[#allocation16 + $0x48] sm:$0xff] }
 0x36a   :  { %5099 = vmatpush.bf16.msra.mxu3 %v7632_v55  ;;  %v5128_v55 = vmul.f32 2.0, %v8243_v54 }
 0x36c   :  { %v4519_v39 = vpop.f32.mrf.mxu0  ;;  %v4532_v52 = vpop.f32.mrf.mxu1  ;;  %v5129_v58 = vsub.f32 1.0, %v5128_v55  ;;  %v5218_v55 = vld [vmem:[#allocation16 + $0xb0] sm:$0xff] }
 0x36e   :  { %5100 = vmatpush.bf16.msra.mxu3 %v7624_v59  ;;  %v5210_v59 = vld [vmem:[#allocation16 + $0x70] sm:$0xff] }
 0x36f   :  { %5233 = vmatpush.msrb.mxu0 %v5210_v59  ;;  %v5216_v59 = vld [vmem:[#allocation16 + $0xa0] sm:$0xff] }
 0x371   :  { %5234 = vmatpush.msrb.mxu0 %v5209_v61 }
 0x372   :  { %5101 = vmatpush.bf16.msra.mxu3 %v7616_v48  ;;  %v5130_v48 = vmul.f32 %v8243_v54, %v5129_v58 }
 0x373   :  { %5235 = vmatpush.msrb.mxu0 %v5208_v10 }
 0x375   :  { %v4543_v28 = vpop.f32.mrf.mxu2  ;;  %v4556_v49 = vpop.f32.mrf.mxu3 }
 0x376   :  { %5102 = vmatpush.bf16.msra.mxu3 %v7608_v20  ;;  %v4544_v35 = vadd.f32 %v4543_v28, %v4531_v47 }
 0x378   :  { %v4557_v4 = vadd.f32 %v4556_v49, %v4544_v35  ;;  %v5227_v35 = vld [vmem:[#allocation16 + $0xf8] sm:$0xff] }
 0x379   :  { %5252 = vmatpush.msrb.mxu1 %v5227_v35 }
 0x37a   :  { %5103 = vmatpush.bf16.msra.mxu3 %v7600_v0 }
 0x37d   :  { %v4545_v50 = vpop.f32.mrf.mxu2  ;;  %v4558_v60 = vpop.f32.mrf.mxu3 }
 0x37e   :  { %5104 = vmatpush.bf16.msra.mxu3 %v7592_v34  ;;  %v5207_v50 = vld [vmem:[#allocation16 + $0x58] sm:$0xff]  ;;  %v5131_v60 = vadd.f32 %v8243_v54, %v5130_v48  ;;  %v5214_v48 = vld [vmem:[#allocation16 + $0x90] sm:$0xff] }
 0x37f   :  { %5236 = vmatpush.msrb.mxu0 %v5207_v50  ;;  %v5203_v34 = vld [vmem:[#allocation16 + $0x38] sm:$0xff]  ;;  %v5212_v50 = vld [vmem:[#allocation16 + $0x80] sm:$0xff] }
 0x380   :  { %v8861_v0 = vsel %vm5132_vm5, %v8243_v54, %v5131_v60 }
 0x381   :  { %5237 = vmatpush.msrb.mxu0 %v5206_v9 }
 0x383   :  { %5238 = vmatpush.msrb.mxu0 %v5205_v13 }
 0x384   :  { %v4569_v11 = vpop.f32.mrf.mxu0  ;;  %v4582_v16 = vpop.f32.mrf.mxu1 }
 0x385   :  { %v4570_v56 = vadd.f32 %v4569_v11, %v4557_v4  ;;  %5239 = vmatpush.msrb.mxu0 %v5204_v21  ;;  %v5180_v21 = vld [vmem:[#allocation13] sm:$0x3] }
 0x386   :  { %v5182_v35 = vperm.slane %v5180_v21, 0 }
 0x387   :  { %v4583_v63 = vadd.f32 %v4582_v16, %v4570_v56  ;;  %5240 = vmatpush.msrb.mxu0 %v5203_v34  ;;  %v5226_v56 = vld [vmem:[#allocation16 + $0xf0] sm:$0xff]  ;;  %v5188_v34 = vld [vmem:[#allocation14] sm:$0x3] }
 0x388   :  { %5253 = vmatpush.msrb.mxu1 %v5226_v56  ;;  %v5190_v56 = vperm.slane %v5188_v34, 0 }
 0x38c   :  { %v4571_v15 = vpop.f32.mrf.mxu0  ;;  %v4584_v62 = vpop.f32.mrf.mxu1 }
 0x38d   :  { %v5202_v62 = vld [vmem:[#allocation16 + $0x30] sm:$0xff] }
 0x38e   :  { %5241 = vmatpush.msrb.mxu0 %v5202_v62 }
 0x394   :  { %v4608_v57 = vpop.f32.mrf.mxu3 }
 0x395   :  { %v4595_v51 = vpop.f32.mrf.mxu2 }
 0x396   :  { %v4596_v19 = vadd.f32 %v4595_v51, %v4583_v63 }
 0x398   :  { %v4609_v37 = vadd.f32 %v4608_v57, %v4596_v19  ;;  %v5201_v19 = vld [vmem:[#allocation16 + $0x28] sm:$0xff] }
 0x399   :  { %5242 = vmatpush.msrb.mxu0 %v5201_v19 }
 0x39a   :  { %v4615_v22 = vpack.c.bf16 %v4609_v37, %v4609_v37  ;;  %v5225_v37 = vld [vmem:[#allocation16 + $0xe8] sm:$0xff] }
 0x39b   :  { %5254 = vmatpush.msrb.mxu1 %v5225_v37  ;;  %5243 = vmatpush.msrb.mxu0 %v5200_v23 }
 0x39c   :  { %5053 = vmatmul.bf16.vlgmr.msrb.gmra.mxu3 %v4615_v22  ;;  %v4610_v18 = vpop.f32.mrf.mxu3 }
 0x39d   :  { %v4597_v38 = vpop.f32.mrf.mxu2 }
 0x3a4   :  { %v5015_v6 = vpop.f32.mrf.mxu0  ;;  %v5028_v30 = vpop.f32.mrf.mxu1 }
 0x3a5   :  { %v5016_v24 = vadd.f32 %v5015_v6, %v4682_v25  ;;  %v5224_v25 = vld [vmem:[#allocation16 + $0xe0] sm:$0xff] }
 0x3a6   :  { %5255 = vmatpush.msrb.mxu1 %v5224_v25 }
 0x3a7   :  { %v5029_v7 = vadd.f32 %v5028_v30, %v5016_v24  ;;  %v5199_v24 = vld [vmem:[#allocation16 + $0x18] sm:$0xff] }
 0x3a8   :  { %5244 = vmatpush.msrb.mxu0 %v5199_v24 }
 0x3ac   :  { %v5017_v31 = vpop.f32.mrf.mxu0  ;;  %v5030_v32 = vpop.f32.mrf.mxu1  ;;  %5105 = vmatmul.bf16.vlgmr.msra.gmra.mxu3 %v4615_v22 }
 0x3b5   :  { %v5041_v40 = vpop.f32.mrf.mxu2 }
 0x3b6   :  { %v5042_v2 = vadd.f32 %v5041_v40, %v5029_v7  ;;  %v5223_v7 = vld [vmem:[#allocation16 + $0xd8] sm:$0xff]  ;;  %v5198_v40 = vld [vmem:[#allocation16 + $0x10] sm:$0xff] }
 0x3b7   :  { %5256 = vmatpush.msrb.mxu1 %v5223_v7  ;;  %5245 = vmatpush.msrb.mxu0 %v5198_v40 }
 0x3bd   :  { %v5043_v33 = vpop.f32.mrf.mxu2 }
 0x3c4   :  { %v5067_v36 = vpop.f32.mrf.mxu0  ;;  %v5080_v27 = vpop.f32.mrf.mxu1 }
 0x3c5   :  { %v5068_v26 = vadd.f32 %v5067_v36, %v4683_v3  ;;  %v5197_v36 = vld [vmem:[#allocation16 + $0x8] sm:$0xff] }
 0x3c6   :  { %5246 = vmatpush.msrb.mxu0 %v5197_v36 }
 0x3c7   :  { %v5081_v42 = vadd.f32 %v5080_v27, %v5068_v26  ;;  %v5221_v26 = vld [vmem:[#allocation16 + $0xc8] sm:$0xff] }
 0x3cc   :  { %v5069_v43 = vpop.f32.mrf.mxu0  ;;  %v5082_v14 = vpop.f32.mrf.mxu1 }
 0x3cd   :  { %v5196_v43 = vld [vmem:[#allocation16] sm:$0xff] }
 0x3ce   :  { %v5220_v14 = vld [vmem:[#allocation16 + $0xc0] sm:$0xff]  ;;  %5247 = vmatpush.msrb.mxu0 %v5196_v43 }
 0x3d3   :  { %v5093_v45 = vpop.f32.mrf.mxu2 }
 0x3d4   :  { %v5094_v39 = vadd.f32 %v5093_v45, %v5081_v42 }
 0x3db   :  { %v5095_v52 = vpop.f32.mrf.mxu2 }
 0x3dc   :  { %v5219_v52 = vld [vmem:[#allocation16 + $0xb8] sm:$0xff] }
 0x41f   :  { %v5054_v28 = vpop.f32.mrf.mxu3 }
 0x420   :  { %v5055_v49 = vadd.f32 %v5054_v28, %v5042_v2  ;;  %v5222_v2 = vld [vmem:[#allocation16 + $0xd0] sm:$0xff] }
 0x421   :  { %5257 = vmatpush.msrb.mxu1 %v5222_v2 }
 0x422   :  { %v5110_v29 = vmax.f32 %v5055_v49, 0.0 }
 0x423   :  { %5258 = vmatpush.msrb.mxu1 %v5221_v26 }
 0x424   :  { %v5113_v41 = vsel %vm5112_vm4, %v5110_v29, 0.0 }
 0x425   :  { %v5114_v44 = vrot.slane %v5113_v41, 4  ;;  %5259 = vmatpush.msrb.mxu1 %v5220_v14 }
 0x427   :  { %v5115_v1 = vadd.f32 %v5114_v44, %v5113_v41  ;;  %v5056_v5 = vpop.f32.mrf.mxu3  ;;  %5260 = vmatpush.msrb.mxu1 %v5219_v52  ;;  %v5215_v44 = vld [vmem:[#allocation16 + $0x98] sm:$0xff] }
 0x428   :  { %v5213_v5 = vld [vmem:[#allocation16 + $0x88] sm:$0xff] }
 0x429   :  { %v5116_v20 = vrot.slane %v5115_v1, 2  ;;  %5261 = vmatpush.msrb.mxu1 %v5218_v55 }
 0x42b   :  { %v5117_v8 = vadd.f32 %v5116_v20, %v5115_v1  ;;  %5262 = vmatpush.msrb.mxu1 %v5217_v46 }
 0x42d   :  { %v5118_v12 = vrot.slane %v5117_v8, 1  ;;  %5263 = vmatpush.msrb.mxu1 %v5216_v59 }
 0x42f   :  { %v5119_v11 = vadd.f32 %v5118_v12, %v5117_v8  ;;  %v5106_v16 = vpop.f32.mrf.mxu3  ;;  %5264 = vmatpush.msrb.mxu1 %v5215_v44 }
 0x430   :  { %v5107_v17 = vadd.f32 %v5106_v16, %v5094_v39 }
 0x431   :  { %v5134_v47 = vmul.f32 %v8861_v0, %v5119_v11  ;;  %5265 = vmatpush.msrb.mxu1 %v5214_v48 }
 0x432   :  { %v5111_v4 = vmax.f32 %v5107_v17, 0.0 }
 0x433   :  { %v8864_v15 = vsub.f32 %v5110_v29, %v5134_v47  ;;  %5266 = vmatpush.msrb.mxu1 %v5213_v5 }
 0x434   :  { %v5120_v63 = vsel %vm5112_vm4, %v5111_v4, 0.0 }
 0x435   :  { %v5138_v51 = vmul.f32 %v8864_v15, %v8864_v15  ;;  %v5121_v57 = vrot.slane %v5120_v63, 4  ;;  %5267 = vmatpush.msrb.mxu1 %v5212_v50 }
 0x437   :  { %v5140_v22 = vsel %vm5112_vm4, %v5138_v51, 0.0  ;;  %v5122_v38 = vadd.f32 %v5121_v57, %v5120_v63  ;;  %v5108_v18 = vpop.f32.mrf.mxu3 }
 0x438   :  { %v5141_v6 = vrot.slane %v5140_v22, 4  ;;  %v5183_v18 = vperm.slane %v5180_v21, 1 }
 0x439   :  { %v5123_v30 = vrot.slane %v5122_v38, 2 }
 0x43a   :  { %v5142_v31 = vadd.f32 %v5141_v6, %v5140_v22  ;;  %v5191_v6 = vperm.slane %v5188_v34, 1 }
 0x43b   :  { %v5124_v32 = vadd.f32 %v5123_v30, %v5122_v38 }
 0x43c   :  { %v5143_v33 = vrot.slane %v5142_v31, 2 }
 0x43d   :  { %v5125_v3 = vrot.slane %v5124_v32, 1 }
 0x43e   :  { %v5144_v27 = vadd.f32 %v5143_v33, %v5142_v31 }
 0x43f   :  { %v5126_v42 = vadd.f32 %v5125_v3, %v5124_v32 }
 0x440   :  { %v5145_v45 = vrot.slane %v5144_v27, 1 }
 0x441   :  { %v5135_v39 = vmul.f32 %v8861_v0, %v5126_v42 }
 0x442   :  { %v5146_v53 = vadd.f32 %v5145_v45, %v5144_v27 }
 0x443   :  { %v5137_v54 = vsub.f32 %v5111_v4, %v5135_v39 }
 0x444   :  { %v5154_v28 = vmul.f32 %v5146_v53, %v8861_v0 }
 0x445   :  { %v5139_v49 = vmul.f32 %v5137_v54, %v5137_v54 }
 0x446   :  { %v5156_v29 = vadd.f32 0.2, %v5154_v28 }
 0x447   :  { %v5147_v58 = vsel %vm5112_vm4, %v5139_v49, 0.0 }
 0x448   :  { %8244 = vrsqrt.f32 %v5156_v29  ;;  %v5148_v41 = vrot.slane %v5147_v58, 4  ;;  %vm5164_vm7 = vweird.f32 %v5156_v29 }
 0x44a   :  { %v5149_v61 = vadd.f32 %v5148_v41, %v5147_v58 }
 0x44c   :  { %v5150_v1 = vrot.slane %v5149_v61, 2 }
 0x44e   :  { %v8245_v10 = vpop.eup %8244  ;;  %v5151_v20 = vadd.f32 %v5150_v1, %v5149_v61 }
 0x44f   :  { %v5159_v60 = vmul.f32 %v8245_v10, %v5156_v29  ;;  %vm5165_vm6 = vweird.f32 %v8245_v10 }
 0x450   :  { %v5152_v8 = vrot.slane %v5151_v20, 1  ;;  %vm5166_vm8 = vmor %vm5164_vm7, %vm5165_vm6 }
 0x451   :  { %v5160_v9 = vmul.f32 %v8245_v10, %v5159_v60 }
 0x452   :  { %v5153_v12 = vadd.f32 %v5152_v8, %v5151_v20 }
 0x453   :  { %v5161_v13 = vmul.f32 0.5, %v5160_v9 }
 0x454   :  { %v5155_v11 = vmul.f32 %v5153_v12, %v8861_v0 }
 0x455   :  { %v5162_v16 = vsub.f32 1.5, %v5161_v13 }
 0x456   :  { %v5157_v17 = vadd.f32 0.2, %v5155_v11 }
 0x457   :  { %v5163_v47 = vmul.f32 %v8245_v10, %v5162_v16 }
 0x458   :  { %8246 = vrsqrt.f32 %v5157_v17  ;;  %vm5174_vm10 = vweird.f32 %v5157_v17 }
 0x459   :  { %v5167_v4 = vsel %vm5166_vm8, %v8245_v10, %v5163_v47 }
 0x45a   :  { %v5178_v62 = vmul.f32 %v5167_v4, %v8864_v15  ;;  %v8241_v15 = vld [vmem:[#allocation17] ss:$0 sm:$0xff] }
 0x45c   :  { %v5186_v63 = vmul.f32 %v5182_v35, %v5178_v62 }
 0x45e   :  { %v8247_v51 = vpop.eup %8246  ;;  %v5194_v57 = vadd.f32 %v5190_v56, %v5186_v63 }
 0x45f   :  { %v5169_v19 = vmul.f32 %v8247_v51, %v5157_v17  ;;  %vm5175_vm9 = vweird.f32 %v8247_v51 }
 0x460   :  { %5248 = vmatmul.f32.vlgmr.msrb.gmra.mxu0 %v5194_v57  ;;  %vm5176_vm11 = vmor %vm5174_vm10, %vm5175_vm9 }
 0x461   :  { %v5170_v0 = vmul.f32 %v8247_v51, %v5169_v19 }
 0x463   :  { %v5171_v37 = vmul.f32 0.5, %v5170_v0 }
 0x465   :  { %v5172_v22 = vsub.f32 1.5, %v5171_v37 }
 0x467   :  { %v5173_v38 = vmul.f32 %v8247_v51, %v5172_v22 }
 0x469   :  { %v5177_v23 = vsel %vm5176_vm11, %v8247_v51, %v5173_v38 }
 0x46a   :  { %v5179_v25 = vmul.f32 %v5177_v23, %v5137_v54 }
 0x46c   :  { %v5187_v30 = vmul.f32 %v5183_v18, %v5179_v25 }
 0x46e   :  { %v5195_v24 = vadd.f32 %v5191_v6, %v5187_v30 }
 0x470   :  { %5268 = vmatmul.f32.vlgmr.msrb.gmra.mxu1 %v5195_v24 }
 0x4dd   :  { %v5249_v7 = vpop.f32.mrf.mxu0 }
 0x4de   :  { %v5250_v31 = vadd.f32 %v8241_v15, %v5249_v7 }
 0x4ed   :  { %v5269_v32 = vpop.f32.mrf.mxu1 }
 0x4ee   :  { %v5270_v40 = vadd.f32 %v5269_v32, %v5250_v31 }
 0x4f0   :  { %v5272_v2 = vsub.f32 0.0, %v5270_v40 }
 0x4f2   :  { %v5273_v33 = vmul.f32 1.442695, %v5272_v2 }
 0x4f4   :  { %8248 = vpow2.f32 %v5273_v33 }
 0x4fa   :  { %v8249_v3 = vpop.eup %8248 }
 0x4fb   :  { %v5275_v36 = vadd.f32 1.0, %v8249_v3 }
 0x4fd   :  { %8250 = vrcp.f32 %v5275_v36  ;;  %v5287_v43 = vand.u32 2147483648, %v5275_v36  ;;  %v5285_v45 = vand.u32 2147483647, %v5275_v36  ;;  %vm5281_vm13 = vweird.f32 %v5275_v36 }
 0x4ff   :  { %v5288_v52 = vor.u32 1.1754944e-38, %v5287_v43  ;;  %vm5286_vm15 = vcmp.eq.f32.partialorder %v5285_v45, 8.507059e+37 }
 0x503   :  { %v8251_v26 = vpop.eup %8250 }
 0x504   :  { %v5277_v27 = vmul.f32 %v8251_v26, %v5275_v36  ;;  %vm5282_vm12 = vweird.f32 %v8251_v26 }
 0x505   :  { %vm5283_vm14 = vmor %vm5281_vm13, %vm5282_vm12 }
 0x506   :  { %v5278_v42 = vsub.f32 1.0, %v5277_v27 }
 0x508   :  { %v5279_v14 = vmul.f32 %v8251_v26, %v5278_v42 }
 0x50a   :  { %v5280_v39 = vadd.f32 %v8251_v26, %v5279_v14 }
 0x50c   :  { %v5284_v53 = vsel %vm5283_vm14, %v8251_v26, %v5280_v39 }
 0x50d   :  { %v5289_v54 = vsel %vm5286_vm15, %v5288_v52, %v5284_v53 }
 0x50e   :  { %5290 = vst [vmem:[%s8889_s11] sm:$0x3] %v5289_v54 }
 0x50f   :  { %5295 = vsyncpa [#allocation7], 1 }
 0x510   :  { %5296 = vsyncpa [#allocation9], 1 }
 0x511   :  { %5297 = vsyncpa [#allocation12], 1 }
 0x512   :  { %5298 = vsyncpa [#allocation15], 1 }
 0x513   :  { %5299 = vsyncpa [#allocation18], 1 }
 0x514   :  { %5300 = vsyncmov [#allocation5] }
 0x517   :  { %s5301_s22 = vpop.sfrf %5300 }
 0x518   :  { %p7649_p0 = scmp.ne.s32.totalorder %s5301_s22, 0 }
 0x51a   :  { %5305 = shalt.err (%p7649_p0)  }
 0x51b   :  { %5307 = vsyncmov [#allocation5 + $0x1] }
 0x51e   :  { %s5308_s23 = vpop.sfrf %5307 }
 0x51f   :  { %p7650_p1 = scmp.ne.s32.totalorder %s5308_s23, 0 }
 0x521   :  { %5312 = shalt.err (%p7650_p1)  }

</bundles_post_ra>
